<compile_context>
chip_gen: v7x
topology: tpu7x:2x2x1
jax: 0.10.0
libtpu: 0.0.40
codegen_flags: <defaults>
</compile_context>

<pallas_src>
import math
import functools

import jax
import jax.numpy as jnp
from jax import lax
from jax.experimental import pallas as pl
from jax.experimental.pallas import tpu as pltpu


# ----------------------------- in-kernel helpers -----------------------------

def _layernorm(x, g, b, eps=1e-5):
    # all-f32 statistics
    mu = jnp.mean(x, axis=-1, keepdims=True)
    var = jnp.mean((x - mu) ** 2, axis=-1, keepdims=True)
    return (x - mu) * lax.rsqrt(var + eps) * g + b


def _gelu_tanh(x):
    c = math.sqrt(2.0 / math.pi)
    return 0.5 * x * (1.0 + jnp.tanh(c * (x + 0.044715 * x * x * x)))


def _mm(a, w):
    # 2D matmul: bf16 operands, f32 accumulation (w is already bf16)
    return jnp.dot(a.astype(jnp.bfloat16), w, preferred_element_type=jnp.float32)


def _ffn(x, w1, b1, w2, b2):
    h = _gelu_tanh(_mm(x, w1) + b1)
    return _mm(h, w2) + b2


def _mha_core(q3, k3, v3, mask, scale):
    # q3: (H, T, hd) f32; k3/v3: (H, S, hd) f32 -> (H, T, hd) f32
    att = jnp.einsum('htd,hsd->hts',
                     q3.astype(jnp.bfloat16), k3.astype(jnp.bfloat16),
                     preferred_element_type=jnp.float32) * scale
    if mask is not None:
        att = jnp.where(mask, att, -1e30)
    att = att - jnp.max(att, axis=-1, keepdims=True)
    p = jnp.exp(att)
    p = p * pl.reciprocal(jnp.sum(p, axis=-1, keepdims=True), approx=True)
    return jnp.einsum('hts,hsd->htd',
                      p.astype(jnp.bfloat16), v3.astype(jnp.bfloat16),
                      preferred_element_type=jnp.float32)


def _merge_heads_proj(y3, wo_h, bo):
    # y3: (H, T, hd); wo_h: (H, hd, C) bf16 -> (T, C) f32
    # concat(heads) @ Wo  ==  sum_h  y_h @ Wo_h
    o = jnp.einsum('htd,hdc->htc', y3.astype(jnp.bfloat16), wo_h,
                   preferred_element_type=jnp.float32)
    return jnp.sum(o, axis=0) + bo


def _self_attn(x, wqkv, bqkv, wo, bo, n_head, causal_mask):
    H = n_head
    T, C = x.shape
    hd = C // H
    xb = jnp.broadcast_to(x.astype(jnp.bfloat16), (H, T, C))
    qkv = jnp.einsum('htc,hcd->htd', xb, wqkv,
                     preferred_element_type=jnp.float32) + bqkv   # (H, T, 3*hd)
    q3 = qkv[:, :, 0:hd]
    k3 = qkv[:, :, hd:2 * hd]
    v3 = qkv[:, :, 2 * hd:3 * hd]
    y3 = _mha_core(q3, k3, v3, causal_mask, 1.0 / math.sqrt(hd))
    return _merge_heads_proj(y3, wo, bo)


def _cross_attn(x, enc, wq, bq, wkv, bkv, wo, bo, n_head):
    H = n_head
    T, C = x.shape
    S = enc.shape[0]
    hd = C // H
    xb = jnp.broadcast_to(x.astype(jnp.bfloat16), (H, T, C))
    eb = jnp.broadcast_to(enc.astype(jnp.bfloat16), (H, S, C))
    q3 = jnp.einsum('htc,hcd->htd', xb, wq,
                    preferred_element_type=jnp.float32) + bq       # (H, T, hd)
    kv = jnp.einsum('hsc,hcd->hsd', eb, wkv,
                    preferred_element_type=jnp.float32) + bkv      # (H, S, 2*hd)
    k3 = kv[:, :, 0:hd]
    v3 = kv[:, :, hd:2 * hd]
    y3 = _mha_core(q3, k3, v3, None, 1.0 / math.sqrt(hd))
    return _merge_heads_proj(y3, wo, bo)


# --------------------------------- kernel ------------------------------------

def _block_kernel(n_head,
                  x_ref, enc_ref,
                  ln1_g, ln1_b, ln2_g, ln2_b,
                  sa_wqkv, sa_bqkv, sa_wo, sa_bo,
                  ca_wq, ca_bq, ca_wkv, ca_bkv, ca_wo, ca_bo,
                  m_wfc, m_bfc, m_wpr, m_bpr,
                  ad1_w1, ad1_b1, ad1_w2, ad1_b2,
                  ad2_w1, ad2_b1, ad2_w2, ad2_b2,
                  out_ref):
    x = x_ref[0]      # (T, C) f32
    enc = enc_ref[0]  # (S, C) f32
    T = x.shape[0]

    # causal mask built once (hoisted; broadcasts over the head batch dim)
    row = lax.broadcasted_iota(jnp.int32, (T, T), 0)
    col = lax.broadcasted_iota(jnp.int32, (T, T), 1)
    causal = col <= row

    # x = x + attn(ln_1(x))   (assumed causal self-attention)
    h = _layernorm(x, ln1_g[...], ln1_b[...])
    x = x + _self_attn(h, sa_wqkv[...], sa_bqkv[...], sa_wo[...], sa_bo[...],
                       n_head, causal)

    # x = x + adapter_layer1(x)
    x = x + _ffn(x, ad1_w1[...], ad1_b1[...], ad1_w2[...], ad1_b2[...])

    # x = x + crossattn(x, encoder_output)[0]
    x = x + _cross_attn(x, enc, ca_wq[...], ca_bq[...], ca_wkv[...], ca_bkv[...],
                        ca_wo[...], ca_bo[...], n_head)

    # x = x + mlp(ln_2(x))
    h = _layernorm(x, ln2_g[...], ln2_b[...])
    x = x + _ffn(h, m_wfc[...], m_bfc[...], m_wpr[...], m_bpr[...])

    # x = x + adapter_layer2(x)
    x = x + _ffn(x, ad2_w1[...], ad2_b1[...], ad2_w2[...], ad2_b2[...])

    out_ref[0] = x.astype(out_ref.dtype)


# --------------------------------- wrapper -----------------------------------

def block_forward(x, enc, params, n_head):
    B, T, C = x.shape
    _, S, _ = enc.shape

    in_specs = [
        pl.BlockSpec((1, T, C), lambda b: (b, 0, 0)),
        pl.BlockSpec((1, S, C), lambda b: (b, 0, 0)),
    ]
    # weights/biases: full (untiled) blocks, constant block index across the grid
    for p in params:
        in_specs.append(pl.BlockSpec(p.shape, lambda b, nd=p.ndim: (0,) * nd))

    return pl.pallas_call(
        functools.partial(_block_kernel, n_head),
        out_shape=jax.ShapeDtypeStruct((B, T, C), jnp.float32),
        grid=(B,),
        in_specs=in_specs,
        out_specs=pl.BlockSpec((1, T, C), lambda b: (b, 0, 0)),
        compiler_params=pltpu.CompilerParams(
            dimension_semantics=("parallel",),
            vmem_limit_bytes=64 * 1024 * 1024),
    )(x, enc, *params)


# ------------------------- deterministic parameter init ----------------------

def make_params(key, C, n_head):
    H = n_head
    hd = C // H
    ks = iter(jax.random.split(key, 48))

    def w(shape):   # matmul weights stored in bf16 (halves DMA / VMEM)
        return (0.02 * jax.random.normal(next(ks), shape, jnp.float32)
                ).astype(jnp.bfloat16)

    def b(shape):   # biases kept in f32
        return 0.02 * jax.random.normal(next(ks), shape, jnp.float32)

    params = []
    # ln_1, ln_2 (gamma=1, beta=0)
    params += [jnp.ones((1, C), jnp.float32), jnp.zeros((1, C), jnp.float32)]
    params += [jnp.ones((1, C), jnp.float32), jnp.zeros((1, C), jnp.float32)]
    # self-attention: fused head-batched QKV + output projection
    params += [w((H, C, 3 * hd)), b((H, 1, 3 * hd)), w((H, hd, C)), b((1, C))]
    # cross-attention: Q, fused K/V, output projection
    params += [w((H, C, hd)), b((H, 1, hd)),
               w((H, C, 2 * hd)), b((H, 1, 2 * hd)),
               w((H, hd, C)), b((1, C))]
    # mlp c_fc, c_proj
    params += [w((C, 4 * C)), b((1, 4 * C)), w((4 * C, C)), b((1, C))]
    # adapter_layer1
    params += [w((C, 128)), b((1, 128)), w((128, C)), b((1, C))]
    # adapter_layer2
    params += [w((C, 128)), b((1, 128)), w((128, C)), b((1, C))]
    return params


# ----------------------------------- main ------------------------------------

if __name__ == "__main__":
    # C and head-dim chosen lane-dense (C=256, hd=128, 4C=1024, adapter=128)
    B, T, S, C, n_head = 2, 8, 8, 256, 2

    key = jax.random.PRNGKey(0)
    kx, ke, kp = jax.random.split(key, 3)
    x = jax.random.normal(kx, (B, T, C), jnp.float32)
    enc = jax.random.normal(ke, (B, S, C), jnp.float32)
    params = make_params(kp, C, n_head)

    out = block_forward(x, enc, params, n_head)
    jax.block_until_ready(out)
    assert out.shape == (B, T, C)
    print("KERNEL_OK")
</pallas_src>

<mosaic_0001>
module attributes {stable_mosaic.version = 11 : i64} {
  func.func @_block_kernel(%arg0: i32, %arg1: memref<1x8x256xf32, #tpu.memory_space<vmem>>, %arg2: memref<1x8x256xf32, #tpu.memory_space<vmem>>, %arg3: memref<1x256xf32, #tpu.memory_space<vmem>>, %arg4: memref<1x256xf32, #tpu.memory_space<vmem>>, %arg5: memref<1x256xf32, #tpu.memory_space<vmem>>, %arg6: memref<1x256xf32, #tpu.memory_space<vmem>>, %arg7: memref<2x256x384xbf16, #tpu.memory_space<vmem>>, %arg8: memref<2x1x384xf32, #tpu.memory_space<vmem>>, %arg9: memref<2x128x256xbf16, #tpu.memory_space<vmem>>, %arg10: memref<1x256xf32, #tpu.memory_space<vmem>>, %arg11: memref<2x256x128xbf16, #tpu.memory_space<vmem>>, %arg12: memref<2x1x128xf32, #tpu.memory_space<vmem>>, %arg13: memref<2x256x256xbf16, #tpu.memory_space<vmem>>, %arg14: memref<2x1x256xf32, #tpu.memory_space<vmem>>, %arg15: memref<2x128x256xbf16, #tpu.memory_space<vmem>>, %arg16: memref<1x256xf32, #tpu.memory_space<vmem>>, %arg17: memref<256x1024xbf16, #tpu.memory_space<vmem>>, %arg18: memref<1x1024xf32, #tpu.memory_space<vmem>>, %arg19: memref<1024x256xbf16, #tpu.memory_space<vmem>>, %arg20: memref<1x256xf32, #tpu.memory_space<vmem>>, %arg21: memref<256x128xbf16, #tpu.memory_space<vmem>>, %arg22: memref<1x128xf32, #tpu.memory_space<vmem>>, %arg23: memref<128x256xbf16, #tpu.memory_space<vmem>>, %arg24: memref<1x256xf32, #tpu.memory_space<vmem>>, %arg25: memref<256x128xbf16, #tpu.memory_space<vmem>>, %arg26: memref<1x128xf32, #tpu.memory_space<vmem>>, %arg27: memref<128x256xbf16, #tpu.memory_space<vmem>>, %arg28: memref<1x256xf32, #tpu.memory_space<vmem>>, %arg29: memref<1x8x256xf32, #tpu.memory_space<vmem>>) attributes {dimension_semantics = [#tpu.dimension_semantics<parallel>], iteration_bounds = array<i64: 2>, scalar_prefetch = 0 : i64, scratch_operands = 0 : i64, tpu.core_type = #tpu.core_type<tc>, window_params = [{transform_indices = @transform_0, window_bounds = array<i64: 1, 8, 256>}, {transform_indices = @transform_1, window_bounds = array<i64: 1, 8, 256>}, {pipeline_mode = #tpu.pipeline_mode<synchronous>, transform_indices = @transform_2, window_bounds = array<i64: 1, 256>}, {pipeline_mode = #tpu.pipeline_mode<synchronous>, transform_indices = @transform_3, window_bounds = array<i64: 1, 256>}, {pipeline_mode = #tpu.pipeline_mode<synchronous>, transform_indices = @transform_4, window_bounds = array<i64: 1, 256>}, {pipeline_mode = #tpu.pipeline_mode<synchronous>, transform_indices = @transform_5, window_bounds = array<i64: 1, 256>}, {pipeline_mode = #tpu.pipeline_mode<synchronous>, transform_indices = @transform_6, window_bounds = array<i64: 2, 256, 384>}, {pipeline_mode = #tpu.pipeline_mode<synchronous>, transform_indices = @transform_7, window_bounds = array<i64: 2, 1, 384>}, {pipeline_mode = #tpu.pipeline_mode<synchronous>, transform_indices = @transform_8, window_bounds = array<i64: 2, 128, 256>}, {pipeline_mode = #tpu.pipeline_mode<synchronous>, transform_indices = @transform_9, window_bounds = array<i64: 1, 256>}, {pipeline_mode = #tpu.pipeline_mode<synchronous>, transform_indices = @transform_10, window_bounds = array<i64: 2, 256, 128>}, {pipeline_mode = #tpu.pipeline_mode<synchronous>, transform_indices = @transform_11, window_bounds = array<i64: 2, 1, 128>}, {pipeline_mode = #tpu.pipeline_mode<synchronous>, transform_indices = @transform_12, window_bounds = array<i64: 2, 256, 256>}, {pipeline_mode = #tpu.pipeline_mode<synchronous>, transform_indices = @transform_13, window_bounds = array<i64: 2, 1, 256>}, {pipeline_mode = #tpu.pipeline_mode<synchronous>, transform_indices = @transform_14, window_bounds = array<i64: 2, 128, 256>}, {pipeline_mode = #tpu.pipeline_mode<synchronous>, transform_indices = @transform_15, window_bounds = array<i64: 1, 256>}, {pipeline_mode = #tpu.pipeline_mode<synchronous>, transform_indices = @transform_16, window_bounds = array<i64: 256, 1024>}, {pipeline_mode = #tpu.pipeline_mode<synchronous>, transform_indices = @transform_17, window_bounds = array<i64: 1, 1024>}, {pipeline_mode = #tpu.pipeline_mode<synchronous>, transform_indices = @transform_18, window_bounds = array<i64: 1024, 256>}, {pipeline_mode = #tpu.pipeline_mode<synchronous>, transform_indices = @transform_19, window_bounds = array<i64: 1, 256>}, {pipeline_mode = #tpu.pipeline_mode<synchronous>, transform_indices = @transform_20, window_bounds = array<i64: 256, 128>}, {pipeline_mode = #tpu.pipeline_mode<synchronous>, transform_indices = @transform_21, window_bounds = array<i64: 1, 128>}, {pipeline_mode = #tpu.pipeline_mode<synchronous>, transform_indices = @transform_22, window_bounds = array<i64: 128, 256>}, {pipeline_mode = #tpu.pipeline_mode<synchronous>, transform_indices = @transform_23, window_bounds = array<i64: 1, 256>}, {pipeline_mode = #tpu.pipeline_mode<synchronous>, transform_indices = @transform_24, window_bounds = array<i64: 256, 128>}, {pipeline_mode = #tpu.pipeline_mode<synchronous>, transform_indices = @transform_25, window_bounds = array<i64: 1, 128>}, {pipeline_mode = #tpu.pipeline_mode<synchronous>, transform_indices = @transform_26, window_bounds = array<i64: 128, 256>}, {pipeline_mode = #tpu.pipeline_mode<synchronous>, transform_indices = @transform_27, window_bounds = array<i64: 1, 256>}, {transform_indices = @transform_28, window_bounds = array<i64: 1, 8, 256>}]} {
    %c0 = arith.constant 0 : index
    %c0_0 = arith.constant 0 : index
    %c0_1 = arith.constant 0 : index
    %0 = vector.load %arg1[%c0, %c0_0, %c0_1] : memref<1x8x256xf32, #tpu.memory_space<vmem>>, vector<1x8x256xf32>
    %1 = vector.shape_cast %0 : vector<1x8x256xf32> to vector<8x256xf32>
    %c0_2 = arith.constant 0 : index
    %c0_3 = arith.constant 0 : index
    %c0_4 = arith.constant 0 : index
    %2 = vector.load %arg2[%c0_2, %c0_3, %c0_4] : memref<1x8x256xf32, #tpu.memory_space<vmem>>, vector<1x8x256xf32>
    %3 = vector.shape_cast %2 : vector<1x8x256xf32> to vector<8x256xf32>
    %4 = tpu.iota {dimensions = array<i32: 0>} : vector<8x8xi32>
    %5 = tpu.iota {dimensions = array<i32: 1>} : vector<8x8xi32>
    %6 = arith.cmpi sle, %5, %4 : vector<8x8xi32>
    %c0_5 = arith.constant 0 : index
    %c0_6 = arith.constant 0 : index
    %7 = vector.load %arg3[%c0_5, %c0_6] : memref<1x256xf32, #tpu.memory_space<vmem>>, vector<1x256xf32>
    %c0_7 = arith.constant 0 : index
    %c0_8 = arith.constant 0 : index
    %8 = vector.load %arg4[%c0_7, %c0_8] : memref<1x256xf32, #tpu.memory_space<vmem>>, vector<1x256xf32>
    %cst = arith.constant dense<0.000000e+00> : vector<8xf32>
    %9 = vector.multi_reduction <add>, %1, %cst [1] : vector<8x256xf32> to vector<8xf32>
    %10 = vector.shape_cast %9 : vector<8xf32> to vector<8x1xf32>
    %cst_9 = arith.constant 2.560000e+02 : f32
    %11 = vector.broadcast %cst_9 : f32 to vector<8x1xf32>
    %12 = arith.divf %10, %11 : vector<8x1xf32>
    %13 = vector.broadcast %12 : vector<8x1xf32> to vector<8x256xf32>
    %14 = arith.subf %1, %13 : vector<8x256xf32>
    %15 = arith.mulf %14, %14 : vector<8x256xf32>
    %cst_10 = arith.constant dense<0.000000e+00> : vector<8xf32>
    %16 = vector.multi_reduction <add>, %15, %cst_10 [1] : vector<8x256xf32> to vector<8xf32>
    %17 = vector.shape_cast %16 : vector<8xf32> to vector<8x1xf32>
    %cst_11 = arith.constant 2.560000e+02 : f32
    %18 = vector.broadcast %cst_11 : f32 to vector<8x1xf32>
    %19 = arith.divf %17, %18 : vector<8x1xf32>
    %20 = vector.broadcast %12 : vector<8x1xf32> to vector<8x256xf32>
    %21 = arith.subf %1, %20 : vector<8x256xf32>
    %cst_12 = arith.constant 9.99999974E-6 : f32
    %22 = vector.broadcast %cst_12 : f32 to vector<8x1xf32>
    %23 = arith.addf %19, %22 : vector<8x1xf32>
    %24 = math.rsqrt %23 : vector<8x1xf32>
    %25 = vector.broadcast %24 : vector<8x1xf32> to vector<8x256xf32>
    %26 = arith.mulf %21, %25 : vector<8x256xf32>
    %27 = vector.broadcast %7 : vector<1x256xf32> to vector<8x256xf32>
    %28 = arith.mulf %26, %27 : vector<8x256xf32>
    %29 = vector.broadcast %8 : vector<1x256xf32> to vector<8x256xf32>
    %30 = arith.addf %28, %29 : vector<8x256xf32>
    %c0_13 = arith.constant 0 : index
    %c0_14 = arith.constant 0 : index
    %c0_15 = arith.constant 0 : index
    %31 = vector.load %arg7[%c0_13, %c0_14, %c0_15] : memref<2x256x384xbf16, #tpu.memory_space<vmem>>, vector<2x256x384xbf16>
    %c0_16 = arith.constant 0 : index
    %c0_17 = arith.constant 0 : index
    %c0_18 = arith.constant 0 : index
    %32 = vector.load %arg8[%c0_16, %c0_17, %c0_18] : memref<2x1x384xf32, #tpu.memory_space<vmem>>, vector<2x1x384xf32>
    %c0_19 = arith.constant 0 : index
    %c0_20 = arith.constant 0 : index
    %c0_21 = arith.constant 0 : index
    %33 = vector.load %arg9[%c0_19, %c0_20, %c0_21] : memref<2x128x256xbf16, #tpu.memory_space<vmem>>, vector<2x128x256xbf16>
    %c0_22 = arith.constant 0 : index
    %c0_23 = arith.constant 0 : index
    %34 = vector.load %arg10[%c0_22, %c0_23] : memref<1x256xf32, #tpu.memory_space<vmem>>, vector<1x256xf32>
    %35 = arith.truncf %30 : vector<8x256xf32> to vector<8x256xbf16>
    %36 = vector.shape_cast %35 : vector<8x256xbf16> to vector<1x8x256xbf16>
    %37 = vector.broadcast %36 : vector<1x8x256xbf16> to vector<2x8x256xbf16>
    "tpu.trace_start"() <{level = 10 : i32, message = "htc,hcd->htd"}> : () -> ()
    %cst_24 = arith.constant dense<0.000000e+00> : vector<2x8x384xf32>
    %38 = tpu.matmul %37, %31, %cst_24 {dimension_numbers = #tpu.dot_dimension_numbers<[2], [1], [1], [2], [0, 0, 0, 1, 1, 2], [0], [0]>} : vector<2x8x256xbf16>, vector<2x256x384xbf16>, vector<2x8x384xf32> -> vector<2x8x384xf32>
    "tpu.trace_stop"() : () -> ()
    %39 = vector.broadcast %32 : vector<2x1x384xf32> to vector<2x8x384xf32>
    %40 = arith.addf %38, %39 : vector<2x8x384xf32>
    %41 = vector.extract_strided_slice %40 {offsets = [0, 0, 0], sizes = [2, 8, 128], strides = [1, 1, 1]} : vector<2x8x384xf32> to vector<2x8x128xf32>
    %42 = vector.extract_strided_slice %40 {offsets = [0, 0, 128], sizes = [2, 8, 128], strides = [1, 1, 1]} : vector<2x8x384xf32> to vector<2x8x128xf32>
    %43 = vector.extract_strided_slice %40 {offsets = [0, 0, 256], sizes = [2, 8, 128], strides = [1, 1, 1]} : vector<2x8x384xf32> to vector<2x8x128xf32>
    %44 = arith.truncf %41 : vector<2x8x128xf32> to vector<2x8x128xbf16>
    %45 = arith.truncf %42 : vector<2x8x128xf32> to vector<2x8x128xbf16>
    "tpu.trace_start"() <{level = 10 : i32, message = "htd,hsd->hts"}> : () -> ()
    %cst_25 = arith.constant dense<0.000000e+00> : vector<2x8x8xf32>
    %46 = tpu.matmul %44, %45, %cst_25 {dimension_numbers = #tpu.dot_dimension_numbers<[2], [2], [1], [1], [0, 0, 0, 1, 1, 1], [0], [0]>} : vector<2x8x128xbf16>, vector<2x8x128xbf16>, vector<2x8x8xf32> -> vector<2x8x8xf32>
    "tpu.trace_stop"() : () -> ()
    %cst_26 = arith.constant 0.0883883461 : f32
    %47 = vector.broadcast %cst_26 : f32 to vector<2x8x8xf32>
    %48 = arith.mulf %46, %47 : vector<2x8x8xf32>
    %cst_27 = arith.constant -1.000000e+30 : f32
    %49 = vector.shape_cast %6 : vector<8x8xi1> to vector<1x8x8xi1>
    %50 = vector.broadcast %49 : vector<1x8x8xi1> to vector<2x8x8xi1>
    %51 = vector.broadcast %cst_27 : f32 to vector<2x8x8xf32>
    %52 = arith.select %50, %48, %51 : vector<2x8x8xi1>, vector<2x8x8xf32>
    %cst_28 = arith.constant dense<0xFF800000> : vector<2x8xf32>
    %53 = vector.multi_reduction <maximumf>, %52, %cst_28 [2] : vector<2x8x8xf32> to vector<2x8xf32>
    %54 = vector.shape_cast %53 : vector<2x8xf32> to vector<2x8x1xf32>
    %55 = vector.broadcast %54 : vector<2x8x1xf32> to vector<2x8x8xf32>
    %56 = arith.subf %52, %55 : vector<2x8x8xf32>
    %57 = math.exp %56 : vector<2x8x8xf32>
    %cst_29 = arith.constant dense<0.000000e+00> : vector<2x8xf32>
    %58 = vector.multi_reduction <add>, %57, %cst_29 [2] : vector<2x8x8xf32> to vector<2x8xf32>
    %59 = vector.shape_cast %58 : vector<2x8xf32> to vector<2x8x1xf32>
    %60 = tpu.reciprocal %59 {approx = true} : vector<2x8x1xf32> -> vector<2x8x1xf32>
    %61 = vector.broadcast %60 : vector<2x8x1xf32> to vector<2x8x8xf32>
    %62 = arith.mulf %57, %61 : vector<2x8x8xf32>
    %63 = arith.truncf %62 : vector<2x8x8xf32> to vector<2x8x8xbf16>
    %64 = arith.truncf %43 : vector<2x8x128xf32> to vector<2x8x128xbf16>
    "tpu.trace_start"() <{level = 10 : i32, message = "hts,hsd->htd"}> : () -> ()
    %cst_30 = arith.constant dense<0.000000e+00> : vector<2x8x128xf32>
    %65 = tpu.matmul %63, %64, %cst_30 {dimension_numbers = #tpu.dot_dimension_numbers<[2], [1], [1], [2], [0, 0, 0, 1, 1, 2], [0], [0]>} : vector<2x8x8xbf16>, vector<2x8x128xbf16>, vector<2x8x128xf32> -> vector<2x8x128xf32>
    "tpu.trace_stop"() : () -> ()
    %66 = arith.truncf %65 : vector<2x8x128xf32> to vector<2x8x128xbf16>
    "tpu.trace_start"() <{level = 10 : i32, message = "htd,hdc->htc"}> : () -> ()
    %cst_31 = arith.constant dense<0.000000e+00> : vector<2x8x256xf32>
    %67 = tpu.matmul %66, %33, %cst_31 {dimension_numbers = #tpu.dot_dimension_numbers<[2], [1], [1], [2], [0, 0, 0, 1, 1, 2], [0], [0]>} : vector<2x8x128xbf16>, vector<2x128x256xbf16>, vector<2x8x256xf32> -> vector<2x8x256xf32>
    "tpu.trace_stop"() : () -> ()
    %cst_32 = arith.constant dense<0.000000e+00> : vector<8x256xf32>
    %68 = vector.multi_reduction <add>, %67, %cst_32 [0] : vector<2x8x256xf32> to vector<8x256xf32>
    %69 = vector.broadcast %34 : vector<1x256xf32> to vector<8x256xf32>
    %70 = arith.addf %68, %69 : vector<8x256xf32>
    %71 = arith.addf %1, %70 : vector<8x256xf32>
    %c0_33 = arith.constant 0 : index
    %c0_34 = arith.constant 0 : index
    %72 = vector.load %arg21[%c0_33, %c0_34] : memref<256x128xbf16, #tpu.memory_space<vmem>>, vector<256x128xbf16>
    %c0_35 = arith.constant 0 : index
    %c0_36 = arith.constant 0 : index
    %73 = vector.load %arg22[%c0_35, %c0_36] : memref<1x128xf32, #tpu.memory_space<vmem>>, vector<1x128xf32>
    %c0_37 = arith.constant 0 : index
    %c0_38 = arith.constant 0 : index
    %74 = vector.load %arg23[%c0_37, %c0_38] : memref<128x256xbf16, #tpu.memory_space<vmem>>, vector<128x256xbf16>
    %c0_39 = arith.constant 0 : index
    %c0_40 = arith.constant 0 : index
    %75 = vector.load %arg24[%c0_39, %c0_40] : memref<1x256xf32, #tpu.memory_space<vmem>>, vector<1x256xf32>
    %76 = arith.truncf %71 : vector<8x256xf32> to vector<8x256xbf16>
    %cst_41 = arith.constant dense<0.000000e+00> : vector<8x128xf32>
    %77 = tpu.matmul %76, %72, %cst_41 {dimension_numbers = #tpu.dot_dimension_numbers<[1], [0], [0], [1], [0, 0, 1, 1], [], []>} : vector<8x256xbf16>, vector<256x128xbf16>, vector<8x128xf32> -> vector<8x128xf32>
    %78 = vector.broadcast %73 : vector<1x128xf32> to vector<8x128xf32>
    %79 = arith.addf %77, %78 : vector<8x128xf32>
    %cst_42 = arith.constant 5.000000e-01 : f32
    %80 = vector.broadcast %cst_42 : f32 to vector<8x128xf32>
    %81 = arith.mulf %80, %79 : vector<8x128xf32>
    %cst_43 = arith.constant 4.471500e-02 : f32
    %82 = vector.broadcast %cst_43 : f32 to vector<8x128xf32>
    %83 = arith.mulf %82, %79 : vector<8x128xf32>
    %84 = arith.mulf %83, %79 : vector<8x128xf32>
    %85 = arith.mulf %84, %79 : vector<8x128xf32>
    %86 = arith.addf %79, %85 : vector<8x128xf32>
    %cst_44 = arith.constant 0.797884583 : f32
    %87 = vector.broadcast %cst_44 : f32 to vector<8x128xf32>
    %88 = arith.mulf %87, %86 : vector<8x128xf32>
    %89 = math.tanh %88 : vector<8x128xf32>
    %cst_45 = arith.constant 1.000000e+00 : f32
    %90 = vector.broadcast %cst_45 : f32 to vector<8x128xf32>
    %91 = arith.addf %90, %89 : vector<8x128xf32>
    %92 = arith.mulf %81, %91 : vector<8x128xf32>
    %93 = arith.truncf %92 : vector<8x128xf32> to vector<8x128xbf16>
    %cst_46 = arith.constant dense<0.000000e+00> : vector<8x256xf32>
    %94 = tpu.matmul %93, %74, %cst_46 {dimension_numbers = #tpu.dot_dimension_numbers<[1], [0], [0], [1], [0, 0, 1, 1], [], []>} : vector<8x128xbf16>, vector<128x256xbf16>, vector<8x256xf32> -> vector<8x256xf32>
    %95 = vector.broadcast %75 : vector<1x256xf32> to vector<8x256xf32>
    %96 = arith.addf %94, %95 : vector<8x256xf32>
    %97 = arith.addf %71, %96 : vector<8x256xf32>
    %c0_47 = arith.constant 0 : index
    %c0_48 = arith.constant 0 : index
    %c0_49 = arith.constant 0 : index
    %98 = vector.load %arg11[%c0_47, %c0_48, %c0_49] : memref<2x256x128xbf16, #tpu.memory_space<vmem>>, vector<2x256x128xbf16>
    %c0_50 = arith.constant 0 : index
    %c0_51 = arith.constant 0 : index
    %c0_52 = arith.constant 0 : index
    %99 = vector.load %arg12[%c0_50, %c0_51, %c0_52] : memref<2x1x128xf32, #tpu.memory_space<vmem>>, vector<2x1x128xf32>
    %c0_53 = arith.constant 0 : index
    %c0_54 = arith.constant 0 : index
    %c0_55 = arith.constant 0 : index
    %100 = vector.load %arg13[%c0_53, %c0_54, %c0_55] : memref<2x256x256xbf16, #tpu.memory_space<vmem>>, vector<2x256x256xbf16>
    %c0_56 = arith.constant 0 : index
    %c0_57 = arith.constant 0 : index
    %c0_58 = arith.constant 0 : index
    %101 = vector.load %arg14[%c0_56, %c0_57, %c0_58] : memref<2x1x256xf32, #tpu.memory_space<vmem>>, vector<2x1x256xf32>
    %c0_59 = arith.constant 0 : index
    %c0_60 = arith.constant 0 : index
    %c0_61 = arith.constant 0 : index
    %102 = vector.load %arg15[%c0_59, %c0_60, %c0_61] : memref<2x128x256xbf16, #tpu.memory_space<vmem>>, vector<2x128x256xbf16>
    %c0_62 = arith.constant 0 : index
    %c0_63 = arith.constant 0 : index
    %103 = vector.load %arg16[%c0_62, %c0_63] : memref<1x256xf32, #tpu.memory_space<vmem>>, vector<1x256xf32>
    %104 = arith.truncf %97 : vector<8x256xf32> to vector<8x256xbf16>
    %105 = vector.shape_cast %104 : vector<8x256xbf16> to vector<1x8x256xbf16>
    %106 = vector.broadcast %105 : vector<1x8x256xbf16> to vector<2x8x256xbf16>
    %107 = arith.truncf %3 : vector<8x256xf32> to vector<8x256xbf16>
    %108 = vector.shape_cast %107 : vector<8x256xbf16> to vector<1x8x256xbf16>
    %109 = vector.broadcast %108 : vector<1x8x256xbf16> to vector<2x8x256xbf16>
    "tpu.trace_start"() <{level = 10 : i32, message = "htc,hcd->htd"}> : () -> ()
    %cst_64 = arith.constant dense<0.000000e+00> : vector<2x8x128xf32>
    %110 = tpu.matmul %106, %98, %cst_64 {dimension_numbers = #tpu.dot_dimension_numbers<[2], [1], [1], [2], [0, 0, 0, 1, 1, 2], [0], [0]>} : vector<2x8x256xbf16>, vector<2x256x128xbf16>, vector<2x8x128xf32> -> vector<2x8x128xf32>
    "tpu.trace_stop"() : () -> ()
    %111 = vector.broadcast %99 : vector<2x1x128xf32> to vector<2x8x128xf32>
    %112 = arith.addf %110, %111 : vector<2x8x128xf32>
    "tpu.trace_start"() <{level = 10 : i32, message = "hsc,hcd->hsd"}> : () -> ()
    %cst_65 = arith.constant dense<0.000000e+00> : vector<2x8x256xf32>
    %113 = tpu.matmul %109, %100, %cst_65 {dimension_numbers = #tpu.dot_dimension_numbers<[2], [1], [1], [2], [0, 0, 0, 1, 1, 2], [0], [0]>} : vector<2x8x256xbf16>, vector<2x256x256xbf16>, vector<2x8x256xf32> -> vector<2x8x256xf32>
    "tpu.trace_stop"() : () -> ()
    %114 = vector.broadcast %101 : vector<2x1x256xf32> to vector<2x8x256xf32>
    %115 = arith.addf %113, %114 : vector<2x8x256xf32>
    %116 = vector.extract_strided_slice %115 {offsets = [0, 0, 0], sizes = [2, 8, 128], strides = [1, 1, 1]} : vector<2x8x256xf32> to vector<2x8x128xf32>
    %117 = vector.extract_strided_slice %115 {offsets = [0, 0, 128], sizes = [2, 8, 128], strides = [1, 1, 1]} : vector<2x8x256xf32> to vector<2x8x128xf32>
    %118 = arith.truncf %112 : vector<2x8x128xf32> to vector<2x8x128xbf16>
    %119 = arith.truncf %116 : vector<2x8x128xf32> to vector<2x8x128xbf16>
    "tpu.trace_start"() <{level = 10 : i32, message = "htd,hsd->hts"}> : () -> ()
    %cst_66 = arith.constant dense<0.000000e+00> : vector<2x8x8xf32>
    %120 = tpu.matmul %118, %119, %cst_66 {dimension_numbers = #tpu.dot_dimension_numbers<[2], [2], [1], [1], [0, 0, 0, 1, 1, 1], [0], [0]>} : vector<2x8x128xbf16>, vector<2x8x128xbf16>, vector<2x8x8xf32> -> vector<2x8x8xf32>
    "tpu.trace_stop"() : () -> ()
    %cst_67 = arith.constant 0.0883883461 : f32
    %121 = vector.broadcast %cst_67 : f32 to vector<2x8x8xf32>
    %122 = arith.mulf %120, %121 : vector<2x8x8xf32>
    %cst_68 = arith.constant dense<0xFF800000> : vector<2x8xf32>
    %123 = vector.multi_reduction <maximumf>, %122, %cst_68 [2] : vector<2x8x8xf32> to vector<2x8xf32>
    %124 = vector.shape_cast %123 : vector<2x8xf32> to vector<2x8x1xf32>
    %125 = vector.broadcast %124 : vector<2x8x1xf32> to vector<2x8x8xf32>
    %126 = arith.subf %122, %125 : vector<2x8x8xf32>
    %127 = math.exp %126 : vector<2x8x8xf32>
    %cst_69 = arith.constant dense<0.000000e+00> : vector<2x8xf32>
    %128 = vector.multi_reduction <add>, %127, %cst_69 [2] : vector<2x8x8xf32> to vector<2x8xf32>
    %129 = vector.shape_cast %128 : vector<2x8xf32> to vector<2x8x1xf32>
    %130 = tpu.reciprocal %129 {approx = true} : vector<2x8x1xf32> -> vector<2x8x1xf32>
    %131 = vector.broadcast %130 : vector<2x8x1xf32> to vector<2x8x8xf32>
    %132 = arith.mulf %127, %131 : vector<2x8x8xf32>
    %133 = arith.truncf %132 : vector<2x8x8xf32> to vector<2x8x8xbf16>
    %134 = arith.truncf %117 : vector<2x8x128xf32> to vector<2x8x128xbf16>
    "tpu.trace_start"() <{level = 10 : i32, message = "hts,hsd->htd"}> : () -> ()
    %cst_70 = arith.constant dense<0.000000e+00> : vector<2x8x128xf32>
    %135 = tpu.matmul %133, %134, %cst_70 {dimension_numbers = #tpu.dot_dimension_numbers<[2], [1], [1], [2], [0, 0, 0, 1, 1, 2], [0], [0]>} : vector<2x8x8xbf16>, vector<2x8x128xbf16>, vector<2x8x128xf32> -> vector<2x8x128xf32>
    "tpu.trace_stop"() : () -> ()
    %136 = arith.truncf %135 : vector<2x8x128xf32> to vector<2x8x128xbf16>
    "tpu.trace_start"() <{level = 10 : i32, message = "htd,hdc->htc"}> : () -> ()
    %cst_71 = arith.constant dense<0.000000e+00> : vector<2x8x256xf32>
    %137 = tpu.matmul %136, %102, %cst_71 {dimension_numbers = #tpu.dot_dimension_numbers<[2], [1], [1], [2], [0, 0, 0, 1, 1, 2], [0], [0]>} : vector<2x8x128xbf16>, vector<2x128x256xbf16>, vector<2x8x256xf32> -> vector<2x8x256xf32>
    "tpu.trace_stop"() : () -> ()
    %cst_72 = arith.constant dense<0.000000e+00> : vector<8x256xf32>
    %138 = vector.multi_reduction <add>, %137, %cst_72 [0] : vector<2x8x256xf32> to vector<8x256xf32>
    %139 = vector.broadcast %103 : vector<1x256xf32> to vector<8x256xf32>
    %140 = arith.addf %138, %139 : vector<8x256xf32>
    %141 = arith.addf %97, %140 : vector<8x256xf32>
    %c0_73 = arith.constant 0 : index
    %c0_74 = arith.constant 0 : index
    %142 = vector.load %arg5[%c0_73, %c0_74] : memref<1x256xf32, #tpu.memory_space<vmem>>, vector<1x256xf32>
    %c0_75 = arith.constant 0 : index
    %c0_76 = arith.constant 0 : index
    %143 = vector.load %arg6[%c0_75, %c0_76] : memref<1x256xf32, #tpu.memory_space<vmem>>, vector<1x256xf32>
    %cst_77 = arith.constant dense<0.000000e+00> : vector<8xf32>
    %144 = vector.multi_reduction <add>, %141, %cst_77 [1] : vector<8x256xf32> to vector<8xf32>
    %145 = vector.shape_cast %144 : vector<8xf32> to vector<8x1xf32>
    %cst_78 = arith.constant 2.560000e+02 : f32
    %146 = vector.broadcast %cst_78 : f32 to vector<8x1xf32>
    %147 = arith.divf %145, %146 : vector<8x1xf32>
    %148 = vector.broadcast %147 : vector<8x1xf32> to vector<8x256xf32>
    %149 = arith.subf %141, %148 : vector<8x256xf32>
    %150 = arith.mulf %149, %149 : vector<8x256xf32>
    %cst_79 = arith.constant dense<0.000000e+00> : vector<8xf32>
    %151 = vector.multi_reduction <add>, %150, %cst_79 [1] : vector<8x256xf32> to vector<8xf32>
    %152 = vector.shape_cast %151 : vector<8xf32> to vector<8x1xf32>
    %cst_80 = arith.constant 2.560000e+02 : f32
    %153 = vector.broadcast %cst_80 : f32 to vector<8x1xf32>
    %154 = arith.divf %152, %153 : vector<8x1xf32>
    %155 = vector.broadcast %147 : vector<8x1xf32> to vector<8x256xf32>
    %156 = arith.subf %141, %155 : vector<8x256xf32>
    %cst_81 = arith.constant 9.99999974E-6 : f32
    %157 = vector.broadcast %cst_81 : f32 to vector<8x1xf32>
    %158 = arith.addf %154, %157 : vector<8x1xf32>
    %159 = math.rsqrt %158 : vector<8x1xf32>
    %160 = vector.broadcast %159 : vector<8x1xf32> to vector<8x256xf32>
    %161 = arith.mulf %156, %160 : vector<8x256xf32>
    %162 = vector.broadcast %142 : vector<1x256xf32> to vector<8x256xf32>
    %163 = arith.mulf %161, %162 : vector<8x256xf32>
    %164 = vector.broadcast %143 : vector<1x256xf32> to vector<8x256xf32>
    %165 = arith.addf %163, %164 : vector<8x256xf32>
    %c0_82 = arith.constant 0 : index
    %c0_83 = arith.constant 0 : index
    %166 = vector.load %arg17[%c0_82, %c0_83] : memref<256x1024xbf16, #tpu.memory_space<vmem>>, vector<256x1024xbf16>
    %c0_84 = arith.constant 0 : index
    %c0_85 = arith.constant 0 : index
    %167 = vector.load %arg18[%c0_84, %c0_85] : memref<1x1024xf32, #tpu.memory_space<vmem>>, vector<1x1024xf32>
    %c0_86 = arith.constant 0 : index
    %c0_87 = arith.constant 0 : index
    %168 = vector.load %arg19[%c0_86, %c0_87] : memref<1024x256xbf16, #tpu.memory_space<vmem>>, vector<1024x256xbf16>
    %c0_88 = arith.constant 0 : index
    %c0_89 = arith.constant 0 : index
    %169 = vector.load %arg20[%c0_88, %c0_89] : memref<1x256xf32, #tpu.memory_space<vmem>>, vector<1x256xf32>
    %170 = arith.truncf %165 : vector<8x256xf32> to vector<8x256xbf16>
    %cst_90 = arith.constant dense<0.000000e+00> : vector<8x1024xf32>
    %171 = tpu.matmul %170, %166, %cst_90 {dimension_numbers = #tpu.dot_dimension_numbers<[1], [0], [0], [1], [0, 0, 1, 1], [], []>} : vector<8x256xbf16>, vector<256x1024xbf16>, vector<8x1024xf32> -> vector<8x1024xf32>
    %172 = vector.broadcast %167 : vector<1x1024xf32> to vector<8x1024xf32>
    %173 = arith.addf %171, %172 : vector<8x1024xf32>
    %cst_91 = arith.constant 5.000000e-01 : f32
    %174 = vector.broadcast %cst_91 : f32 to vector<8x1024xf32>
    %175 = arith.mulf %174, %173 : vector<8x1024xf32>
    %cst_92 = arith.constant 4.471500e-02 : f32
    %176 = vector.broadcast %cst_92 : f32 to vector<8x1024xf32>
    %177 = arith.mulf %176, %173 : vector<8x1024xf32>
    %178 = arith.mulf %177, %173 : vector<8x1024xf32>
    %179 = arith.mulf %178, %173 : vector<8x1024xf32>
    %180 = arith.addf %173, %179 : vector<8x1024xf32>
    %cst_93 = arith.constant 0.797884583 : f32
    %181 = vector.broadcast %cst_93 : f32 to vector<8x1024xf32>
    %182 = arith.mulf %181, %180 : vector<8x1024xf32>
    %183 = math.tanh %182 : vector<8x1024xf32>
    %cst_94 = arith.constant 1.000000e+00 : f32
    %184 = vector.broadcast %cst_94 : f32 to vector<8x1024xf32>
    %185 = arith.addf %184, %183 : vector<8x1024xf32>
    %186 = arith.mulf %175, %185 : vector<8x1024xf32>
    %187 = arith.truncf %186 : vector<8x1024xf32> to vector<8x1024xbf16>
    %cst_95 = arith.constant dense<0.000000e+00> : vector<8x256xf32>
    %188 = tpu.matmul %187, %168, %cst_95 {dimension_numbers = #tpu.dot_dimension_numbers<[1], [0], [0], [1], [0, 0, 1, 1], [], []>} : vector<8x1024xbf16>, vector<1024x256xbf16>, vector<8x256xf32> -> vector<8x256xf32>
    %189 = vector.broadcast %169 : vector<1x256xf32> to vector<8x256xf32>
    %190 = arith.addf %188, %189 : vector<8x256xf32>
    %191 = arith.addf %141, %190 : vector<8x256xf32>
    %c0_96 = arith.constant 0 : index
    %c0_97 = arith.constant 0 : index
    %192 = vector.load %arg25[%c0_96, %c0_97] : memref<256x128xbf16, #tpu.memory_space<vmem>>, vector<256x128xbf16>
    %c0_98 = arith.constant 0 : index
    %c0_99 = arith.constant 0 : index
    %193 = vector.load %arg26[%c0_98, %c0_99] : memref<1x128xf32, #tpu.memory_space<vmem>>, vector<1x128xf32>
    %c0_100 = arith.constant 0 : index
    %c0_101 = arith.constant 0 : index
    %194 = vector.load %arg27[%c0_100, %c0_101] : memref<128x256xbf16, #tpu.memory_space<vmem>>, vector<128x256xbf16>
    %c0_102 = arith.constant 0 : index
    %c0_103 = arith.constant 0 : index
    %195 = vector.load %arg28[%c0_102, %c0_103] : memref<1x256xf32, #tpu.memory_space<vmem>>, vector<1x256xf32>
    %196 = arith.truncf %191 : vector<8x256xf32> to vector<8x256xbf16>
    %cst_104 = arith.constant dense<0.000000e+00> : vector<8x128xf32>
    %197 = tpu.matmul %196, %192, %cst_104 {dimension_numbers = #tpu.dot_dimension_numbers<[1], [0], [0], [1], [0, 0, 1, 1], [], []>} : vector<8x256xbf16>, vector<256x128xbf16>, vector<8x128xf32> -> vector<8x128xf32>
    %198 = vector.broadcast %193 : vector<1x128xf32> to vector<8x128xf32>
    %199 = arith.addf %197, %198 : vector<8x128xf32>
    %cst_105 = arith.constant 5.000000e-01 : f32
    %200 = vector.broadcast %cst_105 : f32 to vector<8x128xf32>
    %201 = arith.mulf %200, %199 : vector<8x128xf32>
    %cst_106 = arith.constant 4.471500e-02 : f32
    %202 = vector.broadcast %cst_106 : f32 to vector<8x128xf32>
    %203 = arith.mulf %202, %199 : vector<8x128xf32>
    %204 = arith.mulf %203, %199 : vector<8x128xf32>
    %205 = arith.mulf %204, %199 : vector<8x128xf32>
    %206 = arith.addf %199, %205 : vector<8x128xf32>
    %cst_107 = arith.constant 0.797884583 : f32
    %207 = vector.broadcast %cst_107 : f32 to vector<8x128xf32>
    %208 = arith.mulf %207, %206 : vector<8x128xf32>
    %209 = math.tanh %208 : vector<8x128xf32>
    %cst_108 = arith.constant 1.000000e+00 : f32
    %210 = vector.broadcast %cst_108 : f32 to vector<8x128xf32>
    %211 = arith.addf %210, %209 : vector<8x128xf32>
    %212 = arith.mulf %201, %211 : vector<8x128xf32>
    %213 = arith.truncf %212 : vector<8x128xf32> to vector<8x128xbf16>
    %cst_109 = arith.constant dense<0.000000e+00> : vector<8x256xf32>
    %214 = tpu.matmul %213, %194, %cst_109 {dimension_numbers = #tpu.dot_dimension_numbers<[1], [0], [0], [1], [0, 0, 1, 1], [], []>} : vector<8x128xbf16>, vector<128x256xbf16>, vector<8x256xf32> -> vector<8x256xf32>
    %215 = vector.broadcast %195 : vector<1x256xf32> to vector<8x256xf32>
    %216 = arith.addf %214, %215 : vector<8x256xf32>
    %217 = arith.addf %191, %216 : vector<8x256xf32>
    %c0_110 = arith.constant 0 : index
    %c0_111 = arith.constant 0 : index
    %c0_112 = arith.constant 0 : index
    %218 = vector.load %arg29[%c0_110, %c0_111, %c0_112] : memref<1x8x256xf32, #tpu.memory_space<vmem>>, vector<1x8x256xf32>
    %219 = vector.shape_cast %218 : vector<1x8x256xf32> to vector<8x256xf32>
    %220 = vector.shape_cast %217 : vector<8x256xf32> to vector<1x8x256xf32>
    tpu.vector_store %arg29[%c0_110, %c0_111, %c0_112], %220 {strides = array<i32>} : memref<1x8x256xf32, #tpu.memory_space<vmem>>, vector<1x8x256xf32>,
    return
  }
  func.func @transform_0(%arg0: i32) -> (i32, i32, i32) {
    %c0_i32 = arith.constant 0 : i32
    %c0_i32_0 = arith.constant 0 : i32
    %c0_i32_1 = arith.constant 0 : i32
    return %arg0, %c0_i32, %c0_i32_0 : i32, i32, i32
  }
  func.func @transform_1(%arg0: i32) -> (i32, i32, i32) {
    %c0_i32 = arith.constant 0 : i32
    %c0_i32_0 = arith.constant 0 : i32
    %c0_i32_1 = arith.constant 0 : i32
    return %arg0, %c0_i32, %c0_i32_0 : i32, i32, i32
  }
  func.func @transform_2(%arg0: i32) -> (i32, i32) {
    %c0_i32 = arith.constant 0 : i32
    %c0_i32_0 = arith.constant 0 : i32
    %c0_i32_1 = arith.constant 0 : i32
    return %c0_i32, %c0_i32_0 : i32, i32
  }
  func.func @transform_3(%arg0: i32) -> (i32, i32) {
    %c0_i32 = arith.constant 0 : i32
    %c0_i32_0 = arith.constant 0 : i32
    %c0_i32_1 = arith.constant 0 : i32
    return %c0_i32, %c0_i32_0 : i32, i32
  }
  func.func @transform_4(%arg0: i32) -> (i32, i32) {
    %c0_i32 = arith.constant 0 : i32
    %c0_i32_0 = arith.constant 0 : i32
    %c0_i32_1 = arith.constant 0 : i32
    return %c0_i32, %c0_i32_0 : i32, i32
  }
  func.func @transform_5(%arg0: i32) -> (i32, i32) {
    %c0_i32 = arith.constant 0 : i32
    %c0_i32_0 = arith.constant 0 : i32
    %c0_i32_1 = arith.constant 0 : i32
    return %c0_i32, %c0_i32_0 : i32, i32
  }
  func.func @transform_6(%arg0: i32) -> (i32, i32, i32) {
    %c0_i32 = arith.constant 0 : i32
    %c0_i32_0 = arith.constant 0 : i32
    %c0_i32_1 = arith.constant 0 : i32
    %c0_i32_2 = arith.constant 0 : i32
    return %c0_i32, %c0_i32_0, %c0_i32_1 : i32, i32, i32
  }
  func.func @transform_7(%arg0: i32) -> (i32, i32, i32) {
    %c0_i32 = arith.constant 0 : i32
    %c0_i32_0 = arith.constant 0 : i32
    %c0_i32_1 = arith.constant 0 : i32
    %c0_i32_2 = arith.constant 0 : i32
    return %c0_i32, %c0_i32_0, %c0_i32_1 : i32, i32, i32
  }
  func.func @transform_8(%arg0: i32) -> (i32, i32, i32) {
    %c0_i32 = arith.constant 0 : i32
    %c0_i32_0 = arith.constant 0 : i32
    %c0_i32_1 = arith.constant 0 : i32
    %c0_i32_2 = arith.constant 0 : i32
    return %c0_i32, %c0_i32_0, %c0_i32_1 : i32, i32, i32
  }
  func.func @transform_9(%arg0: i32) -> (i32, i32) {
    %c0_i32 = arith.constant 0 : i32
    %c0_i32_0 = arith.constant 0 : i32
    %c0_i32_1 = arith.constant 0 : i32
    return %c0_i32, %c0_i32_0 : i32, i32
  }
  func.func @transform_10(%arg0: i32) -> (i32, i32, i32) {
    %c0_i32 = arith.constant 0 : i32
    %c0_i32_0 = arith.constant 0 : i32
    %c0_i32_1 = arith.constant 0 : i32
    %c0_i32_2 = arith.constant 0 : i32
    return %c0_i32, %c0_i32_0, %c0_i32_1 : i32, i32, i32
  }
  func.func @transform_11(%arg0: i32) -> (i32, i32, i32) {
    %c0_i32 = arith.constant 0 : i32
    %c0_i32_0 = arith.constant 0 : i32
    %c0_i32_1 = arith.constant 0 : i32
    %c0_i32_2 = arith.constant 0 : i32
    return %c0_i32, %c0_i32_0, %c0_i32_1 : i32, i32, i32
  }
  func.func @transform_12(%arg0: i32) -> (i32, i32, i32) {
    %c0_i32 = arith.constant 0 : i32
    %c0_i32_0 = arith.constant 0 : i32
    %c0_i32_1 = arith.constant 0 : i32
    %c0_i32_2 = arith.constant 0 : i32
    return %c0_i32, %c0_i32_0, %c0_i32_1 : i32, i32, i32
  }
  func.func @transform_13(%arg0: i32) -> (i32, i32, i32) {
    %c0_i32 = arith.constant 0 : i32
    %c0_i32_0 = arith.constant 0 : i32
    %c0_i32_1 = arith.constant 0 : i32
    %c0_i32_2 = arith.constant 0 : i32
    return %c0_i32, %c0_i32_0, %c0_i32_1 : i32, i32, i32
  }
  func.func @transform_14(%arg0: i32) -> (i32, i32, i32) {
    %c0_i32 = arith.constant 0 : i32
    %c0_i32_0 = arith.constant 0 : i32
    %c0_i32_1 = arith.constant 0 : i32
    %c0_i32_2 = arith.constant 0 : i32
    return %c0_i32, %c0_i32_0, %c0_i32_1 : i32, i32, i32
  }
  func.func @transform_15(%arg0: i32) -> (i32, i32) {
    %c0_i32 = arith.constant 0 : i32
    %c0_i32_0 = arith.constant 0 : i32
    %c0_i32_1 = arith.constant 0 : i32
    return %c0_i32, %c0_i32_0 : i32, i32
  }
  func.func @transform_16(%arg0: i32) -> (i32, i32) {
    %c0_i32 = arith.constant 0 : i32
    %c0_i32_0 = arith.constant 0 : i32
    %c0_i32_1 = arith.constant 0 : i32
    return %c0_i32, %c0_i32_0 : i32, i32
  }
  func.func @transform_17(%arg0: i32) -> (i32, i32) {
    %c0_i32 = arith.constant 0 : i32
    %c0_i32_0 = arith.constant 0 : i32
    %c0_i32_1 = arith.constant 0 : i32
    return %c0_i32, %c0_i32_0 : i32, i32
  }
  func.func @transform_18(%arg0: i32) -> (i32, i32) {
    %c0_i32 = arith.constant 0 : i32
    %c0_i32_0 = arith.constant 0 : i32
    %c0_i32_1 = arith.constant 0 : i32
    return %c0_i32, %c0_i32_0 : i32, i32
  }
  func.func @transform_19(%arg0: i32) -> (i32, i32) {
    %c0_i32 = arith.constant 0 : i32
    %c0_i32_0 = arith.constant 0 : i32
    %c0_i32_1 = arith.constant 0 : i32
    return %c0_i32, %c0_i32_0 : i32, i32
  }
  func.func @transform_20(%arg0: i32) -> (i32, i32) {
    %c0_i32 = arith.constant 0 : i32
    %c0_i32_0 = arith.constant 0 : i32
    %c0_i32_1 = arith.constant 0 : i32
    return %c0_i32, %c0_i32_0 : i32, i32
  }
  func.func @transform_21(%arg0: i32) -> (i32, i32) {
    %c0_i32 = arith.constant 0 : i32
    %c0_i32_0 = arith.constant 0 : i32
    %c0_i32_1 = arith.constant 0 : i32
    return %c0_i32, %c0_i32_0 : i32, i32
  }
  func.func @transform_22(%arg0: i32) -> (i32, i32) {
    %c0_i32 = arith.constant 0 : i32
    %c0_i32_0 = arith.constant 0 : i32
    %c0_i32_1 = arith.constant 0 : i32
    return %c0_i32, %c0_i32_0 : i32, i32
  }
  func.func @transform_23(%arg0: i32) -> (i32, i32) {
    %c0_i32 = arith.constant 0 : i32
    %c0_i32_0 = arith.constant 0 : i32
    %c0_i32_1 = arith.constant 0 : i32
    return %c0_i32, %c0_i32_0 : i32, i32
  }
  func.func @transform_24(%arg0: i32) -> (i32, i32) {
    %c0_i32 = arith.constant 0 : i32
    %c0_i32_0 = arith.constant 0 : i32
    %c0_i32_1 = arith.constant 0 : i32
    return %c0_i32, %c0_i32_0 : i32, i32
  }
  func.func @transform_25(%arg0: i32) -> (i32, i32) {
    %c0_i32 = arith.constant 0 : i32
    %c0_i32_0 = arith.constant 0 : i32
    %c0_i32_1 = arith.constant 0 : i32
    return %c0_i32, %c0_i32_0 : i32, i32
  }
  func.func @transform_26(%arg0: i32) -> (i32, i32) {
    %c0_i32 = arith.constant 0 : i32
    %c0_i32_0 = arith.constant 0 : i32
    %c0_i32_1 = arith.constant 0 : i32
    return %c0_i32, %c0_i32_0 : i32, i32
  }
  func.func @transform_27(%arg0: i32) -> (i32, i32) {
    %c0_i32 = arith.constant 0 : i32
    %c0_i32_0 = arith.constant 0 : i32
    %c0_i32_1 = arith.constant 0 : i32
    return %c0_i32, %c0_i32_0 : i32, i32
  }
  func.func @transform_28(%arg0: i32) -> (i32, i32, i32) {
    %c0_i32 = arith.constant 0 : i32
    %c0_i32_0 = arith.constant 0 : i32
    %c0_i32_1 = arith.constant 0 : i32
    return %arg0, %c0_i32, %c0_i32_0 : i32, i32, i32
  }
}

</mosaic_0001>

<bundles_post_ra>
// kernel: tpu_custom_call.1
= control target key start
LH: loop header
LB: loop body
LE: loop exit
PB: predicated region body
PF: predicated region fallthrough
CT: control target
= control target key end

     0   :  { %s11037_s0 = inlined_call_operand.hbm [shape: f32[2,8,256], index: 0, kind: input, shape index: {}]   ;;  %s11038_s1 = inlined_call_operand.hbm [shape: f32[2,8,256], index: 1, kind: input, shape index: {}]   ;;  %s11039_s2 = inlined_call_operand.hbm [shape: f32[1,256], index: 2, kind: input, shape index: {}]   ;;  %s11040_s3 = inlined_call_operand.hbm [shape: f32[1,256], index: 3, kind: input, shape index: {}]   ;;  %s11041_s4 = inlined_call_operand.hbm [shape: f32[1,256], index: 4, kind: input, shape index: {}]   ;;  %s11042_s5 = inlined_call_operand.hbm [shape: f32[1,256], index: 5, kind: input, shape index: {}]   ;;  %s11043_s6 = inlined_call_operand.hbm [shape: bf16[2,256,384], index: 6, kind: input, shape index: {}]   ;;  %s11044_s7 = inlined_call_operand.hbm [shape: f32[2,1,384], index: 7, kind: input, shape index: {}]   ;;  %s11045_s8 = inlined_call_operand.hbm [shape: bf16[2,128,256], index: 8, kind: input, shape index: {}]   ;;  %s11046_s9 = inlined_call_operand.hbm [shape: f32[1,256], index: 9, kind: input, shape index: {}]   ;;  %s11047_s10 = inlined_call_operand.hbm [shape: bf16[2,256,128], index: 10, kind: input, shape index: {}]   ;;  %s11048_s11 = inlined_call_operand.hbm [shape: f32[2,1,128], index: 11, kind: input, shape index: {}]   ;;  %s11049_s12 = inlined_call_operand.hbm [shape: bf16[2,256,256], index: 12, kind: input, shape index: {}]   ;;  %s11050_s13 = inlined_call_operand.hbm [shape: f32[2,1,256], index: 13, kind: input, shape index: {}]   ;;  %s11051_s14 = inlined_call_operand.hbm [shape: bf16[2,128,256], index: 14, kind: input, shape index: {}]   ;;  %s11052_s15 = inlined_call_operand.hbm [shape: f32[1,256], index: 15, kind: input, shape index: {}]   ;;  %s11053_s16 = inlined_call_operand.hbm [shape: bf16[256,1024], index: 16, kind: input, shape index: {}]   ;;  %s11054_s17 = inlined_call_operand.hbm [shape: f32[1,1024], index: 17, kind: input, shape index: {}]   ;;  %s11055_s18 = inlined_call_operand.hbm [shape: bf16[1024,256], index: 18, kind: input, shape index: {}]   ;;  %s11056_s19 = inlined_call_operand.hbm [shape: f32[1,256], index: 19, kind: input, shape index: {}]   ;;  %s11057_s20 = inlined_call_operand.hbm [shape: bf16[256,128], index: 20, kind: input, shape index: {}]   ;;  %s11058_s21 = inlined_call_operand.hbm [shape: f32[1,128], index: 21, kind: input, shape index: {}]   ;;  %s11059_s22 = inlined_call_operand.hbm [shape: bf16[128,256], index: 22, kind: input, shape index: {}]   ;;  %s11060_s23 = inlined_call_operand.hbm [shape: f32[1,256], index: 23, kind: input, shape index: {}]   ;;  %s11061_s24 = inlined_call_operand.hbm [shape: bf16[256,128], index: 24, kind: input, shape index: {}]   ;;  %s11062_s25 = inlined_call_operand.hbm [shape: f32[1,128], index: 25, kind: input, shape index: {}]   ;;  %s11063_s26 = inlined_call_operand.hbm [shape: bf16[128,256], index: 26, kind: input, shape index: {}]   ;;  %s11064_s27 = inlined_call_operand.hbm [shape: f32[1,256], index: 27, kind: input, shape index: {}]   ;;  %s11065_s28 = inlined_call_operand.hbm [shape: f32[2,8,256], index: 28, kind: output, shape index: {}]  }
   0x1   :  { %11113 = sst [smem:[#allocation70_spill]] %s11037_s0 }
   0x2   :  { %11114 = sst [smem:[#allocation71_spill]] %s11038_s1 }
   0x3   :  { %11115 = sst [smem:[#allocation72_spill]] %s11039_s2 }
   0x4   :  { %11116 = sst [smem:[#allocation73_spill]] %s11040_s3 }
   0x5   :  { %11117 = sst [smem:[#allocation74_spill]] %s11041_s4 }
   0x6   :  { %11118 = sst [smem:[#allocation75_spill]] %s11042_s5 }
   0x7   :  { %11119 = sst [smem:[#allocation76_spill]] %s11043_s6 }
   0x8   :  { %11120 = sst [smem:[#allocation77_spill]] %s11044_s7 }
   0x9   :  { %11121 = sst [smem:[#allocation78_spill]] %s11045_s8 }
   0xa   :  { %11122 = sst [smem:[#allocation79_spill]] %s11046_s9 }
   0xb   :  { %11123 = sst [smem:[#allocation80_spill]] %s11047_s10 }
   0xc   :  { %11124 = sst [smem:[#allocation81_spill]] %s11048_s11 }
   0xd   :  { %11125 = sst [smem:[#allocation82_spill]] %s11049_s12 }
   0xe   :  { %11126 = sst [smem:[#allocation83_spill]] %s11050_s13 }
   0xf   :  { %11127 = sst [smem:[#allocation84_spill]] %s11051_s14 }
  0x10   :  { %11128 = sst [smem:[#allocation85_spill]] %s11052_s15 }
  0x11   :  { %11129 = sst [smem:[#allocation86_spill]] %s11053_s16 }
  0x12   :  { %11130 = sst [smem:[#allocation87_spill]] %s11054_s17 }
  0x13   :  { %11131 = sst [smem:[#allocation88_spill]] %s11055_s18 }
  0x14   :  { %11132 = sst [smem:[#allocation89_spill]] %s11056_s19 }
  0x15   :  { %11133 = sst [smem:[#allocation90_spill]] %s11057_s20 }
  0x16   :  { %11134 = sst [smem:[#allocation91_spill]] %s11058_s21 }
  0x17   :  { %11135 = sst [smem:[#allocation92_spill]] %s11063_s26 }
  0x18   :  { %11136 = sst [smem:[#allocation93_spill]] %s11064_s27 }
  0x19   :  { %11137 = sst [smem:[#allocation94_spill]] %s11065_s28 }
  0x1a   :  { %33 = vsyncpa [#allocation3], 0 }
  0x1b   :  { %35 = vsyncpa [#allocation3 + $0x1], 0 }
  0x1c   :  { %36 = vsyncpa [#allocation6], 0 }
  0x1d   :  { %38 = vsyncpa [#allocation6 + $0x1], 0 }
  0x1e   :  { %39 = vsyncpa [#allocation9], 0 }
  0x1f   :  { %40 = vsyncpa [#allocation12], 0 }
  0x20   :  { %41 = vsyncpa [#allocation15], 0 }
  0x21   :  { %42 = vsyncpa [#allocation18], 0 }
  0x22   :  { %43 = vsyncpa [#allocation21], 0 }
  0x23   :  { %44 = vsyncpa [#allocation24], 0 }
  0x24   :  { %45 = vsyncpa [#allocation27], 0 }
  0x25   :  { %46 = vsyncpa [#allocation30], 0 }
  0x26   :  { %47 = vsyncpa [#allocation33], 0 }
  0x27   :  { %48 = vsyncpa [#allocation36], 0 }
  0x28   :  { %49 = vsyncpa [#allocation39], 0 }
  0x29   :  { %50 = vsyncpa [#allocation42], 0 }
  0x2a   :  { %51 = vsyncpa [#allocation45], 0 }
  0x2b   :  { %52 = vsyncpa [#allocation4], 0 }
  0x2c   :  { %54 = vsyncpa [#allocation4 + $0x1], 0  ;;  %s10024_s8 = smov 0   ;;  %s10026_s5 = smov 0  }
  0x2d   :  { %s10028_s9 = smov 0   ;;  %s10030_s30 = smov 0  }
  0x2e LB: > { %11138 = sst [smem:[#allocation64_spill]] %s9820_s8  ;;  %s9834_s3 = smov [#allocation7]   ;;  %s9832_s30 = sphi %s10030_s30, %s10600_s30   ;;  %s9828_s9 = sphi %s10028_s9, %s11230_s9   ;;  %s9824_s5 = sphi %s10026_s5, %s11229_s5   ;;  %s9820_s8 = sphi %s10024_s8, %s11228_s8  }
  0x2f   : > { %11139 = sst [smem:[#allocation65_spill]] %s9824_s5  ;;  %s702_s6 = sshll.u32 %s9834_s3, 4  ;;  %s10050_s6 = int_to_ptr.vmem [resolvable:$true] %s702_s6 }
  0x30   : > { %11140 = sst [smem:[#allocation66_spill]] %s9828_s9  ;;  %s10045_s10 = sadd.s32 4294967295, %s9832_s30  }
  0x31   : > { %11141 = sst [smem:[#allocation67_spill]] %s9832_s30  ;;  %p7072_p0 = scmp.ge.s32.totalorder %s9832_s30, 1 }
  0x32   : > { %11142 = sst [smem:[#allocation68_spill]] %s10045_s10  ;;  %p11090_p1 = scmp.eq.s32.totalorder %s10045_s10, 0 }
  0x33   : > { %p689_p2 = scmp.lt.s32.totalorder %s9832_s30, 3  ;;  %s9835_s11 = smov [#allocation8]  }
  0x34   : > { %s713_s29 = sshll.u32 %s9835_s11, 4  ;;  %s9836_s2 = smov [#allocation11]   ;;  %s10059_s29 = int_to_ptr.vmem [resolvable:$true] %s713_s29 }
  0x35   : > { %p10052_p3 = pnand %p7072_p0, %p689_p2  ;;  %s735_s7 = sshll.u32 %s9836_s2, 4  ;;  %s10067_s7 = int_to_ptr.vmem [resolvable:$true] %s735_s7 }
  0x36   : > { %s9837_s1 = smov [#allocation14]  }
  0x37   : > { %s11143_s0 = scalar_select %p10052_p3, 1, 0 }
  0x38   : > { %p8034_p5 = pneg %p10052_p3  ;;  %s10069_s4 = sshll.u32 %s9837_s1, 4  ;;  %s759_s4 = int_to_ptr.vmem [resolvable:$true] %s10069_s4 }
  0x39   : > { %11144 = sst [smem:[#allocation69_spill]] %s11143_s0  ;;  %s11146_s0 = sld [smem:[#allocation72_spill]] }
  0x3a   : > { %p10063_p6 = pnand %p8034_p5, %p11090_p1 }
  0x3c   : > { %p10079_p8 = pneg %p10063_p6 }
  0x3f   : > { %s8918_s8 = scalar_lea.hbm %s11146_s0, 32 }
  0x40   : > { %p8919_p7 = scmp.ne.s32.totalorder %s11146_s0, %s8918_s8  ;;  %p8925_p11 = scmp.lt.u32.totalorder %s8918_s8, %s11146_s0 }
  0x42   : > { %p8921_p9 = pnand %p10079_p8, %p8919_p7 }
  0x44   : > { %p8922_p10 = pneg %p8921_p9 }
  0x46   : > { %p8927_p12 = pnand %p8925_p11, %p8922_p10 }
  0x48   : > { %8930 = shalt.err (!%p8927_p12)
}
  0x49   : > { %s8931_s28 = scalar_lea.vmem %s10050_s6, 32  ;;  %p8939_p5 = scmp.lt.s32.totalorder %s10050_s6, %s10050_s6 }
  0x4a   : > { %p8932_p13 = scmp.ne.s32.totalorder %s10050_s6, %s8931_s28  ;;  %p8940_p4 = scmp.lt.s32.totalorder %s8931_s28, %s8931_s28 }
  0x4c   : > { %p8934_p0 = pnand %p8932_p13, %p10079_p8  ;;  %p8941_p7 = por %p8940_p4, %p8939_p5 }
  0x4e   : > { %p8935_p2 = pneg %p8934_p0 }
  0x50   : > { %p8942_p9 = pnand %p8941_p7, %p8935_p2 }
  0x52   : > { %8945 = shalt.err (!%p8942_p9)
}
  0x53   : > { %8037 = dma.hbm_to_vmem [thread:$0]  (!%p10063_p6), %s11146_s0, 32, %s10050_s6, [#allocation6]  }
  0x54   : > { %s11148_s11 = sld [smem:[#allocation73_spill]] }
  0x5a   : > { %s8946_s1 = scalar_lea.hbm %s11148_s11, 32 }
  0x5b   : > { %p8947_p10 = scmp.ne.s32.totalorder %s11148_s11, %s8946_s1  ;;  %p8953_p12 = scmp.lt.u32.totalorder %s8946_s1, %s11148_s11 }
  0x5d   : > { %p8949_p4 = pnand %p8947_p10, %p10079_p8 }
  0x5f   : > { %p8950_p11 = pneg %p8949_p4 }
  0x61   : > { %p8955_p13 = pnand %p8953_p12, %p8950_p11 }
  0x63   : > { %8958 = shalt.err (!%p8955_p13)
}
  0x64   : > { %s8959_s6 = scalar_lea.vmem %s10059_s29, 32  ;;  %p8967_p7 = scmp.lt.s32.totalorder %s10059_s29, %s10059_s29 }
  0x65   : > { %p8960_p0 = scmp.ne.s32.totalorder %s10059_s29, %s8959_s6  ;;  %p8968_p9 = scmp.lt.s32.totalorder %s8959_s6, %s8959_s6 }
  0x67   : > { %p8962_p2 = pnand %p8960_p0, %p10079_p8  ;;  %p8969_p10 = por %p8968_p9, %p8967_p7 }
  0x69   : > { %p8963_p5 = pneg %p8962_p2 }
  0x6b   : > { %p8970_p4 = pnand %p8969_p10, %p8963_p5 }
  0x6d   : > { %8973 = shalt.err (!%p8970_p4)
}
  0x6e   : > { %8040 = dma.hbm_to_vmem [thread:$0]  (!%p10063_p6), %s11148_s11, 32, %s10059_s29, [#allocation9]  }
  0x6f   : > { %s11149_s5 = sld [smem:[#allocation75_spill]] }
  0x75   : > { %s11150_s10 = smov %s11149_s5  ;;  %s8974_s3 = scalar_lea.hbm %s11149_s5, 32 }
  0x76   : > { %p8975_p11 = scmp.ne.s32.totalorder %s11150_s10, %s8974_s3  ;;  %p8981_p0 = scmp.lt.u32.totalorder %s8974_s3, %s11150_s10 }
  0x78   : > { %p8977_p12 = pnand %p8975_p11, %p10079_p8 }
  0x7a   : > { %p8978_p13 = pneg %p8977_p12 }
  0x7c   : > { %p8983_p2 = pnand %p8981_p0, %p8978_p13 }
  0x7e   : > { %8986 = shalt.err (!%p8983_p2)
}
  0x7f   : > { %s8987_s29 = scalar_lea.vmem %s10067_s7, 32  ;;  %p8995_p10 = scmp.lt.s32.totalorder %s10067_s7, %s10067_s7 }
  0x80   : > { %p8988_p5 = scmp.ne.s32.totalorder %s10067_s7, %s8987_s29  ;;  %p8996_p4 = scmp.lt.s32.totalorder %s8987_s29, %s8987_s29 }
  0x82   : > { %p8990_p7 = pnand %p8988_p5, %p10079_p8  ;;  %p8997_p11 = por %p8996_p4, %p8995_p10 }
  0x84   : > { %p8991_p9 = pneg %p8990_p7 }
  0x86   : > { %p8998_p12 = pnand %p8997_p11, %p8991_p9 }
  0x88   : > { %9001 = shalt.err (!%p8998_p12)
}
  0x89   : > { %8046 = dma.hbm_to_vmem [thread:$0]  (!%p10063_p6), %s11150_s10, 32, %s10067_s7, [#allocation12]  }
  0x8a   : > { %s11151_s8 = sld [smem:[#allocation77_spill]] }
  0x90   : > { %s11152_s3 = smov %s11151_s8  ;;  %s9002_s5 = scalar_lea.hbm %s11151_s8, 96 }
  0x91   : > { %p9003_p13 = scmp.ne.s32.totalorder %s11152_s3, %s9002_s5  ;;  %p9009_p5 = scmp.lt.u32.totalorder %s9002_s5, %s11152_s3 }
  0x93   : > { %p9005_p0 = pnand %p9003_p13, %p10079_p8 }
  0x95   : > { %p9006_p2 = pneg %p9005_p0 }
  0x97   : > { %p9011_p7 = pnand %p9009_p5, %p9006_p2 }
  0x99   : > { %9014 = shalt.err (!%p9011_p7)
}
  0x9a   : > { %s9015_s0 = scalar_lea.vmem %s759_s4, 96  ;;  %p9023_p11 = scmp.lt.s32.totalorder %s759_s4, %s759_s4 }
  0x9b   : > { %p9016_p9 = scmp.ne.s32.totalorder %s759_s4, %s9015_s0  ;;  %p9024_p12 = scmp.lt.s32.totalorder %s9015_s0, %s9015_s0 }
  0x9d   : > { %p9018_p10 = pnand %p9016_p9, %p10079_p8  ;;  %p9025_p1 = por %p9024_p12, %p9023_p11 }
  0x9f   : > { %p9019_p4 = pneg %p9018_p10 }
  0xa1   : > { %p9026_p3 = pnand %p9025_p1, %p9019_p4 }
  0xa3   : > { %9029 = shalt.err (!%p9026_p3)
}
  0xa4   : > { %s9838_s7 = smov 48   ;;  %s9839_s27 = smov 3  }
  0xa5   : > { %8052 = dma.hbm_to_vmem [thread:$0]  (!%p10063_p6), %s11152_s3, 96, %s759_s4, [#allocation15], %s9838_s7, %s9838_s7, %s9839_s27  }
  0xa6   : > { %s9840_s8 = smov [#allocation17]   ;;  %s9841_s1 = smov [#allocation20]  }
  0xa7   : > { %s785_s5 = sshll.u32 %s9840_s8, 4  ;;  %s808_s28 = sshll.u32 %s9841_s1, 4  ;;  %s786_s5 = int_to_ptr.vmem [resolvable:$true] %s785_s5  ;;  %s10165_s28 = int_to_ptr.vmem [resolvable:$true] %s808_s28 }
  0xa8   : > { %s11153_s0 = sld [smem:[#allocation79_spill]] }
  0xae   : > { %s9030_s10 = scalar_lea.hbm %s11153_s0, 32 }
  0xaf   : > { %p9031_p1 = scmp.ne.s32.totalorder %s11153_s0, %s9030_s10  ;;  %p9037_p0 = scmp.lt.u32.totalorder %s9030_s10, %s11153_s0 }
  0xb1   : > { %p9033_p3 = pnand %p9031_p1, %p10079_p8 }
  0xb3   : > { %p9034_p13 = pneg %p9033_p3 }
  0xb5   : > { %p9039_p2 = pnand %p9037_p0, %p9034_p13 }
  0xb7   : > { %9042 = shalt.err (!%p9039_p2)
}
  0xb8   : > { %s9043_s7 = scalar_lea.vmem %s786_s5, 32  ;;  %p9051_p10 = scmp.lt.s32.totalorder %s786_s5, %s786_s5 }
  0xb9   : > { %p9044_p5 = scmp.ne.s32.totalorder %s786_s5, %s9043_s7  ;;  %p9052_p4 = scmp.lt.s32.totalorder %s9043_s7, %s9043_s7 }
  0xbb   : > { %p9046_p7 = pnand %p9044_p5, %p10079_p8  ;;  %p9053_p11 = por %p9052_p4, %p9051_p10 }
  0xbd   : > { %p9047_p9 = pneg %p9046_p7 }
  0xbf   : > { %p9054_p12 = pnand %p9053_p11, %p9047_p9 }
  0xc1   : > { %9057 = shalt.err (!%p9054_p12)
}
  0xc2   : > { %8058 = dma.hbm_to_vmem [thread:$0]  (!%p10063_p6), %s11153_s0, 32, %s786_s5, [#allocation18]  }
  0xc3   : > { %s11154_s30 = sld [smem:[#allocation81_spill]] }
  0xc9   : > { %s11155_s1 = smov %s11154_s30  ;;  %s9058_s8 = scalar_lea.hbm %s11154_s30, 32 }
  0xca   : > { %p9059_p1 = scmp.ne.s32.totalorder %s11155_s1, %s9058_s8  ;;  %p9065_p0 = scmp.lt.u32.totalorder %s9058_s8, %s11155_s1 }
  0xcc   : > { %p9061_p3 = pnand %p9059_p1, %p10079_p8 }
  0xce   : > { %p9062_p13 = pneg %p9061_p3 }
  0xd0   : > { %p9067_p2 = pnand %p9065_p0, %p9062_p13 }
  0xd2   : > { %9070 = shalt.err (!%p9067_p2)
}
  0xd3   : > { %s9071_s5 = scalar_lea.vmem %s10165_s28, 32  ;;  %p9079_p10 = scmp.lt.s32.totalorder %s10165_s28, %s10165_s28 }
  0xd4   : > { %p9072_p5 = scmp.ne.s32.totalorder %s10165_s28, %s9071_s5  ;;  %p9080_p4 = scmp.lt.s32.totalorder %s9071_s5, %s9071_s5 }
  0xd6   : > { %p9074_p7 = pnand %p9072_p5, %p10079_p8  ;;  %p9081_p11 = por %p9080_p4, %p9079_p10 }
  0xd8   : > { %p9075_p9 = pneg %p9074_p7 }
  0xda   : > { %p9082_p12 = pnand %p9081_p11, %p9075_p9 }
  0xdc   : > { %9085 = shalt.err (!%p9082_p12)
}
  0xdd   : > { %s9842_s7 = smov 16   ;;  %s9843_s26 = smov 1  }
  0xde   : > { %8064 = dma.hbm_to_vmem [thread:$0]  (!%p10063_p6), %s11155_s1, 32, %s10165_s28, [#allocation21], %s9842_s7, %s9842_s7, %s9843_s26  }
  0xdf   : > { %s9844_s27 = smov [#allocation23]   ;;  %s11156_s13 = sld [smem:[#allocation83_spill]] }
  0xe0   : > { %s834_s30 = sshll.u32 %s9844_s27, 4  ;;  %s835_s30 = int_to_ptr.vmem [resolvable:$true] %s834_s30 }
  0xe5   : > { %s9086_s29 = scalar_lea.hbm %s11156_s13, 64 }
  0xe6   : > { %p9087_p1 = scmp.ne.s32.totalorder %s11156_s13, %s9086_s29  ;;  %p9093_p0 = scmp.lt.u32.totalorder %s9086_s29, %s11156_s13 }
  0xe8   : > { %p9089_p3 = pnand %p9087_p1, %p10079_p8 }
  0xea   : > { %p9090_p13 = pneg %p9089_p3 }
  0xec   : > { %p9095_p2 = pnand %p9093_p0, %p9090_p13 }
  0xee   : > { %9098 = shalt.err (!%p9095_p2)
}
  0xef   : > { %s9099_s28 = scalar_lea.vmem %s835_s30, 64  ;;  %p9107_p10 = scmp.lt.s32.totalorder %s835_s30, %s835_s30 }
  0xf0   : > { %p9100_p5 = scmp.ne.s32.totalorder %s835_s30, %s9099_s28  ;;  %p9108_p4 = scmp.lt.s32.totalorder %s9099_s28, %s9099_s28 }
  0xf2   : > { %p9102_p7 = pnand %p9100_p5, %p10079_p8  ;;  %p9109_p11 = por %p9108_p4, %p9107_p10 }
  0xf4   : > { %p9103_p9 = pneg %p9102_p7 }
  0xf6   : > { %p9110_p12 = pnand %p9109_p11, %p9103_p9 }
  0xf8   : > { %9113 = shalt.err (!%p9110_p12)
}
  0xf9   : > { %s11098_s7 = smov 32   ;;  %s9846_s26 = smov 2  }
  0xfa   : > { %8070 = dma.hbm_to_vmem [thread:$0]  (!%p10063_p6), %s11156_s13, 64, %s835_s30, [#allocation24], %s11098_s7, %s11098_s7, %s9846_s26  }
  0xfb   : > { %s9847_s10 = smov [#allocation26]   ;;  %s9848_s8 = smov [#allocation29]  }
  0xfc   : > { %s861_s27 = sshll.u32 %s9847_s10, 4  ;;  %s885_s6 = sshll.u32 %s9848_s8, 4  ;;  %s862_s27 = int_to_ptr.vmem [resolvable:$true] %s861_s27  ;;  %s886_s6 = int_to_ptr.vmem [resolvable:$true] %s885_s6 }
  0xfd   : > { %s11157_s15 = sld [smem:[#allocation85_spill]] }
 0x103   : > { %s9114_s4 = scalar_lea.hbm %s11157_s15, 32 }
 0x104   : > { %p9115_p1 = scmp.ne.s32.totalorder %s11157_s15, %s9114_s4  ;;  %p9121_p0 = scmp.lt.u32.totalorder %s9114_s4, %s11157_s15 }
 0x106   : > { %p9117_p3 = pnand %p9115_p1, %p10079_p8 }
 0x108   : > { %p9118_p13 = pneg %p9117_p3 }
 0x10a   : > { %p9123_p2 = pnand %p9121_p0, %p9118_p13 }
 0x10c   : > { %9126 = shalt.err (!%p9123_p2)
}
 0x10d   : > { %s9127_s30 = scalar_lea.vmem %s862_s27, 32  ;;  %p9135_p10 = scmp.lt.s32.totalorder %s862_s27, %s862_s27 }
 0x10e   : > { %p9128_p5 = scmp.ne.s32.totalorder %s862_s27, %s9127_s30  ;;  %p9136_p4 = scmp.lt.s32.totalorder %s9127_s30, %s9127_s30 }
 0x110   : > { %p9130_p7 = pnand %p9128_p5, %p10079_p8  ;;  %p9137_p11 = por %p9136_p4, %p9135_p10 }
 0x112   : > { %p9131_p9 = pneg %p9130_p7 }
 0x114   : > { %p9138_p12 = pnand %p9137_p11, %p9131_p9 }
 0x116   : > { %9141 = shalt.err (!%p9138_p12)
}
 0x117   : > { %8076 = dma.hbm_to_vmem [thread:$0]  (!%p10063_p6), %s11157_s15, 32, %s862_s27, [#allocation27]  }
 0x118   : > { %s11158_s17 = sld [smem:[#allocation87_spill]] }
 0x11e   : > { %s9142_s11 = scalar_lea.hbm %s11158_s17, 128 }
 0x11f   : > { %p9143_p1 = scmp.ne.s32.totalorder %s11158_s17, %s9142_s11  ;;  %p9149_p0 = scmp.lt.u32.totalorder %s9142_s11, %s11158_s17 }
 0x121   : > { %p9145_p3 = pnand %p9143_p1, %p10079_p8 }
 0x123   : > { %p9146_p13 = pneg %p9145_p3 }
 0x125   : > { %p9151_p2 = pnand %p9149_p0, %p9146_p13 }
 0x127   : > { %9154 = shalt.err (!%p9151_p2)
}
 0x128   : > { %s9155_s4 = scalar_lea.vmem %s886_s6, 128  ;;  %p9163_p10 = scmp.lt.s32.totalorder %s886_s6, %s886_s6 }
 0x129   : > { %p9156_p5 = scmp.ne.s32.totalorder %s886_s6, %s9155_s4  ;;  %p9164_p4 = scmp.lt.s32.totalorder %s9155_s4, %s9155_s4 }
 0x12b   : > { %p9158_p7 = pnand %p9156_p5, %p10079_p8  ;;  %p9165_p11 = por %p9164_p4, %p9163_p10 }
 0x12d   : > { %p9159_p9 = pneg %p9158_p7 }
 0x12f   : > { %p9166_p12 = pnand %p9165_p11, %p9159_p9 }
 0x131   : > { %9169 = shalt.err (!%p9166_p12)
}
 0x132   : > { %8082 = dma.hbm_to_vmem [thread:$0]  (!%p10063_p6), %s11158_s17, 128, %s886_s6, [#allocation30]  }
 0x133   : > { %s9849_s28 = smov [#allocation32]   ;;  %s9850_s26 = smov [#allocation35]  }
 0x134   : > { %s909_s30 = sshll.u32 %s9849_s28, 4  ;;  %s933_s0 = sshll.u32 %s9850_s26, 4  ;;  %s910_s30 = int_to_ptr.vmem [resolvable:$true] %s909_s30  ;;  %s934_s0 = int_to_ptr.vmem [resolvable:$true] %s933_s0 }
 0x135   : > { %s11159_s19 = sld [smem:[#allocation89_spill]] }
 0x13b   : > { %s9170_s11 = scalar_lea.hbm %s11159_s19, 32 }
 0x13c   : > { %p9171_p1 = scmp.ne.s32.totalorder %s11159_s19, %s9170_s11  ;;  %p9177_p0 = scmp.lt.u32.totalorder %s9170_s11, %s11159_s19 }
 0x13e   : > { %p9173_p3 = pnand %p9171_p1, %p10079_p8 }
 0x140   : > { %p9174_p13 = pneg %p9173_p3 }
 0x142   : > { %p9179_p2 = pnand %p9177_p0, %p9174_p13 }
 0x144   : > { %9182 = shalt.err (!%p9179_p2)
}
 0x145   : > { %s9183_s6 = scalar_lea.vmem %s910_s30, 32  ;;  %p9191_p10 = scmp.lt.s32.totalorder %s910_s30, %s910_s30 }
 0x146   : > { %p9184_p5 = scmp.ne.s32.totalorder %s910_s30, %s9183_s6  ;;  %p9192_p4 = scmp.lt.s32.totalorder %s9183_s6, %s9183_s6 }
 0x148   : > { %p9186_p7 = pnand %p9184_p5, %p10079_p8  ;;  %p9193_p11 = por %p9192_p4, %p9191_p10 }
 0x14a   : > { %p9187_p9 = pneg %p9186_p7 }
 0x14c   : > { %p9194_p12 = pnand %p9193_p11, %p9187_p9 }
 0x14e   : > { %9197 = shalt.err (!%p9194_p12)
}
 0x14f   : > { %8088 = dma.hbm_to_vmem [thread:$0]  (!%p10063_p6), %s11159_s19, 32, %s910_s30, [#allocation33]  }
 0x150   : > { %s11160_s21 = sld [smem:[#allocation91_spill]] }
 0x156   : > { %s9198_s26 = scalar_lea.hbm %s11160_s21, 16 }
 0x157   : > { %p9199_p1 = scmp.ne.s32.totalorder %s11160_s21, %s9198_s26  ;;  %p9205_p0 = scmp.lt.u32.totalorder %s9198_s26, %s11160_s21 }
 0x159   : > { %p9201_p3 = pnand %p9199_p1, %p10079_p8 }
 0x15b   : > { %p9202_p13 = pneg %p9201_p3 }
 0x15d   : > { %p9207_p2 = pnand %p9205_p0, %p9202_p13 }
 0x15f   : > { %9210 = shalt.err (!%p9207_p2)
}
 0x160   : > { %s9211_s8 = scalar_lea.vmem %s934_s0, 16  ;;  %s9218_s30 = scalar_lea.vmem %s934_s0, 32 }
 0x161   : > { %p9212_p5 = scmp.ne.s32.totalorder %s934_s0, %s9211_s8  ;;  %p9219_p10 = scmp.lt.s32.totalorder %s934_s0, %s934_s0 }
 0x162   : > { %p9220_p4 = scmp.lt.s32.totalorder %s9218_s30, %s9211_s8 }
 0x163   : > { %p9214_p7 = pnand %p9212_p5, %p10079_p8 }
 0x164   : > { %p9221_p11 = por %p9220_p4, %p9219_p10 }
 0x165   : > { %p9215_p9 = pneg %p9214_p7 }
 0x167   : > { %p9222_p12 = pnand %p9221_p11, %p9215_p9 }
 0x169   : > { %9225 = shalt.err (!%p9222_p12)
}
 0x16a   : > { %8094 = dma.hbm_to_vmem [thread:$0]  (!%p10063_p6), %s11160_s21, 16, %s934_s0, [#allocation36]  }
 0x16b   : > { %s9851_s6 = smov [#allocation38]   ;;  %s9852_s27 = smov [#allocation41]  }
 0x16c   : > { %s957_s4 = sshll.u32 %s9851_s6, 4  ;;  %s981_s5 = sshll.u32 %s9852_s27, 4  ;;  %s958_s4 = int_to_ptr.vmem [resolvable:$true] %s957_s4  ;;  %s982_s5 = int_to_ptr.vmem [resolvable:$true] %s981_s5 }
 0x16d   : > { %s9226_s3 = scalar_lea.hbm %s11060_s23, 32 }
 0x16e   : > { %p9227_p1 = scmp.ne.s32.totalorder %s11060_s23, %s9226_s3  ;;  %p9233_p0 = scmp.lt.u32.totalorder %s9226_s3, %s11060_s23 }
 0x170   : > { %p9229_p3 = pnand %p9227_p1, %p10079_p8 }
 0x172   : > { %p9230_p13 = pneg %p9229_p3 }
 0x174   : > { %p9235_p2 = pnand %p9233_p0, %p9230_p13 }
 0x176   : > { %9238 = shalt.err (!%p9235_p2)
}
 0x177   : > { %s9239_s0 = scalar_lea.vmem %s958_s4, 32  ;;  %p9247_p10 = scmp.lt.s32.totalorder %s958_s4, %s958_s4 }
 0x178   : > { %p9240_p5 = scmp.ne.s32.totalorder %s958_s4, %s9239_s0  ;;  %p9248_p4 = scmp.lt.s32.totalorder %s9239_s0, %s9239_s0 }
 0x17a   : > { %p9242_p7 = pnand %p9240_p5, %p10079_p8  ;;  %p9249_p11 = por %p9248_p4, %p9247_p10 }
 0x17c   : > { %p9243_p9 = pneg %p9242_p7 }
 0x17e   : > { %p9250_p12 = pnand %p9249_p11, %p9243_p9 }
 0x180   : > { %9253 = shalt.err (!%p9250_p12)
}
 0x181   : > { %8100 = dma.hbm_to_vmem [thread:$0]  (!%p10063_p6), %s11060_s23, 32, %s958_s4, [#allocation39]  }
 0x182   : > { %s9254_s27 = scalar_lea.hbm %s11062_s25, 16 }
 0x183   : > { %p9255_p1 = scmp.ne.s32.totalorder %s11062_s25, %s9254_s27  ;;  %p9261_p0 = scmp.lt.u32.totalorder %s9254_s27, %s11062_s25 }
 0x185   : > { %p9257_p3 = pnand %p9255_p1, %p10079_p8 }
 0x187   : > { %p9258_p13 = pneg %p9257_p3 }
 0x189   : > { %p9263_p2 = pnand %p9261_p0, %p9258_p13 }
 0x18b   : > { %9266 = shalt.err (!%p9263_p2)
}
 0x18c   : > { %s9267_s11 = scalar_lea.vmem %s982_s5, 16  ;;  %s9274_s4 = scalar_lea.vmem %s982_s5, 32 }
 0x18d   : > { %p9268_p5 = scmp.ne.s32.totalorder %s982_s5, %s9267_s11  ;;  %p9275_p10 = scmp.lt.s32.totalorder %s982_s5, %s982_s5 }
 0x18e   : > { %p9276_p4 = scmp.lt.s32.totalorder %s9274_s4, %s9267_s11 }
 0x18f   : > { %p9270_p7 = pnand %p9268_p5, %p10079_p8 }
 0x190   : > { %p9277_p11 = por %p9276_p4, %p9275_p10 }
 0x191   : > { %p9271_p9 = pneg %p9270_p7 }
 0x193   : > { %p9278_p12 = pnand %p9277_p11, %p9271_p9 }
 0x195   : > { %9281 = shalt.err (!%p9278_p12)
}
 0x196   : > { %8106 = dma.hbm_to_vmem [thread:$0]  (!%p10063_p6), %s11062_s25, 16, %s982_s5, [#allocation42]  }
 0x197   : > { %s9853_s0 = smov [#allocation10]   ;;  %s9854_s29 = smov [#allocation13]  }
 0x198   : > { %s724_s30 = sshll.u32 %s9853_s0, 4  ;;  %s745_s9 = sshll.u32 %s9854_s29, 4  ;;  %s725_s30 = int_to_ptr.vmem [resolvable:$true] %s724_s30  ;;  %s746_s9 = int_to_ptr.vmem [resolvable:$true] %s745_s9 }
 0x199   : > { %s11161_s28 = sld [smem:[#allocation74_spill]] }
 0x19f   : > { %s9282_s26 = scalar_lea.hbm %s11161_s28, 32 }
 0x1a0   : > { %p9283_p1 = scmp.ne.s32.totalorder %s11161_s28, %s9282_s26  ;;  %p9289_p0 = scmp.lt.u32.totalorder %s9282_s26, %s11161_s28 }
 0x1a2   : > { %p9285_p3 = pnand %p9283_p1, %p10079_p8 }
 0x1a4   : > { %p9286_p13 = pneg %p9285_p3 }
 0x1a6   : > { %p9291_p2 = pnand %p9289_p0, %p9286_p13 }
 0x1a8   : > { %9294 = shalt.err (!%p9291_p2)
}
 0x1a9   : > { %s9295_s5 = scalar_lea.vmem %s725_s30, 32  ;;  %p9303_p10 = scmp.lt.s32.totalorder %s725_s30, %s725_s30 }
 0x1aa   : > { %p9296_p5 = scmp.ne.s32.totalorder %s725_s30, %s9295_s5  ;;  %p9304_p4 = scmp.lt.s32.totalorder %s9295_s5, %s9295_s5 }
 0x1ac   : > { %p9298_p7 = pnand %p9296_p5, %p10079_p8  ;;  %p9305_p11 = por %p9304_p4, %p9303_p10 }
 0x1ae   : > { %p9299_p9 = pneg %p9298_p7 }
 0x1b0   : > { %p9306_p12 = pnand %p9305_p11, %p9299_p9 }
 0x1b2   : > { %9309 = shalt.err (!%p9306_p12)
}
 0x1b3   : > { %8043 = dma.hbm_to_vmem [thread:$0]  (!%p10063_p6), %s11161_s28, 32, %s725_s30, [#allocation9]  }
 0x1b4   : > { %s11162_s6 = sld [smem:[#allocation76_spill]] }
 0x1ba   : > { %s9310_s27 = scalar_lea.hbm %s11162_s6, 12288 }
 0x1bb   : > { %p9311_p1 = scmp.ne.s32.totalorder %s11162_s6, %s9310_s27  ;;  %p9317_p0 = scmp.lt.u32.totalorder %s9310_s27, %s11162_s6 }
 0x1bd   : > { %p9313_p3 = pnand %p9311_p1, %p10079_p8 }
 0x1bf   : > { %p9314_p13 = pneg %p9313_p3 }
 0x1c1   : > { %p9319_p2 = pnand %p9317_p0, %p9314_p13 }
 0x1c3   : > { %9322 = shalt.err (!%p9319_p2)
}
 0x1c4   : > { %s9323_s4 = scalar_lea.vmem %s746_s9, 12288  ;;  %p9331_p10 = scmp.lt.s32.totalorder %s746_s9, %s746_s9 }
 0x1c5   : > { %p9324_p5 = scmp.ne.s32.totalorder %s746_s9, %s9323_s4  ;;  %p9332_p4 = scmp.lt.s32.totalorder %s9323_s4, %s9323_s4 }
 0x1c7   : > { %p9326_p7 = pnand %p9324_p5, %p10079_p8  ;;  %p9333_p11 = por %p9332_p4, %p9331_p10 }
 0x1c9   : > { %p9327_p9 = pneg %p9326_p7 }
 0x1cb   : > { %p9334_p12 = pnand %p9333_p11, %p9327_p9 }
 0x1cd   : > { %9337 = shalt.err (!%p9334_p12)
}
 0x1ce   : > { %s9855_s30 = smov 192   ;;  %s9856_s5 = smov 12  }
 0x1cf   : > { %8049 = dma.hbm_to_vmem [thread:$0]  (!%p10063_p6), %s11162_s6, 12288, %s746_s9, [#allocation12], %s9855_s30, %s9855_s30, %s9856_s5  }
 0x1d0   : > { %s9857_s0 = smov [#allocation16]   ;;  %s11163_s3 = sld [smem:[#allocation78_spill]] }
 0x1d1   : > { %s771_s29 = sshll.u32 %s9857_s0, 4  ;;  %s772_s29 = int_to_ptr.vmem [resolvable:$true] %s771_s29 }
 0x1d6   : > { %s9338_s1 = scalar_lea.hbm %s11163_s3, 4096 }
 0x1d7   : > { %p9339_p1 = scmp.ne.s32.totalorder %s11163_s3, %s9338_s1  ;;  %p9345_p0 = scmp.lt.u32.totalorder %s9338_s1, %s11163_s3 }
 0x1d9   : > { %p9341_p3 = pnand %p9339_p1, %p10079_p8 }
 0x1db   : > { %p9342_p13 = pneg %p9341_p3 }
 0x1dd   : > { %p9347_p2 = pnand %p9345_p0, %p9342_p13 }
 0x1df   : > { %9350 = shalt.err (!%p9347_p2)
}
 0x1e0   : > { %s9351_s9 = scalar_lea.vmem %s772_s29, 4096  ;;  %p9359_p10 = scmp.lt.s32.totalorder %s772_s29, %s772_s29 }
 0x1e1   : > { %p9352_p5 = scmp.ne.s32.totalorder %s772_s29, %s9351_s9  ;;  %p9360_p4 = scmp.lt.s32.totalorder %s9351_s9, %s9351_s9 }
 0x1e3   : > { %p9354_p7 = pnand %p9352_p5, %p10079_p8  ;;  %p9361_p11 = por %p9360_p4, %p9359_p10 }
 0x1e5   : > { %p9355_p9 = pneg %p9354_p7 }
 0x1e7   : > { %p9362_p12 = pnand %p9361_p11, %p9355_p9 }
 0x1e9   : > { %9365 = shalt.err (!%p9362_p12)
}
 0x1ea   : > { %s11100_s30 = smov 128   ;;  %s11102_s5 = smov 8  }
 0x1eb   : > { %8055 = dma.hbm_to_vmem [thread:$0]  (!%p10063_p6), %s11163_s3, 4096, %s772_s29, [#allocation15], %s11100_s30, %s11100_s30, %s11102_s5  }
 0x1ec   : > { %s9860_s10 = smov [#allocation19]   ;;  %s11164_s26 = sld [smem:[#allocation80_spill]] }
 0x1ed   : > { %s795_s8 = sshll.u32 %s9860_s10, 4  ;;  %s796_s8 = int_to_ptr.vmem [resolvable:$true] %s795_s8 }
 0x1f2   : > { %s9366_s1 = scalar_lea.hbm %s11164_s26, 4096 }
 0x1f3   : > { %p9367_p1 = scmp.ne.s32.totalorder %s11164_s26, %s9366_s1  ;;  %p9373_p0 = scmp.lt.u32.totalorder %s9366_s1, %s11164_s26 }
 0x1f5   : > { %p9369_p3 = pnand %p9367_p1, %p10079_p8 }
 0x1f7   : > { %p9370_p13 = pneg %p9369_p3 }
 0x1f9   : > { %p9375_p2 = pnand %p9373_p0, %p9370_p13 }
 0x1fb   : > { %9378 = shalt.err (!%p9375_p2)
}
 0x1fc   : > { %s9379_s29 = scalar_lea.vmem %s796_s8, 4096  ;;  %p9387_p10 = scmp.lt.s32.totalorder %s796_s8, %s796_s8 }
 0x1fd   : > { %p9380_p5 = scmp.ne.s32.totalorder %s796_s8, %s9379_s29  ;;  %p9388_p4 = scmp.lt.s32.totalorder %s9379_s29, %s9379_s29 }
 0x1ff   : > { %p9382_p7 = pnand %p9380_p5, %p10079_p8  ;;  %p9389_p11 = por %p9388_p4, %p9387_p10 }
 0x201   : > { %p9383_p9 = pneg %p9382_p7 }
 0x203   : > { %p9390_p12 = pnand %p9389_p11, %p9383_p9 }
 0x205   : > { %9393 = shalt.err (!%p9390_p12)
}
 0x206   : > { %s11105_s13 = smov 64   ;;  %s11107_s7 = smov 4  }
 0x207   : > { %8061 = dma.hbm_to_vmem [thread:$0]  (!%p10063_p6), %s11164_s26, 4096, %s796_s8, [#allocation18], %s11105_s13, %s11105_s13, %s11107_s7  }
 0x208   : > { %s9863_s0 = smov [#allocation22]   ;;  %s9864_s1 = smov [#allocation25]  }
 0x209   : > { %s821_s27 = sshll.u32 %s9863_s0, 4  ;;  %s847_s11 = sshll.u32 %s9864_s1, 4  ;;  %s822_s27 = int_to_ptr.vmem [resolvable:$true] %s821_s27  ;;  %s848_s11 = int_to_ptr.vmem [resolvable:$true] %s847_s11 }
 0x20a   : > { %s11165_s29 = sld [smem:[#allocation82_spill]] }
 0x210   : > { %s9394_s30 = scalar_lea.hbm %s11165_s29, 8192 }
 0x211   : > { %p9395_p1 = scmp.ne.s32.totalorder %s11165_s29, %s9394_s30  ;;  %p9401_p0 = scmp.lt.u32.totalorder %s9394_s30, %s11165_s29 }
 0x213   : > { %p9397_p3 = pnand %p9395_p1, %p10079_p8 }
 0x215   : > { %p9398_p13 = pneg %p9397_p3 }
 0x217   : > { %p9403_p2 = pnand %p9401_p0, %p9398_p13 }
 0x219   : > { %9406 = shalt.err (!%p9403_p2)
}
 0x21a   : > { %s9407_s8 = scalar_lea.vmem %s822_s27, 8192  ;;  %p9415_p10 = scmp.lt.s32.totalorder %s822_s27, %s822_s27 }
 0x21b   : > { %p9408_p5 = scmp.ne.s32.totalorder %s822_s27, %s9407_s8  ;;  %p9416_p4 = scmp.lt.s32.totalorder %s9407_s8, %s9407_s8 }
 0x21d   : > { %p9410_p7 = pnand %p9408_p5, %p10079_p8  ;;  %p9417_p11 = por %p9416_p4, %p9415_p10 }
 0x21f   : > { %p9411_p9 = pneg %p9410_p7 }
 0x221   : > { %p9418_p12 = pnand %p9417_p11, %p9411_p9 }
 0x223   : > { %9421 = shalt.err (!%p9418_p12)
}
 0x224   : > { %s11166_s3 = smov 8   ;;  %s11167_s5 = smov 128  }
 0x225   : > { %8067 = dma.hbm_to_vmem [thread:$0]  (!%p10063_p6), %s11165_s29, 8192, %s822_s27, [#allocation21], %s11167_s5, %s11167_s5, %s11166_s3  }
 0x226   : > { %s11168_s14 = sld [smem:[#allocation84_spill]] }
 0x22c   : > { %s9422_s10 = scalar_lea.hbm %s11168_s14, 4096 }
 0x22d   : > { %p9423_p1 = scmp.ne.s32.totalorder %s11168_s14, %s9422_s10  ;;  %p9429_p0 = scmp.lt.u32.totalorder %s9422_s10, %s11168_s14 }
 0x22f   : > { %p9425_p3 = pnand %p9423_p1, %p10079_p8 }
 0x231   : > { %p9426_p13 = pneg %p9425_p3 }
 0x233   : > { %p9431_p2 = pnand %p9429_p0, %p9426_p13 }
 0x235   : > { %9434 = shalt.err (!%p9431_p2)
}
 0x236   : > { %s9435_s8 = scalar_lea.vmem %s848_s11, 4096  ;;  %p9443_p10 = scmp.lt.s32.totalorder %s848_s11, %s848_s11 }
 0x237   : > { %p9436_p5 = scmp.ne.s32.totalorder %s848_s11, %s9435_s8  ;;  %p9444_p4 = scmp.lt.s32.totalorder %s9435_s8, %s9435_s8 }
 0x239   : > { %p9438_p7 = pnand %p9436_p5, %p10079_p8  ;;  %p9445_p11 = por %p9444_p4, %p9443_p10 }
 0x23b   : > { %p9439_p9 = pneg %p9438_p7 }
 0x23d   : > { %p9446_p12 = pnand %p9445_p11, %p9439_p9 }
 0x23f   : > { %9449 = shalt.err (!%p9446_p12)
}
 0x240   : > { %8073 = dma.hbm_to_vmem [thread:$0]  (!%p10063_p6), %s11168_s14, 4096, %s848_s11, [#allocation24], %s11167_s5, %s11167_s5, %s11166_s3  }
 0x241   : > { %s9865_s17 = smov [#allocation28]   ;;  %s11169_s16 = sld [smem:[#allocation86_spill]] }
 0x242   : > { %s871_s30 = sshll.u32 %s9865_s17, 4  ;;  %s872_s30 = int_to_ptr.vmem [resolvable:$true] %s871_s30 }
 0x247   : > { %s9450_s0 = scalar_lea.hbm %s11169_s16, 16384 }
 0x248   : > { %p9451_p1 = scmp.ne.s32.totalorder %s11169_s16, %s9450_s0  ;;  %p9457_p0 = scmp.lt.u32.totalorder %s9450_s0, %s11169_s16 }
 0x24a   : > { %p9453_p3 = pnand %p9451_p1, %p10079_p8 }
 0x24c   : > { %p9454_p13 = pneg %p9453_p3 }
 0x24e   : > { %p9459_p2 = pnand %p9457_p0, %p9454_p13 }
 0x250   : > { %9462 = shalt.err (!%p9459_p2)
}
 0x251   : > { %s9463_s11 = scalar_lea.vmem %s872_s30, 16384  ;;  %p9471_p10 = scmp.lt.s32.totalorder %s872_s30, %s872_s30 }
 0x252   : > { %p9464_p5 = scmp.ne.s32.totalorder %s872_s30, %s9463_s11  ;;  %p9472_p4 = scmp.lt.s32.totalorder %s9463_s11, %s9463_s11 }
 0x254   : > { %p9466_p7 = pnand %p9464_p5, %p10079_p8  ;;  %p9473_p11 = por %p9472_p4, %p9471_p10 }
 0x256   : > { %p9467_p9 = pneg %p9466_p7 }
 0x258   : > { %p9474_p12 = pnand %p9473_p11, %p9467_p9 }
 0x25a   : > { %9477 = shalt.err (!%p9474_p12)
}
 0x25b   : > { %s9866_s27 = smov 512   ;;  %s11170_s15 = smov 32  }
 0x25c   : > { %8079 = dma.hbm_to_vmem [thread:$0]  (!%p10063_p6), %s11169_s16, 16384, %s872_s30, [#allocation27], %s9866_s27, %s9866_s27, %s11170_s15  }
 0x25d   : > { %s9867_s10 = smov [#allocation31]   ;;  %s9868_s1 = smov [#allocation34]  }
 0x25e   : > { %s895_s0 = sshll.u32 %s9867_s10, 4  ;;  %s919_s4 = sshll.u32 %s9868_s1, 4  ;;  %s896_s0 = int_to_ptr.vmem [resolvable:$true] %s895_s0  ;;  %s920_s4 = int_to_ptr.vmem [resolvable:$true] %s919_s4 }
 0x25f   : > { %s11171_s18 = sld [smem:[#allocation88_spill]] }
 0x265   : > { %s9478_s11 = scalar_lea.hbm %s11171_s18, 16384 }
 0x266   : > { %p9479_p1 = scmp.ne.s32.totalorder %s11171_s18, %s9478_s11  ;;  %p9485_p0 = scmp.lt.u32.totalorder %s9478_s11, %s11171_s18 }
 0x268   : > { %p9481_p3 = pnand %p9479_p1, %p10079_p8 }
 0x26a   : > { %p9482_p13 = pneg %p9481_p3 }
 0x26c   : > { %p9487_p2 = pnand %p9485_p0, %p9482_p13 }
 0x26e   : > { %9490 = shalt.err (!%p9487_p2)
}
 0x26f   : > { %s9491_s30 = scalar_lea.vmem %s896_s0, 16384  ;;  %p9499_p10 = scmp.lt.s32.totalorder %s896_s0, %s896_s0 }
 0x270   : > { %p9492_p5 = scmp.ne.s32.totalorder %s896_s0, %s9491_s30  ;;  %p9500_p4 = scmp.lt.s32.totalorder %s9491_s30, %s9491_s30 }
 0x272   : > { %p9494_p7 = pnand %p9492_p5, %p10079_p8  ;;  %p9501_p11 = por %p9500_p4, %p9499_p10 }
 0x274   : > { %p9495_p9 = pneg %p9494_p7 }
 0x276   : > { %p9502_p12 = pnand %p9501_p11, %p9495_p9 }
 0x278   : > { %9505 = shalt.err (!%p9502_p12)
}
 0x279   : > { %8085 = dma.hbm_to_vmem [thread:$0]  (!%p10063_p6), %s11171_s18, 16384, %s896_s0, [#allocation30], %s11167_s5, %s11167_s5, %s11166_s3  }
 0x27a   : > { %s11172_s20 = sld [smem:[#allocation90_spill]] }
 0x280   : > { %s9506_s15 = scalar_lea.hbm %s11172_s20, 2048 }
 0x281   : > { %p9507_p1 = scmp.ne.s32.totalorder %s11172_s20, %s9506_s15  ;;  %p9513_p0 = scmp.lt.u32.totalorder %s9506_s15, %s11172_s20 }
 0x283   : > { %p9509_p3 = pnand %p9507_p1, %p10079_p8 }
 0x285   : > { %p9510_p13 = pneg %p9509_p3 }
 0x287   : > { %p9515_p2 = pnand %p9513_p0, %p9510_p13 }
 0x289   : > { %9518 = shalt.err (!%p9515_p2)
}
 0x28a   : > { %s9519_s8 = scalar_lea.vmem %s920_s4, 2048  ;;  %p9527_p10 = scmp.lt.s32.totalorder %s920_s4, %s920_s4 }
 0x28b   : > { %p9520_p5 = scmp.ne.s32.totalorder %s920_s4, %s9519_s8  ;;  %p9528_p4 = scmp.lt.s32.totalorder %s9519_s8, %s9519_s8 }
 0x28d   : > { %p9522_p7 = pnand %p9520_p5, %p10079_p8  ;;  %p9529_p11 = por %p9528_p4, %p9527_p10 }
 0x28f   : > { %p9523_p9 = pneg %p9522_p7 }
 0x291   : > { %p9530_p12 = pnand %p9529_p11, %p9523_p9 }
 0x293   : > { %9533 = shalt.err (!%p9530_p12)
}
 0x294   : > { %s11173_s0 = smov 4   ;;  %s11174_s11 = smov 64  }
 0x295   : > { %8091 = dma.hbm_to_vmem [thread:$0]  (!%p10063_p6), %s11172_s20, 2048, %s920_s4, [#allocation33], %s11174_s11, %s11174_s11, %s11173_s0  }
 0x296   : > { %s9869_s14 = smov [#allocation37]   ;;  %s9870_s7 = smov [#allocation40]  }
 0x297   : > { %s943_s13 = sshll.u32 %s9869_s14, 4  ;;  %s967_s27 = sshll.u32 %s9870_s7, 4  ;;  %s944_s13 = int_to_ptr.vmem [resolvable:$true] %s943_s13  ;;  %s968_s27 = int_to_ptr.vmem [resolvable:$true] %s967_s27 }
 0x298   : > { %s9534_s10 = scalar_lea.hbm %s11059_s22, 2048 }
 0x299   : > { %p9535_p1 = scmp.ne.s32.totalorder %s11059_s22, %s9534_s10  ;;  %p9541_p0 = scmp.lt.u32.totalorder %s9534_s10, %s11059_s22 }
 0x29b   : > { %p9537_p3 = pnand %p9535_p1, %p10079_p8 }
 0x29d   : > { %p9538_p13 = pneg %p9537_p3 }
 0x29f   : > { %p9543_p2 = pnand %p9541_p0, %p9538_p13 }
 0x2a1   : > { %9546 = shalt.err (!%p9543_p2)
}
 0x2a2   : > { %s9547_s4 = scalar_lea.vmem %s944_s13, 2048  ;;  %p9555_p10 = scmp.lt.s32.totalorder %s944_s13, %s944_s13 }
 0x2a3   : > { %p9548_p5 = scmp.ne.s32.totalorder %s944_s13, %s9547_s4  ;;  %p9556_p4 = scmp.lt.s32.totalorder %s9547_s4, %s9547_s4 }
 0x2a5   : > { %p9550_p7 = pnand %p9548_p5, %p10079_p8  ;;  %p9557_p11 = por %p9556_p4, %p9555_p10 }
 0x2a7   : > { %p9551_p9 = pneg %p9550_p7 }
 0x2a9   : > { %p9558_p12 = pnand %p9557_p11, %p9551_p9 }
 0x2ab   : > { %9561 = shalt.err (!%p9558_p12)
}
 0x2ac   : > { %8097 = dma.hbm_to_vmem [thread:$0]  (!%p10063_p6), %s11059_s22, 2048, %s944_s13, [#allocation36], %s11167_s5, %s11167_s5, %s11166_s3  }
 0x2ad   : > { %s9562_s6 = scalar_lea.hbm %s11061_s24, 2048 }
 0x2ae   : > { %p9563_p1 = scmp.ne.s32.totalorder %s11061_s24, %s9562_s6  ;;  %p9569_p0 = scmp.lt.u32.totalorder %s9562_s6, %s11061_s24 }
 0x2b0   : > { %p9565_p3 = pnand %p9563_p1, %p10079_p8 }
 0x2b2   : > { %p9566_p13 = pneg %p9565_p3 }
 0x2b4   : > { %p9571_p2 = pnand %p9569_p0, %p9566_p13 }
 0x2b6   : > { %9574 = shalt.err (!%p9571_p2)
}
 0x2b7   : > { %s9575_s17 = scalar_lea.vmem %s968_s27, 2048  ;;  %p9583_p10 = scmp.lt.s32.totalorder %s968_s27, %s968_s27 }
 0x2b8   : > { %p9576_p5 = scmp.ne.s32.totalorder %s968_s27, %s9575_s17  ;;  %p9584_p4 = scmp.lt.s32.totalorder %s9575_s17, %s9575_s17 }
 0x2ba   : > { %p9578_p7 = pnand %p9576_p5, %p10079_p8  ;;  %p9585_p11 = por %p9584_p4, %p9583_p10 }
 0x2bc   : > { %p9579_p9 = pneg %p9578_p7 }
 0x2be   : > { %p9586_p12 = pnand %p9585_p11, %p9579_p9 }
 0x2c0   : > { %9589 = shalt.err (!%p9586_p12)
}
 0x2c1   : > { %8103 = dma.hbm_to_vmem [thread:$0]  (!%p10063_p6), %s11061_s24, 2048, %s968_s27, [#allocation39], %s11174_s11, %s11174_s11, %s11173_s0  }
 0x2c2   : > { %s9871_s30 = smov [#allocation43]   ;;  %s9872_s7 = smov [#allocation44]  }
 0x2c3   : > { %s991_s14 = sshll.u32 %s9871_s30, 4  ;;  %s1005_s15 = sshll.u32 %s9872_s7, 4  ;;  %s992_s14 = int_to_ptr.vmem [resolvable:$true] %s991_s14  ;;  %s1006_s15 = int_to_ptr.vmem [resolvable:$true] %s1005_s15 }
 0x2c4   : > { %s11175_s1 = sld [smem:[#allocation92_spill]] }
 0x2ca   : > { %s9590_s9 = scalar_lea.hbm %s11175_s1, 2048 }
 0x2cb   : > { %p9591_p1 = scmp.ne.s32.totalorder %s11175_s1, %s9590_s9  ;;  %p9597_p0 = scmp.lt.u32.totalorder %s9590_s9, %s11175_s1 }
 0x2cd   : > { %p9593_p3 = pnand %p9591_p1, %p10079_p8 }
 0x2cf   : > { %p9594_p13 = pneg %p9593_p3 }
 0x2d1   : > { %p9599_p2 = pnand %p9597_p0, %p9594_p13 }
 0x2d3   : > { %9602 = shalt.err (!%p9599_p2)
}
 0x2d4   : > { %s9603_s0 = scalar_lea.vmem %s992_s14, 2048  ;;  %p9611_p10 = scmp.lt.s32.totalorder %s992_s14, %s992_s14 }
 0x2d5   : > { %p9604_p5 = scmp.ne.s32.totalorder %s992_s14, %s9603_s0  ;;  %p9612_p4 = scmp.lt.s32.totalorder %s9603_s0, %s9603_s0 }
 0x2d7   : > { %p9606_p7 = pnand %p9604_p5, %p10079_p8  ;;  %p9613_p11 = por %p9612_p4, %p9611_p10 }
 0x2d9   : > { %p9607_p9 = pneg %p9606_p7 }
 0x2db   : > { %p9614_p12 = pnand %p9613_p11, %p9607_p9 }
 0x2dd   : > { %9617 = shalt.err (!%p9614_p12)
}
 0x2de   : > { %8109 = dma.hbm_to_vmem [thread:$0]  (!%p10063_p6), %s11175_s1, 2048, %s992_s14, [#allocation42], %s11167_s5, %s11167_s5, %s11166_s3  }
 0x2df   : > { %s11176_s30 = sld [smem:[#allocation93_spill]] }
 0x2e5   : > { %s11177_s7 = smov %s11176_s30  ;;  %s9618_s6 = scalar_lea.hbm %s11176_s30, 32 }
 0x2e6   : > { %p9619_p1 = scmp.ne.s32.totalorder %s11177_s7, %s9618_s6  ;;  %p9625_p0 = scmp.lt.u32.totalorder %s9618_s6, %s11177_s7 }
 0x2e8   : > { %p9621_p3 = pnand %p9619_p1, %p10079_p8 }
 0x2ea   : > { %p9622_p13 = pneg %p9621_p3 }
 0x2ec   : > { %p9627_p2 = pnand %p9625_p0, %p9622_p13 }
 0x2ee   : > { %9630 = shalt.err (!%p9627_p2)
}
 0x2ef   : > { %s9631_s13 = scalar_lea.vmem %s1006_s15, 32  ;;  %p9639_p10 = scmp.lt.s32.totalorder %s1006_s15, %s1006_s15 }
 0x2f0   : > { %p9632_p5 = scmp.ne.s32.totalorder %s1006_s15, %s9631_s13  ;;  %p9640_p4 = scmp.lt.s32.totalorder %s9631_s13, %s9631_s13 }
 0x2f2   : > { %p9634_p7 = pnand %p9632_p5, %p10079_p8  ;;  %p9641_p11 = por %p9640_p4, %p9639_p10 }
 0x2f4   : > { %p9635_p9 = pneg %p9634_p7 }
 0x2f6   : > { %p9642_p12 = pnand %p9641_p11, %p9635_p9 }
 0x2f8   : > { %9645 = shalt.err (!%p9642_p12)
}
 0x2f9   : > { %s11178_s14 = sld [smem:[#allocation67_spill]]  ;;  %s11179_s0 = sld [smem:[#allocation66_spill]] }
 0x2fa   : > { %s11180_s16 = sld [smem:[#allocation65_spill]]  ;;  %s11181_s2 = sld [smem:[#allocation64_spill]] }
 0x2fb   : > { %s11182_s11 = sld [smem:[#allocation68_spill]]  ;;  %s11189_s1 = sld [smem:[#allocation71_spill]] }
 0x2fc   : > { %8112 = dma.hbm_to_vmem [thread:$0]  (!%p10063_p6), %s11177_s7, 32, %s1006_s15, [#allocation45]  }
 0x2ff   : > { %s7071_s27 = sadd.s32 4294967294, %s11178_s14   ;;  %s10600_s30 = sadd.s32 1, %s11178_s14  }
 0x300   : > { %s67_s12 = sadd.s32 1, %s11179_s0  ;;  %s64_s4 = ssub.s32 %s11178_s14, %s10600_s30 }
 0x301   : > { %p74_p8 = scmp.ne.s32.totalorder %s11179_s0, %s11180_s16  ;;  %p65_p1 = scmp.eq.s32.totalorder %s64_s4, 0 }
 0x302   : > { %p75_p3 = scmp.eq.s32.totalorder %s11178_s14, 0  ;;  %p80_p13 = scmp.ne.s32.totalorder %s11180_s16, %s11181_s2 }
 0x303   : > { %p676_p0 = scmp.eq.s32.totalorder %s11182_s11, 1  ;;  %p11183_p5 = scmp.eq.s32.totalorder %s11182_s11, 0 }
 0x304   : > { %s10612_s6 = scalar_select %p65_p1, %s11179_s0, %s67_s12  }
 0x305   : > { %p76_p2 = por %p75_p3, %p74_p8  ;;  %p10616_p7 = por %p11183_p5, %p80_p13 }
 0x306   : > { %p10620_p6 = por %p676_p0, %p74_p8  ;;  %p682_p9 = scmp.eq.s32.totalorder %s7071_s27, 1 }
 0x307   : > { %s11184_s10 = scalar_select %p10616_p7, 1, 0 }
 0x308   : > { %s11185_s15 = scalar_select %p10620_p6, 1, 0 }
 0x309   : > { %p8150_p10 = scmp.lt.s32.totalorder %s11178_s14, 2  ;;  %s1016_s9 = sand.u32 1, %s11179_s0  }
 0x30a   : > { %p10626_p4 = por %p682_p9, %p80_p13  ;;  %s10630_s17 = sshll.u32 %s1016_s9, 4 }
 0x30b   : > { %s7725_s13 = sshll.u32 %s11178_s14, 8  ;;  %s11187_s16 = sld [smem:[#allocation70_spill]] }
 0x30c   : > { %s11186_s8 = scalar_select %p10626_p4, 1, 0 }
 0x30d   : > { %s1020_s11 = scalar_lea.vmem [#allocation2], %s10630_s17  ;;  %p10639_p11 = pnand %p8150_p10, %p76_p2 }
 0x30e   : > { %s1028_s27 = sshll.u32 %s1020_s11, 4  ;;  %s10648_s3 = scalar_lea.hbm %s11189_s1, %s7725_s13  ;;  %s10643_s27 = int_to_ptr.vmem [resolvable:$true] %s1028_s27 }
 0x30f   : > { %s1017_s5 = scalar_lea.sflag [#allocation3], %s1016_s9  ;;  %p9648_p8 = pneg %p10639_p11 }
 0x311   : > { %s10636_s2 = scalar_lea.hbm %s11187_s16, %s7725_s13  ;;  %s9651_s19 = scalar_lea.hbm %s11187_s16, 512 }
 0x312   : > { %s9646_s7 = scalar_lea.hbm %s10636_s2, 256  ;;  %p9652_p13 = scmp.lt.u32.totalorder %s10636_s2, %s11187_s16 }
 0x313   : > { %p9647_p12 = scmp.ne.s32.totalorder %s10636_s2, %s9646_s7  ;;  %p9653_p0 = scmp.lt.u32.totalorder %s9651_s19, %s9646_s7 }
 0x314   : > { %p9655_p5 = scmp.lt.u32.totalorder %s9646_s7, %s10636_s2 }
 0x315   : > { %p9649_p1 = pnand %p9648_p8, %p9647_p12  ;;  %p9654_p2 = por %p9653_p0, %p9652_p13 }
 0x317   : > { %p9650_p3 = pneg %p9649_p1  ;;  %p9656_p9 = por %p9655_p5, %p9654_p2 }
 0x319   : > { %p9657_p10 = pnand %p9656_p9, %p9650_p3 }
 0x31b   : > { %9660 = shalt.err (!%p9657_p10)
}
 0x31c   : > { %s9661_s9 = scalar_lea.vmem %s10643_s27, 256  ;;  %s9873_s18 = smov [#allocation2]  }
 0x31d   : > { %p9662_p12 = scmp.ne.s32.totalorder %s10643_s27, %s9661_s9  ;;  %s9666_s13 = sshll.u32 %s9873_s18, 4  ;;  %s9667_s13 = int_to_ptr.vmem [resolvable:$false] %s9666_s13 }
 0x31e   : > { %s9668_s20 = scalar_lea.vmem %s9667_s13, 512  ;;  %p9669_p6 = scmp.lt.s32.totalorder %s10643_s27, %s9667_s13 }
 0x31f   : > { %p9664_p1 = pnand %p9662_p12, %p9648_p8  ;;  %p9670_p13 = scmp.lt.s32.totalorder %s9668_s20, %s9661_s9 }
 0x321   : > { %p9665_p4 = pneg %p9664_p1  ;;  %p9671_p0 = por %p9670_p13, %p9669_p6 }
 0x323   : > { %p9672_p2 = pnand %p9671_p0, %p9665_p4 }
 0x325   : > { %9675 = shalt.err (!%p9672_p2)
}
 0x326   : > { %8116 = dma.hbm_to_vmem [thread:$0]  (!%p10639_p11), %s10636_s2, 256, %s10643_s27, %s1017_s5  }
 0x327   : > { %s1035_s19 = sand.u32 1, %s11178_s14   ;;  %s1039_s21 = scalar_lea.vmem [#allocation5], %s10630_s17 }
 0x328   : > { %s1047_s7 = sshll.u32 %s1039_s21, 4  ;;  %s1036_s12 = scalar_lea.sflag [#allocation6], %s1035_s19  ;;  %s1048_s7 = int_to_ptr.vmem [resolvable:$true] %s1047_s7 }
 0x329   : > { %s9676_s4 = scalar_lea.hbm %s10648_s3, 256  ;;  %s9681_s18 = scalar_lea.hbm %s11189_s1, 512 }
 0x32a   : > { %p9677_p6 = scmp.ne.s32.totalorder %s10648_s3, %s9676_s4  ;;  %p9682_p5 = scmp.lt.u32.totalorder %s10648_s3, %s11189_s1 }
 0x32b   : > { %p9683_p9 = scmp.lt.u32.totalorder %s9681_s18, %s9676_s4  ;;  %p9685_p12 = scmp.lt.u32.totalorder %s9676_s4, %s10648_s3 }
 0x32c   : > { %p9679_p4 = pnand %p9677_p6, %p9648_p8 }
 0x32d   : > { %p9684_p10 = por %p9683_p9, %p9682_p5 }
 0x32e   : > { %p9680_p3 = pneg %p9679_p4 }
 0x32f   : > { %p9686_p1 = por %p9685_p12, %p9684_p10 }
 0x331   : > { %p9687_p13 = pnand %p9686_p1, %p9680_p3 }
 0x333   : > { %9690 = shalt.err (!%p9687_p13)
}
 0x334   : > { %s9691_s14 = scalar_lea.vmem %s1048_s7, 256  ;;  %s9874_s17 = smov [#allocation5]  }
 0x335   : > { %p9692_p0 = scmp.ne.s32.totalorder %s1048_s7, %s9691_s14  ;;  %s9696_s2 = sshll.u32 %s9874_s17, 4  ;;  %s9697_s2 = int_to_ptr.vmem [resolvable:$false] %s9696_s2 }
 0x336   : > { %s9698_s27 = scalar_lea.vmem %s9697_s2, 512  ;;  %p9699_p4 = scmp.lt.s32.totalorder %s1048_s7, %s9697_s2 }
 0x337   : > { %p9694_p2 = pnand %p9692_p0, %p9648_p8  ;;  %p9700_p7 = scmp.lt.s32.totalorder %s9698_s27, %s9691_s14 }
 0x339   : > { %p9695_p6 = pneg %p9694_p2  ;;  %p9701_p5 = por %p9700_p7, %p9699_p4 }
 0x33b   : > { %p9702_p9 = pnand %p9701_p5, %p9695_p6 }
 0x33d   : > { %9705 = shalt.err (!%p9702_p9)
}
 0x33e   : > { %8119 = dma.hbm_to_vmem [thread:$0]  (!%p10639_p11), %s10648_s3, 256, %s1048_s7, %s1036_s12  }
 0x33f   : > { %s11190_s5 = sld [smem:[#allocation69_spill]] }
 0x345   : > { %p11191_p3 = scmp.ne.s32.totalorder %s11190_s5, 0 }
 0x346   : > { %s11192_s19 = sld [smem:[#allocation65_spill]] (!%p11191_p3)  ;;  %p11193_p7 = scmp.ne.s32.totalorder (!%p11191_p3), %s11184_s10, 0 }
 0x347   : > { %1056 = sbr.rel (%p11191_p3) target bundleno = 5511 (0x1587), region = 132 }
 0x34c   : > { %s10699_s21 = sand.u32 (!%p11191_p3), 1, %s11192_s19  }
 0x34d   : > { %s10702_s4 = sshll.u32 (!%p11191_p3), %s10699_s21, 4  ;;  %s1059_s11 = scalar_lea.sflag (!%p11191_p3), [#allocation3], %s10699_s21 }
 0x34e   : > { %s10706_s9 = scalar_lea.vmem [#allocation2], %s10702_s4 }
 0x34f   : > { %9751 = dma.done.wait (%p11193_p7), %s1059_s11, 256  }
 0x350   : > { %9753 = vsyncadd (%p11193_p7), %s1059_s11, 4294967040  ;;  %s11194_s0 = sld [smem:[#allocation68_spill]]  ;;  %s1071_s12 = scalar_lea.vmem [#allocation5], %s10702_s4 }
 0x356   : > { %s1067_s3 = sand.u32 1, %s11194_s0  }
 0x357   : > { %s1068_s7 = scalar_lea.sflag [#allocation6], %s1067_s3 }
 0x358   : > { %9755 = dma.done.wait (%p11193_p7), %s1068_s7, 256  }
 0x359   : > { %9757 = vsyncadd (%p11193_p7), %s1068_s7, 4294967040  ;;  %p11195_p11 = scmp.eq.s32.totalorder %s11194_s0, 0 }
 0x35b   : > { %9759 = dma.done.wait (%p11195_p11), [#allocation6], 32   ;;  %p11196_p8 = pmov %p11195_p11 }
 0x35d   : > { %9761 = vsyncadd (%p11196_p8), [#allocation6], 4294967264  ;;  %p11197_p10 = pmov %p11196_p8 }
 0x35e   : > { %p11198_p12 = pmov %p11196_p8 }
 0x35f   : > { %9763 = dma.done.wait (%p11197_p10), [#allocation9], 64  }
 0x360   : > { %9765 = vsyncadd (%p11198_p12), [#allocation9], 4294967232  ;;  %p11199_p1 = pmov %p11196_p8 }
 0x362   : > { %9767 = dma.done.wait (%p11199_p1), [#allocation12], 12320   ;;  %p11200_p13 = pmov %p11199_p1 }
 0x363   : > { %p11201_p0 = pmov %p11199_p1 }
 0x364   : > { %9769 = vsyncadd (%p11200_p13), [#allocation12], 4294954976 }
 0x365   : > { %9771 = dma.done.wait (%p11201_p0), [#allocation15], 4192   ;;  %p11202_p2 = pmov %p11201_p0 }
 0x366   : > { %p11203_p6 = pmov %p11201_p0 }
 0x367   : > { %9773 = vsyncadd (%p11202_p2), [#allocation15], 4294963104 }
 0x368   : > { %9775 = dma.done.wait (%p11203_p6), [#allocation18], 4128   ;;  %p11204_p4 = pmov %p11201_p0 }
 0x369   : > { %p11205_p5 = pmov %p11201_p0 }
 0x36a   : > { %9777 = vsyncadd (%p11204_p4), [#allocation18], 4294963168 }
 0x36b   : > { %9779 = dma.done.wait (%p11205_p5), [#allocation21], 8224   ;;  %p11206_p9 = pmov %p11201_p0 }
 0x36c   : > { %p11207_p3 = pmov %p11201_p0 }
 0x36d   : > { %9781 = vsyncadd (%p11206_p9), [#allocation21], 4294959072 }
 0x36e   : > { %9783 = dma.done.wait (%p11207_p3), [#allocation24], 4160   ;;  %p11208_p7 = pmov %p11201_p0 }
 0x36f   : > { %p11209_p11 = pmov %p11201_p0 }
 0x370   : > { %9785 = vsyncadd (%p11208_p7), [#allocation24], 4294963136 }
 0x371   : > { %9787 = dma.done.wait (%p11209_p11), [#allocation27], 16416   ;;  %p11210_p8 = pmov %p11201_p0 }
 0x372   : > { %p11211_p10 = pmov %p11201_p0 }
 0x373   : > { %9789 = vsyncadd (%p11210_p8), [#allocation27], 4294950880 }
 0x374   : > { %9791 = dma.done.wait (%p11211_p10), [#allocation30], 16512   ;;  %p11212_p12 = pmov %p11201_p0 }
 0x375   : > { %p11213_p1 = pmov %p11201_p0 }
 0x376   : > { %9793 = vsyncadd (%p11212_p12), [#allocation30], 4294950784 }
 0x377   : > { %9795 = dma.done.wait (%p11213_p1), [#allocation33], 2080   ;;  %p11214_p13 = pmov %p11201_p0 }
 0x379   : > { %9797 = vsyncadd (%p11214_p13), [#allocation33], 4294965216 }
 0x37a   : > { %9799 = dma.done.wait (%p11201_p0), [#allocation36], 2064   ;;  %p11215_p2 = pmov %p11201_p0 }
 0x37b   : > { %p11216_p6 = pmov %p11201_p0 }
 0x37c   : > { %9801 = vsyncadd (%p11215_p2), [#allocation36], 4294965232 }
 0x37d   : > { %9803 = dma.done.wait (%p11216_p6), [#allocation39], 2080   ;;  %p11217_p4 = pmov %p11201_p0 }
 0x37e   : > { %p11218_p5 = pmov %p11201_p0 }
 0x37f   : > { %9805 = vsyncadd (%p11217_p4), [#allocation39], 4294965216 }
 0x380   : > { %9807 = dma.done.wait (%p11218_p5), [#allocation42], 2064   ;;  %p11219_p9 = pmov %p11201_p0 }
 0x381   : > { %p11220_p3 = pmov %p11201_p0 }
 0x382   : > { %9809 = vsyncadd (%p11219_p9), [#allocation42], 4294965232 }
 0x383   : > { %9811 = dma.done.wait (%p11220_p3), [#allocation45], 32   ;;  %p11221_p7 = pmov %p11201_p0 }
 0x384   : > { %v1254_v0 = vld [vmem:[%s10706_s9] sm:$0xff]  ;;  %v1255_v1 = vld [vmem:[%s10706_s9 + $0x8] sm:$0xff]  ;;  %v1258_v62 = vlaneseq  ;;  %vm9876_vm0 = vmmov 0   ;;  %vm2299_vm1 = vcmask 1043456   ;;  %vm2269_vm3 = vcmask 64512   ;;  %s7727_s10 = sshll.u32 %s11194_s0, 8 }
 0x385   : > { %9813 = vsyncadd (%p11221_p7), [#allocation45], 4294967264  ;;  %v1265_v2 = vadd.f32 %v1255_v1, %v1254_v0  ;;  %v8252_v3 = vld [vmem:[#allocation13 + $0x4] ss:$12 sps:$4 sm:$0xff]   ;;  %v8254_v4 = vld [vmem:[#allocation13] ss:$12 sps:$4 sm:$0xff]  }
 0x386   : > { %v8255_v5 = vld [vmem:[#allocation13 + $0x1c] ss:$12 sps:$4 sm:$0xff]   ;;  %1761 = vmatprep.subr.bf16.mxu0 %v8252_v3  ;;  %v8257_v6 = vld [vmem:[#allocation13 + $0x18] ss:$12 sps:$4 sm:$0xff]   ;;  %v8258_v7 = vld [vmem:[#allocation13 + $0x34] ss:$12 sps:$4 sm:$0xff]  }
 0x387   : > { %1266 = vadd.xlane.f32.xlu0 %v1265_v2  ;;  %1762 = vmatpush1.bf16.msra.mxu0 %v8254_v4  ;;  %v8278_v8 = vld [vmem:[#allocation13 + $0xc8] ss:$12 sps:$4 sm:$0xff]   ;;  %v8260_v10 = vld [vmem:[#allocation13 + $0x30] ss:$12 sps:$4 sm:$0xff]   ;;  %v8261_v11 = vld [vmem:[#allocation13 + $0x4c] ss:$12 sps:$4 sm:$0xff]  }
 0x388   : > { %1763 = vmatprep.subr.bf16.mxu0 %v8255_v5  ;;  %v8280_v9 = vld [vmem:[#allocation13 + $0x8] ss:$12 sps:$4 sm:$0xff]   ;;  %7728 = vmatprep.subr.bf16.mxu1 %v8278_v8  ;;  %v8283_v12 = vld [vmem:[#allocation13 + $0xe0] ss:$12 sps:$4 sm:$0xff]   ;;  %v8288_v14 = vld [vmem:[#allocation13 + $0xf8] ss:$12 sps:$4 sm:$0xff]  }
 0x389   : > { %7729 = vmatpush3.bf16.msra.mxu1 %v8280_v9  ;;  %v8285_v13 = vld [vmem:[#allocation13 + $0x20] ss:$12 sps:$4 sm:$0xff]   ;;  %v8263_v15 = vld [vmem:[#allocation13 + $0x48] ss:$12 sps:$4 sm:$0xff]   ;;  %v8264_v16 = vld [vmem:[#allocation13 + $0x64] ss:$12 sps:$4 sm:$0xff]  }
 0x38a   : > { %7730 = vmatprep.subr.bf16.mxu1 %v8283_v12  ;;  %v8266_v17 = vld [vmem:[#allocation13 + $0x60] ss:$12 sps:$4 sm:$0xff]   ;;  %v8267_v18 = vld [vmem:[#allocation13 + $0x7c] ss:$12 sps:$4 sm:$0xff]   ;;  %v8269_v19 = vld [vmem:[#allocation13 + $0x78] ss:$12 sps:$4 sm:$0xff]  }
 0x38b   : > { %1764 = vmatpush1.bf16.msra.mxu0 %v8257_v6  ;;  %v8270_v20 = vld [vmem:[#allocation13 + $0x94] ss:$12 sps:$4 sm:$0xff]   ;;  %v8272_v21 = vld [vmem:[#allocation13 + $0x90] ss:$12 sps:$4 sm:$0xff]   ;;  %v8273_v22 = vld [vmem:[#allocation13 + $0xac] ss:$12 sps:$4 sm:$0xff]  }
 0x38c   : > { %1765 = vmatprep.subr.bf16.mxu0 %v8258_v7  ;;  %v8275_v23 = vld [vmem:[#allocation13 + $0xa8] ss:$12 sps:$4 sm:$0xff]   ;;  %v8276_v24 = vld [vmem:[#allocation13 + $0xc4] ss:$12 sps:$4 sm:$0xff]   ;;  %v8279_v25 = vld [vmem:[#allocation13 + $0xc0] ss:$12 sps:$4 sm:$0xff]  }
 0x38d   : > { %7731 = vmatpush3.bf16.msra.mxu1 %v8285_v13  ;;  %v8281_v26 = vld [vmem:[#allocation13 + $0xdc] ss:$12 sps:$4 sm:$0xff]   ;;  %v8284_v27 = vld [vmem:[#allocation13 + $0xd8] ss:$12 sps:$4 sm:$0xff]   ;;  %v8286_v28 = vld [vmem:[#allocation13 + $0xf4] ss:$12 sps:$4 sm:$0xff]  }
 0x38e   : > { %7732 = vmatprep.subr.bf16.mxu1 %v8288_v14  ;;  %v8289_v36 = vld [vmem:[#allocation13 + $0xf0] ss:$12 sps:$4 sm:$0xff]   ;;  %v8290_v37 = vld [vmem:[#allocation13 + $0x38] ss:$12 sps:$4 sm:$0xff]   ;;  %v8294_v40 = vld [vmem:[#allocation13 + $0x108] ss:$12 sps:$4 sm:$0xff]  }
 0x38f   : > { %1766 = vmatpush1.bf16.msra.mxu0 %v8260_v10  ;;  %v8291_v38 = vld [vmem:[#allocation13 + $0x10c] ss:$12 sps:$4 sm:$0xff]   ;;  %v8293_v39 = vld [vmem:[#allocation13 + $0x110] ss:$12 sps:$4 sm:$0xff]   ;;  %v8298_v43 = vld [vmem:[#allocation13 + $0x128] ss:$12 sps:$4 sm:$0xff]  }
 0x390   : > { %1767 = vmatprep.subr.bf16.mxu0 %v8261_v11  ;;  %v8295_v41 = vld [vmem:[#allocation13 + $0x50] ss:$12 sps:$4 sm:$0xff]   ;;  %v8299_v44 = vld [vmem:[#allocation13 + $0x120] ss:$12 sps:$4 sm:$0xff]   ;;  %v8300_v45 = vld [vmem:[#allocation13 + $0x68] ss:$12 sps:$4 sm:$0xff]  }
 0x391   : > { %7733 = vmatpush3.bf16.msra.mxu1 %v8290_v37  ;;  %v8296_v42 = vld [vmem:[#allocation13 + $0x124] ss:$12 sps:$4 sm:$0xff]   ;;  %v8301_v46 = vld [vmem:[#allocation13 + $0x13c] ss:$12 sps:$4 sm:$0xff]   ;;  %v8303_v47 = vld [vmem:[#allocation13 + $0x140] ss:$12 sps:$4 sm:$0xff]  }
 0x392   : > { %7734 = vmatprep.subr.bf16.mxu1 %v8293_v39  ;;  %v8304_v48 = vld [vmem:[#allocation13 + $0x138] ss:$12 sps:$4 sm:$0xff]   ;;  %v8305_v49 = vld [vmem:[#allocation13 + $0x80] ss:$12 sps:$4 sm:$0xff]   ;;  %v8309_v52 = vld [vmem:[#allocation13 + $0x150] ss:$12 sps:$4 sm:$0xff]  }
 0x393   : > { %1768 = vmatpush1.bf16.msra.mxu0 %v8263_v15  ;;  %v8306_v50 = vld [vmem:[#allocation13 + $0x154] ss:$12 sps:$4 sm:$0xff]   ;;  %v8308_v51 = vld [vmem:[#allocation13 + $0x158] ss:$12 sps:$4 sm:$0xff]   ;;  %v8313_v55 = vld [vmem:[#allocation13 + $0x170] ss:$12 sps:$4 sm:$0xff]  }
 0x394   : > { %1769 = vmatprep.subr.bf16.mxu0 %v8264_v16  ;;  %v8310_v53 = vld [vmem:[#allocation13 + $0x98] ss:$12 sps:$4 sm:$0xff]   ;;  %v8314_v56 = vld [vmem:[#allocation13 + $0x168] ss:$12 sps:$4 sm:$0xff]   ;;  %v8315_v57 = vld [vmem:[#allocation13 + $0xb0] ss:$12 sps:$4 sm:$0xff]  }
 0x395   : > { %7735 = vmatpush3.bf16.msra.mxu1 %v8295_v41  ;;  %v8311_v54 = vld [vmem:[#allocation13 + $0x16c] ss:$12 sps:$4 sm:$0xff]   ;;  %v8318_v58 = vld [vmem:[#allocation13 + $0x184] ss:$12 sps:$4 sm:$0xff]   ;;  %v8319_v59 = vld [vmem:[#allocation13 + $0x248] ss:$12 sps:$4 sm:$0xff]  }
 0x396   : > { %7736 = vmatprep.subr.bf16.mxu1 %v8298_v43  ;;  %v1263_v3 = vld [vmem:[#allocation7] sm:$0x3]  ;;  %v1264_v4 = vld [vmem:[#allocation8] sm:$0x3]  ;;  %v8344_v37 = vld [vmem:[#allocation13 + $0x2c0] ss:$12 sps:$4 sm:$0xff]  }
 0x397   : > { %1770 = vmatpush1.bf16.msra.mxu0 %v8266_v17  ;;  %v8316_v17 = vld [vmem:[#allocation13 + $0x180] ss:$12 sps:$4 sm:$0xff]   ;;  %v8349_v41 = vld [vmem:[#allocation13 + $0x2d8] ss:$12 sps:$4 sm:$0xff]   ;;  %s1252_s18 = scalar_lea.vmem [#allocation46], %s10702_s4  ;;  %s11222_s17 = sld [smem:[#allocation94_spill]] }
 0x398   : > { %1771 = vmatprep.subr.bf16.mxu0 %v8267_v18  ;;  %v8345_v39 = vld [vmem:[#allocation13 + $0x200] ss:$12 sps:$4 sm:$0xff]   ;;  %v8350_v43 = vld [vmem:[#allocation13 + $0x218] ss:$12 sps:$4 sm:$0xff]   ;;  %s6731_s13 = sshll.u32 %s1252_s18, 4  ;;  %s6717_s27 = scalar_lea.sflag [#allocation4], %s10699_s21  ;;  %s10995_s13 = int_to_ptr.vmem [resolvable:$true] %s6731_s13 }
 0x399   : > { %7737 = vmatpush3.bf16.msra.mxu1 %v8300_v45  ;;  %v8354_v45 = vld [vmem:[#allocation13 + $0x2f0] ss:$12 sps:$4 sm:$0xff]   ;;  %s9706_s5 = scalar_lea.vmem %s10995_s13, 256  ;;  %p11223_p8 = scmp.ne.s32.totalorder %s11185_s15, 0 }
 0x39a   : > { %7738 = vmatprep.subr.bf16.mxu1 %v8303_v47  ;;  %v8355_v47 = vld [vmem:[#allocation13 + $0x230] ss:$12 sps:$4 sm:$0xff]   ;;  %p9707_p11 = scmp.ne.s32.totalorder %s10995_s13, %s9706_s5  ;;  %s9878_s19 = smov [#allocation46]  }
 0x39b   : > { %1772 = vmatpush1.bf16.msra.mxu0 %v8269_v19  ;;  %v8320_v19 = vld [vmem:[#allocation13 + $0x188] ss:$12 sps:$4 sm:$0xff]   ;;  %s9710_s4 = sshll.u32 %s9878_s19, 4  ;;  %s9711_s4 = int_to_ptr.vmem [resolvable:$false] %s9710_s4 }
 0x39c   : > { %1773 = vmatprep.subr.bf16.mxu0 %v8270_v20  ;;  %v8323_v20 = vld [vmem:[#allocation13 + $0x19c] ss:$12 sps:$4 sm:$0xff]   ;;  %p9708_p10 = pnand %p9707_p11, %p11223_p8  ;;  %s9712_s11 = scalar_lea.vmem %s9711_s4, 512 }
 0x39d   : > { %7739 = vmatpush3.bf16.msra.mxu1 %v8305_v49  ;;  %v8356_v49 = vld [vmem:[#allocation13 + $0x240] ss:$12 sps:$4 sm:$0xff]   ;;  %s10993_s2 = scalar_lea.hbm %s11222_s17, %s7727_s10  ;;  %p9713_p1 = scmp.lt.s32.totalorder %s10995_s13, %s9711_s4 }
 0x39e   : > { %7740 = vmatprep.subr.bf16.mxu1 %v8308_v51  ;;  %v8359_v51 = vld [vmem:[#allocation13 + $0x258] ss:$12 sps:$4 sm:$0xff]   ;;  %p9709_p12 = pneg %p9708_p10  ;;  %p9714_p13 = scmp.lt.s32.totalorder %s9712_s11, %s9706_s5 }
 0x39f   : > { %1774 = vmatpush1.bf16.msra.mxu0 %v8272_v21  ;;  %v8324_v21 = vld [vmem:[#allocation13 + $0x260] ss:$12 sps:$4 sm:$0xff]  }
 0x3a0   : > { %1775 = vmatprep.subr.bf16.mxu0 %v8273_v22  ;;  %v8321_v22 = vld [vmem:[#allocation13 + $0x198] ss:$12 sps:$4 sm:$0xff]   ;;  %p9715_p0 = por %p9714_p13, %p9713_p1 }
 0x3a1   : > { %7741 = vmatpush3.bf16.msra.mxu1 %v8310_v53  ;;  %v8362_v53 = vld [vmem:[#allocation13 + $0x270] ss:$12 sps:$4 sm:$0xff]  }
 0x3a2   : > { %7742 = vmatprep.subr.bf16.mxu1 %v8313_v55  ;;  %v8365_v55 = vld [vmem:[#allocation13 + $0x288] ss:$12 sps:$4 sm:$0xff]   ;;  %p9716_p2 = pnand %p9715_p0, %p9709_p12 }
 0x3a3   : > { %1776 = vmatpush1.bf16.msra.mxu0 %v8275_v23  ;;  %v8325_v23 = vld [vmem:[#allocation13 + $0x1a0] ss:$12 sps:$4 sm:$0xff]  }
 0x3a4   : > { %1777 = vmatprep.subr.bf16.mxu0 %v8276_v24  ;;  %v8328_v24 = vld [vmem:[#allocation13 + $0x1b4] ss:$12 sps:$4 sm:$0xff]  }
 0x3a5   : > { %7743 = vmatpush3.bf16.msra.mxu1 %v8315_v57  ;;  %v8368_v57 = vld [vmem:[#allocation13 + $0x2a0] ss:$12 sps:$4 sm:$0xff]  }
 0x3a6   : > { %2098 = vmatprep.subr.bf16.mxu1 %v8318_v58  ;;  %v8373_v58 = vld [vmem:[#allocation13 + $0x2bc] ss:$12 sps:$4 sm:$0xff]  }
 0x3a7   : > { %1778 = vmatpush1.bf16.msra.mxu0 %v8279_v25  ;;  %v8329_v25 = vld [vmem:[#allocation13 + $0x278] ss:$12 sps:$4 sm:$0xff]  }
 0x3a8   : > { %1779 = vmatprep.subr.bf16.mxu0 %v8281_v26  ;;  %v8326_v26 = vld [vmem:[#allocation13 + $0x1b0] ss:$12 sps:$4 sm:$0xff]  }
 0x3ab   : > { %1780 = vmatpush1.bf16.msra.mxu0 %v8284_v27  ;;  %v8330_v27 = vld [vmem:[#allocation13 + $0x1b8] ss:$12 sps:$4 sm:$0xff]  }
 0x3ac   : > { %1781 = vmatprep.subr.bf16.mxu0 %v8286_v28  ;;  %v8333_v28 = vld [vmem:[#allocation13 + $0x1cc] ss:$12 sps:$4 sm:$0xff]  }
 0x3af   : > { %1782 = vmatpush1.bf16.msra.mxu0 %v8289_v36  ;;  %v8343_v36 = vld [vmem:[#allocation13 + $0x1fc] ss:$12 sps:$4 sm:$0xff]  }
 0x3b0   : > { %1783 = vmatprep.subr.bf16.mxu0 %v8291_v38  ;;  %v8341_v38 = vld [vmem:[#allocation13 + $0x1f8] ss:$12 sps:$4 sm:$0xff]  }
 0x3b3   : > { %1784 = vmatpush1.bf16.msra.mxu0 %v8294_v40  ;;  %v8348_v40 = vld [vmem:[#allocation13 + $0x214] ss:$12 sps:$4 sm:$0xff]  }
 0x3b4   : > { %1785 = vmatprep.subr.bf16.mxu0 %v8296_v42  ;;  %v8346_v42 = vld [vmem:[#allocation13 + $0x210] ss:$12 sps:$4 sm:$0xff]  }
 0x3b7   : > { %1786 = vmatpush1.bf16.msra.mxu0 %v8299_v44  ;;  %v8353_v44 = vld [vmem:[#allocation13 + $0x22c] ss:$12 sps:$4 sm:$0xff]  }
 0x3b8   : > { %1787 = vmatprep.subr.bf16.mxu0 %v8301_v46  ;;  %v8351_v46 = vld [vmem:[#allocation13 + $0x228] ss:$12 sps:$4 sm:$0xff]  }
 0x3bb   : > { %1788 = vmatpush1.bf16.msra.mxu0 %v8304_v48  ;;  %v8358_v48 = vld [vmem:[#allocation13 + $0x244] ss:$12 sps:$4 sm:$0xff]  }
 0x3bc   : > { %1789 = vmatprep.subr.bf16.mxu0 %v8306_v50  ;;  %v8361_v50 = vld [vmem:[#allocation13 + $0x25c] ss:$12 sps:$4 sm:$0xff]  }
 0x3bf   : > { %1790 = vmatpush1.bf16.msra.mxu0 %v8309_v52  ;;  %v8364_v52 = vld [vmem:[#allocation13 + $0x274] ss:$12 sps:$4 sm:$0xff]  }
 0x3c0   : > { %1791 = vmatprep.subr.bf16.mxu0 %v8311_v54  ;;  %v8367_v54 = vld [vmem:[#allocation13 + $0x28c] ss:$12 sps:$4 sm:$0xff]  }
 0x3c3   : > { %1792 = vmatpush1.bf16.msra.mxu0 %v8314_v56  ;;  %v8370_v56 = vld [vmem:[#allocation13 + $0x2a4] ss:$12 sps:$4 sm:$0xff]  }
 0x3c4   : > { %7750 = vmatprep.subr.bf16.mxu0 %v8319_v59  ;;  %v8371_v59 = vld [vmem:[#allocation13 + $0x2b8] ss:$12 sps:$4 sm:$0xff]  }
 0x414   : > { %v1267_v29 = vpop.xlane.xlu0 %1266 }
 0x415   : > { %v1269_v30 = vmul.f32 0.00390625, %v1267_v29  ;;  %v8334_v29 = vld [vmem:[#allocation13 + $0x290] ss:$12 sps:$4 sm:$0xff]  }
 0x417   : > { %v10776_v31 = vsub.f32 %v1254_v0, %v1269_v30  ;;  %v10778_v32 = vsub.f32 %v1255_v1, %v1269_v30  ;;  %v10785_v0 = vshrl.u32 %v1258_v62, 7  ;;  %v8331_v30 = vld [vmem:[#allocation13 + $0x1c8] ss:$12 sps:$4 sm:$0xff]  }
 0x419   : > { %v1272_v33 = vmul.f32 %v10776_v31, %v10776_v31  ;;  %v1273_v34 = vmul.f32 %v10778_v32, %v10778_v32  ;;  %v10788_v1 = vsub.s32 1, %v10785_v0  ;;  %v10791_v2 = vsub.s32 0, %v10785_v0 }
 0x41b   : > { %v1274_v35 = vadd.f32 %v1273_v34, %v1272_v33  ;;  %v1290_v5 = vrot.slane %v1263_v3, %v10788_v1  ;;  %v1286_v6 = vrot.slane %v1263_v3, %v10791_v2  ;;  %v1303_v9 = vrot.slane %v1264_v4, %v10788_v1  ;;  %v8339_v33 = vld [vmem:[#allocation13 + $0x2a8] ss:$12 sps:$4 sm:$0xff]   ;;  %v8336_v34 = vld [vmem:[#allocation13 + $0x1e0] ss:$12 sps:$4 sm:$0xff]  }
 0x41c   : > { %v1299_v11 = vrot.slane %v1264_v4, %v10791_v2  ;;  %v8377_v3 = vld [vmem:[#allocation13 + $0x2e8] ss:$12 sps:$4 sm:$0xff]   ;;  %v9875_v4 = vmov 0.0  }
 0x41d   : > { %1275 = vadd.xlane.f32.xlu0 %v1274_v35  ;;  %v8340_v35 = vld [vmem:[#allocation13 + $0x1e8] ss:$12 sps:$4 sm:$0xff]  }
 0x4aa   : > { %v1276_v60 = vpop.xlane.xlu0 %1275 }
 0x4ab   : > { %v1277_v61 = vmul.f32 0.00390625, %v1276_v60  ;;  %v8376_v60 = vld [vmem:[#allocation13 + $0x2d4] ss:$12 sps:$4 sm:$0xff]  }
 0x4ad   : > { %v1278_v63 = vadd.f32 1e-05, %v1277_v61  ;;  %v8374_v61 = vld [vmem:[#allocation13 + $0x2d0] ss:$12 sps:$4 sm:$0xff]  }
 0x4af   : > { %8876 = vrsqrt.f32 %v1278_v63  ;;  %v8379_v63 = vld [vmem:[#allocation13 + $0x2ec] ss:$12 sps:$4 sm:$0xff]  }
 0x4b9   : > { %v8877_v7 = vpop.eup %8876 }
 0x4ba   : > { %v1281_v8 = vmul.f32 %v8877_v7, %v10778_v32  ;;  %v1280_v10 = vmul.f32 %v8877_v7, %v10776_v31  ;;  %v8335_v31 = vld [vmem:[#allocation13 + $0x1d0] ss:$12 sps:$4 sm:$0xff]  }
 0x4bb   : > { %v8338_v32 = vld [vmem:[#allocation13 + $0x1e4] ss:$12 sps:$4 sm:$0xff]  }
 0x4bc   : > { %v1294_v12 = vmul.f32 %v1290_v5, %v1281_v8  ;;  %v1293_v13 = vmul.f32 %v1286_v6, %v1280_v10  ;;  %v1436_v5 = vld [vmem:[#allocation14] sm:$0x7]  ;;  %v10812_v6 = vsub.s32 2, %v10785_v0 }
 0x4bd   : > { %v1482_v7 = vrot.slane %v1436_v5, %v10788_v1 }
 0x4be   : > { %v1307_v14 = vadd.f32 %v1303_v9, %v1294_v12  ;;  %v1306_v15 = vadd.f32 %v1299_v11, %v1293_v13  ;;  %v1486_v11 = vrot.slane %v1436_v5, %v10812_v6 }
 0x4c0   : > { %v1472_v16 = vpack.c.bf16 %v1307_v14, %v1307_v14  ;;  %v10799_v18 = vpack.c.bf16 %v1306_v15, %v1306_v15 }
 0x4c2   : > { %1793 = vmatprep.mubr.bf16.mxu0 %v1472_v16  ;;  %1834 = vmatprep.mubr.bf16.mxu1 %v1472_v16 }
 0x4c3   : > { %1794 = vmatmul.mubr.bf16.vlgmr.msra.gmra.mrb[0].mxu0 %v10799_v18  ;;  %1835 = vmatmul.mubr.bf16.vlgmr.msra.gmra.mrb[0].mxu1 %v10799_v18 }
 0x4c4   : > { %2099 = vmatpush1.bf16.msra.mxu1 %v8316_v17  ;;  %7751 = vmatpush3.bf16.msra.mxu0 %v8320_v19  ;;  %v1478_v17 = vrot.slane %v1436_v5, %v10791_v2 }
 0x4c5   : > { %2130 = vmatprep.mubr.bf16.mxu1 %v1472_v16  ;;  %2171 = vmatprep.mubr.bf16.mxu0 %v1472_v16 }
 0x4c6   : > { %2100 = vmatprep.subr.bf16.mxu1 %v8323_v20  ;;  %7752 = vmatprep.subr.bf16.mxu0 %v8324_v21 }
 0x4c8   : > { %2101 = vmatpush1.bf16.msra.mxu1 %v8321_v22  ;;  %7753 = vmatpush3.bf16.msra.mxu0 %v8325_v23 }
 0x4c9   : > { %2102 = vmatprep.subr.bf16.mxu1 %v8328_v24  ;;  %7754 = vmatprep.subr.bf16.mxu0 %v8329_v25 }
 0x4cc   : > { %2103 = vmatpush1.bf16.msra.mxu1 %v8326_v26  ;;  %7755 = vmatpush3.bf16.msra.mxu0 %v8330_v27 }
 0x4cd   : > { %2104 = vmatprep.subr.bf16.mxu1 %v8333_v28  ;;  %7756 = vmatprep.subr.bf16.mxu0 %v8334_v29 }
 0x4d0   : > { %2105 = vmatpush1.bf16.msra.mxu1 %v8331_v30  ;;  %7757 = vmatpush3.bf16.msra.mxu0 %v8335_v31  ;;  %v1437_v31 = vld [vmem:[#allocation14 + $0x3] sm:$0x7] }
 0x4d1   : > { %2106 = vmatprep.subr.bf16.mxu1 %v8338_v32  ;;  %7758 = vmatprep.subr.bf16.mxu0 %v8339_v33  ;;  %v1494_v32 = vrot.slane %v1437_v31, %v10788_v1 }
 0x4d4   : > { %2107 = vmatpush1.bf16.msra.mxu1 %v8336_v34  ;;  %7759 = vmatpush3.bf16.msra.mxu0 %v8340_v35  ;;  %v1498_v34 = vrot.slane %v1437_v31, %v10812_v6 }
 0x4d5   : > { %2108 = vmatprep.subr.bf16.mxu1 %v8343_v36  ;;  %7760 = vmatprep.subr.bf16.mxu0 %v8344_v37 }
 0x4d8   : > { %2109 = vmatpush1.bf16.msra.mxu1 %v8341_v38  ;;  %7761 = vmatpush3.bf16.msra.mxu0 %v8345_v39  ;;  %v1490_v38 = vrot.slane %v1437_v31, %v10791_v2  ;;  %v8401_v31 = vld [vmem:[#allocation16 + $0x70] ss:$8 sps:$4 sm:$0xff]  }
 0x4d9   : > { %2110 = vmatprep.subr.bf16.mxu1 %v8348_v40  ;;  %7762 = vmatprep.subr.bf16.mxu0 %v8349_v41 }
 0x4dc   : > { %2111 = vmatpush1.bf16.msra.mxu1 %v8346_v42  ;;  %7763 = vmatpush3.bf16.msra.mxu0 %v8350_v43 }
 0x4dd   : > { %2112 = vmatprep.subr.bf16.mxu1 %v8353_v44  ;;  %7764 = vmatprep.subr.bf16.mxu0 %v8354_v45 }
 0x4e0   : > { %2113 = vmatpush1.bf16.msra.mxu1 %v8351_v46  ;;  %7765 = vmatpush3.bf16.msra.mxu0 %v8355_v47  ;;  %v1261_v46 = vand.u32 127, %v1258_v62 }
 0x4e1   : > { %2114 = vmatprep.subr.bf16.mxu1 %v8358_v48  ;;  %7876 = vmatprep.subr.bf16.mxu0 %v9875_v4 }
 0x4e2   : > { %vm1262_vm2 = vcmp.le.s32.totalorder %v1261_v46, %v10785_v0  ;;  %v8416_v46 = vld [vmem:[#allocation16 + $0xc0] ss:$8 sps:$4 sm:$0xff]  }
 0x4e3   : > { %2172 = vmatmul.mubr.bf16.vlgmr.msra.gmra.mrb[4].mxu0 %v10799_v18 }
 0x4e4   : > { %2115 = vmatpush1.bf16.msra.mxu1 %v8356_v49  ;;  %7878 = vmatprep.mubr.msk.bf16.mxu0 %vm9876_vm0, %v9875_v4 }
 0x4e5   : > { %2116 = vmatprep.subr.bf16.mxu1 %v8361_v50 }
 0x4e8   : > { %2117 = vmatpush1.bf16.msra.mxu1 %v8359_v51 }
 0x4e9   : > { %2118 = vmatprep.subr.bf16.mxu1 %v8364_v52 }
 0x4ec   : > { %2119 = vmatpush1.bf16.msra.mxu1 %v8362_v53 }
 0x4ed   : > { %2120 = vmatprep.subr.bf16.mxu1 %v8367_v54 }
 0x4f0   : > { %2121 = vmatpush1.bf16.msra.mxu1 %v8365_v55 }
 0x4f1   : > { %2122 = vmatprep.subr.bf16.mxu1 %v8370_v56 }
 0x4f4   : > { %2123 = vmatpush1.bf16.msra.mxu1 %v8368_v57 }
 0x4f5   : > { %2124 = vmatprep.subr.bf16.mxu1 %v8373_v58 }
 0x4f8   : > { %2125 = vmatpush1.bf16.msra.mxu1 %v8371_v59 }
 0x4f9   : > { %2126 = vmatprep.subr.bf16.mxu1 %v8376_v60 }
 0x4fc   : > { %2127 = vmatpush1.bf16.msra.mxu1 %v8374_v61 }
 0x4fd   : > { %2128 = vmatprep.subr.bf16.mxu1 %v8379_v63 }
 0x500   : > { %2129 = vmatpush1.bf16.msra.mxu1 %v8377_v3 }
 0x501   : > { %7882 = vmatprep.subr.bf16.mxu1 %v9875_v4 }
 0x503   : > { %2131 = vmatmul.mubr.bf16.vlgmr.msra.gmra.mrb[4].mxu1 %v10799_v18 }
 0x504   : > { %7884 = vmatprep.mubr.msk.bf16.mxu1 %vm9876_vm0, %v9875_v4 }
 0x596   : > { %v1795_v8 = vpop.f32.mrb[0].mxu0  ;;  %v7744_v9 = vpop.f32.mrb[0].mxu1 }
 0x597   : > { %v1797_v10 = vpop.f32.mrb[1].mxu0  ;;  %v7745_v12 = vpop.f32.mrb[1].mxu1  ;;  %v1796_v22 = vadd.f32 %v1795_v8, %v1478_v17 }
 0x598   : > { %v1798_v13 = vadd.f32 %v1797_v10, %v1482_v7  ;;  %v7746_v14 = vadd.f32 %v7745_v12, %v7744_v9  ;;  %v1799_v15 = vpop.f32.mrb[2].mxu0  ;;  %v7747_v16 = vpop.f32.mrb[2].mxu1  ;;  %v8382_v12 = vld [vmem:[#allocation16 + $0x4] ss:$8 sps:$4 sm:$0xff]  }
 0x599   : > { %v1800_v18 = vpop.f32.mrb[3].mxu0  ;;  %v7748_v19 = vpop.f32.mrb[3].mxu1  ;;  %v2179_v24 = vpack.c.bf16 %v1796_v22, %v1796_v22  ;;  %v8380_v16 = vld [vmem:[#allocation16] ss:$8 sps:$4 sm:$0xff]   ;;  %v8391_v22 = vld [vmem:[#allocation16 + $0x34] ss:$8 sps:$4 sm:$0xff]  }
 0x59a   : > { %v2181_v20 = vpack.c.bf16 %v1798_v13, %v1798_v13  ;;  %v1837_v21 = vadd.f32 %v7746_v14, %v1486_v11  ;;  %v8385_v18 = vld [vmem:[#allocation16 + $0x14] ss:$8 sps:$4 sm:$0xff]   ;;  %v8383_v19 = vld [vmem:[#allocation16 + $0x10] ss:$8 sps:$4 sm:$0xff]  }
 0x59c   : > { %7877 = vmatpush3.bf16.xpose.msra.mxu0 %v2181_v20  ;;  %v2294_v23 = vpack.c.bf16 %v1837_v21, %v1837_v21  ;;  %v8388_v20 = vld [vmem:[#allocation16 + $0x24] ss:$8 sps:$4 sm:$0xff]   ;;  %v8386_v21 = vld [vmem:[#allocation16 + $0x20] ss:$8 sps:$4 sm:$0xff]  }
 0x59d   : > { %7888 = vmatprep.subr.bf16.mxu0 %v9875_v4 }
 0x59e   : > { %v2301_v25 = vsel %vm2299_vm1, %v2294_v23, 0  ;;  %v8389_v23 = vld [vmem:[#allocation16 + $0x30] ss:$8 sps:$4 sm:$0xff]  }
 0x5a3   : > { %7879 = vmatmul.mubr.bf16.vlgmr.msra.gmra.mrb[8].mxu0 %v2179_v24  ;;  %v8394_v24 = vld [vmem:[#allocation16 + $0x44] ss:$8 sps:$4 sm:$0xff]  }
 0x5a4   : > { %7889 = vmatpush3.bf16.msra.mxu0 %v2301_v25  ;;  %7890 = vmatprep.mubr.msk.bf16.mxu0 %vm9876_vm0, %v9875_v4  ;;  %v8392_v25 = vld [vmem:[#allocation16 + $0x40] ss:$8 sps:$4 sm:$0xff]  }
 0x5a5   : > { %2471 = vmatprep.subr.bf16.mxu0 %v8382_v12  ;;  %v8436_v12 = vld [vmem:[#allocation34 + $0x60] sm:$0xff]  }
 0x5b6   : > { %v7766_v26 = vpop.f32.mrb[4].mxu0 }
 0x5b7   : > { %v7767_v27 = vpop.f32.mrb[5].mxu0 }
 0x5b8   : > { %v7768_v28 = vadd.f32 %v7767_v27, %v7766_v26  ;;  %v7769_v29 = vpop.f32.mrb[6].mxu0  ;;  %v8397_v26 = vld [vmem:[#allocation16 + $0x54] ss:$8 sps:$4 sm:$0xff]   ;;  %v8395_v27 = vld [vmem:[#allocation16 + $0x50] ss:$8 sps:$4 sm:$0xff]  }
 0x5b9   : > { %v7770_v30 = vpop.f32.mrb[7].mxu0  ;;  %v8398_v29 = vld [vmem:[#allocation16 + $0x60] ss:$8 sps:$4 sm:$0xff]  }
 0x5ba   : > { %v2174_v41 = vadd.f32 %v7768_v28, %v1498_v34  ;;  %v8400_v28 = vld [vmem:[#allocation16 + $0x64] ss:$8 sps:$4 sm:$0xff]   ;;  %v8403_v30 = vld [vmem:[#allocation16 + $0x74] ss:$8 sps:$4 sm:$0xff]  }
 0x5bc   : > { %v2295_v43 = vpack.c.bf16 %v2174_v41, %v2174_v41  ;;  %v8412_v41 = vld [vmem:[#allocation16 + $0xa4] ss:$8 sps:$4 sm:$0xff]  }
 0x5be   : > { %v2347_v45 = vsel %vm2299_vm1, %v2295_v43, 0  ;;  %v8415_v43 = vld [vmem:[#allocation16 + $0xb4] ss:$8 sps:$4 sm:$0xff]  }
 0x5d6   : > { %v2132_v33 = vpop.f32.mrb[4].mxu1 }
 0x5d7   : > { %v2134_v35 = vpop.f32.mrb[5].mxu1  ;;  %v2133_v42 = vadd.f32 %v2132_v33, %v1490_v38  ;;  %v8406_v38 = vld [vmem:[#allocation16 + $0x84] ss:$8 sps:$4 sm:$0xff]  }
 0x5d8   : > { %v2135_v36 = vadd.f32 %v2134_v35, %v1494_v32  ;;  %v2136_v37 = vpop.f32.mrb[6].mxu1 }
 0x5d9   : > { %v2137_v39 = vpop.f32.mrb[7].mxu1  ;;  %v2180_v44 = vpack.c.bf16 %v2133_v42, %v2133_v42  ;;  %v8404_v37 = vld [vmem:[#allocation16 + $0x80] ss:$8 sps:$4 sm:$0xff]  }
 0x5da   : > { %v2182_v40 = vpack.c.bf16 %v2135_v36, %v2135_v36  ;;  %v9877_v36 = vmov 0   ;;  %v8409_v39 = vld [vmem:[#allocation16 + $0x94] ss:$8 sps:$4 sm:$0xff]   ;;  %v8410_v42 = vld [vmem:[#allocation16 + $0xa0] ss:$8 sps:$4 sm:$0xff]  }
 0x5dc   : > { %7883 = vmatpush3.bf16.xpose.msra.mxu1 %v2182_v40  ;;  %v8407_v40 = vld [vmem:[#allocation16 + $0x90] ss:$8 sps:$4 sm:$0xff]  }
 0x5dd   : > { %7894 = vmatprep.subr.bf16.mxu1 %v9875_v4 }
 0x5e3   : > { %7885 = vmatmul.mubr.bf16.vlgmr.msra.gmra.mrb[8].mxu1 %v2180_v44  ;;  %v8413_v44 = vld [vmem:[#allocation16 + $0xb0] ss:$8 sps:$4 sm:$0xff]  }
 0x5e4   : > { %7895 = vmatpush3.bf16.msra.mxu1 %v2347_v45  ;;  %7896 = vmatprep.mubr.msk.bf16.mxu1 %vm9876_vm0, %v9875_v4  ;;  %v8418_v45 = vld [vmem:[#allocation16 + $0xc4] ss:$8 sps:$4 sm:$0xff]  }
 0x5e5   : > { %2592 = vmatprep.subr.bf16.mxu1 %v8406_v38  ;;  %v8917_v38 = vld [vmem:[%s10706_s9 + $0x8] sm:$0xff] }
 0x676   : > { %v2217_v47 = vpop.f32.mrb[8].mxu0 }
 0x677   : > { %v2263_v48 = vmul.f32 0.088388346, %v2217_v47  ;;  %v7880_v49 = vpop.f32.mrb[9].mxu0  ;;  %v8421_v47 = vld [vmem:[#allocation16 + $0xd4] ss:$8 sps:$4 sm:$0xff]  }
 0x678   : > { %v2220_v50 = vpop.f32.mrb[10].mxu0  ;;  %v8424_v49 = vld [vmem:[#allocation16 + $0xe4] ss:$8 sps:$4 sm:$0xff]  }
 0x679   : > { %v7881_v51 = vpop.f32.mrb[11].mxu0  ;;  %v2267_v52 = vsel %vm1262_vm2, %v2263_v48, -1e+30  ;;  %v8419_v48 = vld [vmem:[#allocation16 + $0xd0] ss:$8 sps:$4 sm:$0xff]  }
 0x67a   : > { %v2270_v53 = vsel %vm2269_vm3, %v2267_v52, -inf  ;;  %v8422_v50 = vld [vmem:[#allocation16 + $0xe0] ss:$8 sps:$4 sm:$0xff]   ;;  %v8427_v51 = vld [vmem:[#allocation16 + $0xf4] ss:$8 sps:$4 sm:$0xff]  }
 0x67b   : > { %2271 = vmax.xlane.f32.xlu1 %v2270_v53 }
 0x6b6   : > { %v2257_v54 = vpop.f32.mrb[8].mxu1 }
 0x6b7   : > { %v2264_v55 = vmul.f32 0.088388346, %v2257_v54  ;;  %v7886_v56 = vpop.f32.mrb[9].mxu1 }
 0x6b8   : > { %v2260_v57 = vpop.f32.mrb[10].mxu1 }
 0x6b9   : > { %v7887_v58 = vpop.f32.mrb[11].mxu1  ;;  %v2268_v59 = vsel %vm1262_vm2, %v2264_v55, -1e+30 }
 0x6ba   : > { %v2273_v62 = vsel %vm2269_vm3, %v2268_v59, -inf }
 0x6bb   : > { %2274 = vmax.xlane.f32.xlu1 %v2273_v62 }
 0x708   : > { %v2272_v60 = vpop.xlane.xlu1 %2271 }
 0x709   : > { %v2276_v61 = vsub.f32 %v2267_v52, %v2272_v60  ;;  %v8425_v52 = vld [vmem:[#allocation16 + $0xf0] ss:$8 sps:$4 sm:$0xff]  }
 0x70b   : > { %v2278_v63 = vmul.f32 1.442695, %v2276_v61 }
 0x70d   : > { %8878 = vpow2.f32 %v2278_v63  ;;  %v8428_v63 = vld [vmem:[#allocation34 + $0x40] sm:$0xff]  }
 0x717   : > { %v8879_v3 = vpop.eup %8878 }
 0x718   : > { %v2282_v5 = vsel %vm2269_vm3, %v8879_v3, 0.0 }
 0x719   : > { %2283 = vadd.xlane.f32.xlu0 %v2282_v5  ;;  %v8430_v5 = vld [vmem:[#allocation34 + $0x48] sm:$0xff]  }
 0x748   : > { %v2275_v7 = vpop.xlane.xlu1 %2274 }
 0x749   : > { %v2277_v8 = vsub.f32 %v2268_v59, %v2275_v7  ;;  %v8431_v7 = vld [vmem:[#allocation34 + $0x8] sm:$0xff]  }
 0x74b   : > { %v2280_v9 = vmul.f32 1.442695, %v2277_v8  ;;  %v8432_v8 = vld [vmem:[#allocation34 + $0x50] sm:$0xff]  }
 0x74d   : > { %8880 = vpow2.f32 %v2280_v9  ;;  %v8433_v9 = vld [vmem:[#allocation34 + $0x10] sm:$0xff]  }
 0x757   : > { %v8881_v10 = vpop.eup %8880 }
 0x758   : > { %v2285_v11 = vsel %vm2269_vm3, %v8881_v10, 0.0 }
 0x759   : > { %2286 = vadd.xlane.f32.xlu1 %v2285_v11  ;;  %v8435_v11 = vld [vmem:[#allocation34 + $0x18] sm:$0xff]  }
 0x7a6   : > { %v2284_v13 = vpop.xlane.xlu0 %2283 }
 0x7a7   : > { %8882 = vrcp.f32 %v2284_v13  ;;  %v8437_v13 = vld [vmem:[#allocation34 + $0x20] sm:$0xff]  }
 0x7b1   : > { %v8883_v14 = vpop.eup %8882 }
 0x7b2   : > { %v2290_v15 = vmul.f32 %v8883_v14, %v8879_v3  ;;  %v8429_v3 = vld [vmem:[#allocation34] sm:$0xff]   ;;  %v8438_v14 = vld [vmem:[#allocation34 + $0x68] sm:$0xff]  }
 0x7b4   : > { %v2292_v17 = vpack.c.bf16 %v2290_v15, %v2290_v15  ;;  %v8439_v15 = vld [vmem:[#allocation34 + $0x28] sm:$0xff]  }
 0x7b6   : > { %7891 = vmatmul.mubr.msk.bf16.vlgmr.msra.gmra.mrb[12].mxu0 %vm2269_vm3, %v2292_v17  ;;  %v8441_v17 = vld [vmem:[#allocation34 + $0x30] sm:$0xff]  }
 0x7b7   : > { %2472 = vmatpush1.bf16.msra.mxu0 %v8380_v16  ;;  %2503 = vmatprep.mubr.bf16.mxu0 %v9877_v36  ;;  %v8440_v16 = vld [vmem:[#allocation34 + $0x70] sm:$0xff]  }
 0x7b8   : > { %2473 = vmatprep.subr.bf16.mxu0 %v8385_v18  ;;  %v8442_v18 = vld [vmem:[#allocation34 + $0x78] sm:$0xff]  }
 0x7bb   : > { %2474 = vmatpush1.bf16.msra.mxu0 %v8383_v19  ;;  %v8443_v19 = vld [vmem:[#allocation34 + $0x38] sm:$0xff]  }
 0x7bc   : > { %2475 = vmatprep.subr.bf16.mxu0 %v8388_v20 }
 0x7bf   : > { %2476 = vmatpush1.bf16.msra.mxu0 %v8386_v21 }
 0x7c0   : > { %2477 = vmatprep.subr.bf16.mxu0 %v8391_v22 }
 0x7c3   : > { %2478 = vmatpush1.bf16.msra.mxu0 %v8389_v23 }
 0x7c4   : > { %2479 = vmatprep.subr.bf16.mxu0 %v8394_v24  ;;  %v1470_v24 = vld [vmem:[#allocation17] sm:$0x3] }
 0x7c7   : > { %2480 = vmatpush1.bf16.msra.mxu0 %v8392_v25  ;;  %v2639_v25 = vrot.slane %v1470_v24, %v10791_v2 }
 0x7c8   : > { %2481 = vmatprep.subr.bf16.mxu0 %v8397_v26 }
 0x7cb   : > { %2482 = vmatpush1.bf16.msra.mxu0 %v8395_v27  ;;  %v2643_v27 = vrot.slane %v1470_v24, %v10788_v1 }
 0x7cc   : > { %2483 = vmatprep.subr.bf16.mxu0 %v8400_v28 }
 0x7cf   : > { %2484 = vmatpush1.bf16.msra.mxu0 %v8398_v29 }
 0x7d0   : > { %2485 = vmatprep.subr.bf16.mxu0 %v8403_v30 }
 0x7d3   : > { %2486 = vmatpush1.bf16.msra.mxu0 %v8401_v31 }
 0x7d4   : > { %7780 = vmatprep.subr.bf16.mxu0 %v8428_v63  ;;  %v8476_v63 = vld [vmem:[#allocation19 + $0x50] sm:$0xff]  }
 0x7e6   : > { %v2287_v32 = vpop.xlane.xlu1 %2286 }
 0x7e7   : > { %8884 = vrcp.f32 %v2287_v32 }
 0x7f1   : > { %v8885_v33 = vpop.eup %8884 }
 0x7f2   : > { %v2291_v34 = vmul.f32 %v8885_v33, %v8881_v10  ;;  %v8434_v10 = vld [vmem:[#allocation34 + $0x58] sm:$0xff]  }
 0x7f4   : > { %v2293_v35 = vpack.c.bf16 %v2291_v34, %v2291_v34 }
 0x7f6   : > { %7897 = vmatmul.mubr.msk.bf16.vlgmr.msra.gmra.mrb[12].mxu1 %vm2269_vm3, %v2293_v35  ;;  %v8916_v35 = vld [vmem:[%s10706_s9] sm:$0xff] }
 0x7f7   : > { %2624 = vmatprep.mubr.bf16.mxu1 %v9877_v36  ;;  %2593 = vmatpush1.bf16.msra.mxu1 %v8404_v37 }
 0x7f8   : > { %2594 = vmatprep.subr.bf16.mxu1 %v8409_v39 }
 0x7fb   : > { %2595 = vmatpush1.bf16.msra.mxu1 %v8407_v40 }
 0x7fc   : > { %2596 = vmatprep.subr.bf16.mxu1 %v8412_v41 }
 0x7ff   : > { %2597 = vmatpush1.bf16.msra.mxu1 %v8410_v42  ;;  %v8446_v42 = vld [vmem:[#allocation37 + $0x4] ss:$8 sps:$4 sm:$0xff]  }
 0x800   : > { %2598 = vmatprep.subr.bf16.mxu1 %v8415_v43  ;;  %v8444_v43 = vld [vmem:[#allocation37] ss:$8 sps:$4 sm:$0xff]  }
 0x803   : > { %2599 = vmatpush1.bf16.msra.mxu1 %v8413_v44  ;;  %v8449_v44 = vld [vmem:[#allocation37 + $0x14] ss:$8 sps:$4 sm:$0xff]  }
 0x804   : > { %2600 = vmatprep.subr.bf16.mxu1 %v8418_v45  ;;  %v8447_v45 = vld [vmem:[#allocation37 + $0x10] ss:$8 sps:$4 sm:$0xff]  }
 0x807   : > { %2601 = vmatpush1.bf16.msra.mxu1 %v8416_v46  ;;  %v8452_v46 = vld [vmem:[#allocation37 + $0x24] ss:$8 sps:$4 sm:$0xff]  }
 0x808   : > { %2602 = vmatprep.subr.bf16.mxu1 %v8421_v47  ;;  %v8450_v47 = vld [vmem:[#allocation37 + $0x20] ss:$8 sps:$4 sm:$0xff]  }
 0x80b   : > { %2603 = vmatpush1.bf16.msra.mxu1 %v8419_v48  ;;  %v8453_v48 = vld [vmem:[#allocation37 + $0x30] ss:$8 sps:$4 sm:$0xff]  }
 0x80c   : > { %2604 = vmatprep.subr.bf16.mxu1 %v8424_v49  ;;  %v8455_v49 = vld [vmem:[#allocation37 + $0x34] ss:$8 sps:$4 sm:$0xff]  }
 0x80f   : > { %2605 = vmatpush1.bf16.msra.mxu1 %v8422_v50  ;;  %v8458_v50 = vld [vmem:[#allocation37 + $0x44] ss:$8 sps:$4 sm:$0xff]  }
 0x810   : > { %2606 = vmatprep.subr.bf16.mxu1 %v8427_v51  ;;  %v8456_v51 = vld [vmem:[#allocation37 + $0x40] ss:$8 sps:$4 sm:$0xff]  }
 0x813   : > { %2607 = vmatpush1.bf16.msra.mxu1 %v8425_v52  ;;  %v8461_v52 = vld [vmem:[#allocation37 + $0x54] ss:$8 sps:$4 sm:$0xff]  }
 0x814   : > { %2945 = vmatprep.subr.bf16.mxu1 %v8446_v42  ;;  %v8491_v42 = vld [vmem:[#allocation19 + $0xa8] sm:$0xff]  }
 0x889   : > { %v2337_v53 = vpop.f32.mrb[12].mxu0 }
 0x88a   : > { %v2389_v54 = vpack.c.bf16 %v2337_v53, %v2337_v53  ;;  %v7892_v55 = vpop.f32.mrb[13].mxu0  ;;  %v8459_v53 = vld [vmem:[#allocation37 + $0x50] ss:$8 sps:$4 sm:$0xff]  }
 0x88b   : > { %v2340_v56 = vpop.f32.mrb[14].mxu0  ;;  %v8462_v55 = vld [vmem:[#allocation37 + $0x60] ss:$8 sps:$4 sm:$0xff]  }
 0x88c   : > { %v7893_v57 = vpop.f32.mrb[15].mxu0  ;;  %2504 = vmatmul.mubr.bf16.vlgmr.msra.gmra.mrb[16].mxu0 %v2389_v54  ;;  %v8464_v54 = vld [vmem:[#allocation37 + $0x64] ss:$8 sps:$4 sm:$0xff]   ;;  %v8467_v56 = vld [vmem:[#allocation37 + $0x74] ss:$8 sps:$4 sm:$0xff]  }
 0x88d   : > { %7781 = vmatpush3.bf16.msra.mxu0 %v8429_v3  ;;  %v8465_v57 = vld [vmem:[#allocation37 + $0x70] ss:$8 sps:$4 sm:$0xff]   ;;  %v8478_v3 = vld [vmem:[#allocation19 + $0x10] sm:$0xff]  }
 0x88e   : > { %7782 = vmatprep.subr.bf16.mxu0 %v8430_v5  ;;  %v8480_v5 = vld [vmem:[#allocation19 + $0x58] sm:$0xff]  }
 0x891   : > { %7783 = vmatpush3.bf16.msra.mxu0 %v8431_v7  ;;  %v8482_v7 = vld [vmem:[#allocation19 + $0x18] sm:$0xff]  }
 0x892   : > { %7784 = vmatprep.subr.bf16.mxu0 %v8432_v8  ;;  %v8484_v8 = vld [vmem:[#allocation19 + $0x60] sm:$0xff]  }
 0x895   : > { %7785 = vmatpush3.bf16.msra.mxu0 %v8433_v9  ;;  %v8486_v9 = vld [vmem:[#allocation19 + $0x20] sm:$0xff]  }
 0x896   : > { %7786 = vmatprep.subr.bf16.mxu0 %v8434_v10  ;;  %v8488_v10 = vld [vmem:[#allocation19 + $0x68] sm:$0xff]  }
 0x899   : > { %7787 = vmatpush3.bf16.msra.mxu0 %v8435_v11  ;;  %v8490_v11 = vld [vmem:[#allocation19 + $0x28] sm:$0xff]  }
 0x89a   : > { %7788 = vmatprep.subr.bf16.mxu0 %v8436_v12 }
 0x89d   : > { %7789 = vmatpush3.bf16.msra.mxu0 %v8437_v13  ;;  %v7266_v13 = vld [vmem:[#allocation35] ss:$0 sm:$0xff] }
 0x89e   : > { %7790 = vmatprep.subr.bf16.mxu0 %v8438_v14 }
 0x8a1   : > { %7791 = vmatpush3.bf16.msra.mxu0 %v8439_v15 }
 0x8a2   : > { %7792 = vmatprep.subr.bf16.mxu0 %v8440_v16 }
 0x8a5   : > { %7793 = vmatpush3.bf16.msra.mxu0 %v8441_v17 }
 0x8a6   : > { %7794 = vmatprep.subr.bf16.mxu0 %v8442_v18 }
 0x8a9   : > { %7795 = vmatpush3.bf16.msra.mxu0 %v8443_v19 }
 0x8c9   : > { %v2383_v58 = vpop.f32.mrb[12].mxu1 }
 0x8ca   : > { %v2390_v59 = vpack.c.bf16 %v2383_v58, %v2383_v58  ;;  %v7898_v62 = vpop.f32.mrb[13].mxu1  ;;  %v8468_v58 = vld [vmem:[#allocation19 + $0x40] sm:$0xff]  }
 0x8cb   : > { %v2386_v60 = vpop.f32.mrb[14].mxu1  ;;  %v8470_v62 = vld [vmem:[#allocation19] sm:$0xff]   ;;  %7802 = vmatprep.subr.bf16.mxu0 %v8468_v58 }
 0x8cc   : > { %v7899_v61 = vpop.f32.mrb[15].mxu1  ;;  %2625 = vmatmul.mubr.bf16.vlgmr.msra.gmra.mrb[16].mxu1 %v2390_v59  ;;  %v8469_v59 = vld [vmem:[#allocation19 + $0xc0] sm:$0xff]   ;;  %v8472_v60 = vld [vmem:[#allocation19 + $0x48] sm:$0xff]  }
 0x8cd   : > { %2977 = vmatprep.mubr.bf16.mxu1 %v9877_v36  ;;  %2946 = vmatpush1.bf16.msra.mxu1 %v8444_v43  ;;  %v8474_v61 = vld [vmem:[#allocation19 + $0x8] sm:$0xff]   ;;  %v8492_v43 = vld [vmem:[#allocation19 + $0x70] sm:$0xff]  }
 0x8ce   : > { %2947 = vmatprep.subr.bf16.mxu1 %v8449_v44  ;;  %v8493_v44 = vld [vmem:[#allocation19 + $0xf0] sm:$0xff]  }
 0x8d1   : > { %2948 = vmatpush1.bf16.msra.mxu1 %v8447_v45  ;;  %v8494_v45 = vld [vmem:[#allocation19 + $0x30] sm:$0xff]  }
 0x8d2   : > { %2949 = vmatprep.subr.bf16.mxu1 %v8452_v46  ;;  %v8495_v46 = vld [vmem:[#allocation19 + $0xb0] sm:$0xff]  }
 0x8d5   : > { %2950 = vmatpush1.bf16.msra.mxu1 %v8450_v47  ;;  %v8496_v47 = vld [vmem:[#allocation19 + $0x78] sm:$0xff]  }
 0x8d6   : > { %2951 = vmatprep.subr.bf16.mxu1 %v8455_v49  ;;  %v8498_v49 = vld [vmem:[#allocation19 + $0x38] sm:$0xff]  }
 0x8d9   : > { %2952 = vmatpush1.bf16.msra.mxu1 %v8453_v48  ;;  %v8497_v48 = vld [vmem:[#allocation19 + $0xf8] sm:$0xff]  }
 0x8da   : > { %2953 = vmatprep.subr.bf16.mxu1 %v8458_v50  ;;  %v8499_v50 = vld [vmem:[#allocation19 + $0xb8] sm:$0xff]  }
 0x8dd   : > { %2954 = vmatpush1.bf16.msra.mxu1 %v8456_v51  ;;  %v8502_v51 = vld [vmem:[#allocation22 + $0x4] ss:$8 sps:$4 sm:$0xff]  }
 0x8de   : > { %2955 = vmatprep.subr.bf16.mxu1 %v8461_v52  ;;  %v8505_v52 = vld [vmem:[#allocation22 + $0x104] ss:$8 sps:$4 sm:$0xff]  }
 0x8e1   : > { %2956 = vmatpush1.bf16.msra.mxu1 %v8459_v53  ;;  %v2699_v53 = vld [vmem:[#allocation38] sm:$0x3] }
 0x8e2   : > { %2957 = vmatprep.subr.bf16.mxu1 %v8464_v54  ;;  %v2858_v54 = vrot.slane %v2699_v53, %v10791_v2 }
 0x8e5   : > { %2958 = vmatpush1.bf16.msra.mxu1 %v8462_v55  ;;  %v2862_v55 = vrot.slane %v2699_v53, %v10788_v1  ;;  %v8571_v53 = vld [vmem:[#allocation22 + $0x1b4] ss:$8 sps:$4 sm:$0xff]  }
 0x8e6   : > { %2959 = vmatprep.subr.bf16.mxu1 %v8467_v56 }
 0x8e9   : > { %2960 = vmatpush1.bf16.msra.mxu1 %v8465_v57 }
 0x8ea   : > { %7824 = vmatprep.subr.bf16.mxu1 %v8469_v59 }
 0x95f   : > { %v2505_v20 = vpop.f32.mrb[16].mxu0 }
 0x960   : > { %v2507_v21 = vpop.f32.mrb[17].mxu0 }
 0x961   : > { %v2509_v22 = vpop.f32.mrb[18].mxu0 }
 0x962   : > { %v2510_v23 = vpop.f32.mrb[19].mxu0 }
 0x99f   : > { %v2626_v26 = vpop.f32.mrb[16].mxu1 }
 0x9a0   : > { %v2633_v28 = vadd.f32 %v2626_v26, %v2505_v20  ;;  %v2628_v29 = vpop.f32.mrb[17].mxu1 }
 0x9a1   : > { %v2634_v30 = vadd.f32 %v2628_v29, %v2507_v21  ;;  %v2630_v31 = vpop.f32.mrb[18].mxu1 }
 0x9a2   : > { %v2646_v32 = vadd.f32 %v2639_v25, %v2633_v28  ;;  %v2631_v33 = vpop.f32.mrb[19].mxu1  ;;  %v8471_v28 = vld [vmem:[#allocation19 + $0x80] sm:$0xff]   ;;  %v8475_v31 = vld [vmem:[#allocation19 + $0x88] sm:$0xff]  }
 0x9a3   : > { %v2647_v34 = vadd.f32 %v2643_v27, %v2634_v30  ;;  %v8473_v30 = vld [vmem:[#allocation19 + $0xc8] sm:$0xff]   ;;  %v8479_v33 = vld [vmem:[#allocation19 + $0x90] sm:$0xff]  }
 0x9a4   : > { %v10842_v37 = vadd.f32 %v8916_v35, %v2646_v32  ;;  %v8477_v32 = vld [vmem:[#allocation19 + $0xd0] sm:$0xff]   ;;  %v8483_v35 = vld [vmem:[#allocation19 + $0x98] sm:$0xff]  }
 0x9a5   : > { %v10845_v39 = vadd.f32 %v8917_v38, %v2647_v34  ;;  %v8481_v34 = vld [vmem:[#allocation19 + $0xd8] sm:$0xff]   ;;  %v8485_v38 = vld [vmem:[#allocation19 + $0xe0] sm:$0xff]  }
 0x9a6   : > { %v2700_v41 = vpack.c.bf16 %v10842_v37, %v10842_v37 }
 0x9a7   : > { %v2701_v40 = vpack.c.bf16 %v10845_v39, %v10845_v39 }
 0x9a9   : > { %2836 = vmatprep.mubr.bf16.mxu0 %v2701_v40  ;;  %v8487_v40 = vld [vmem:[#allocation19 + $0xa0] sm:$0xff]  }
 0x9aa   : > { %2837 = vmatmul.mubr.bf16.vlgmr.msra.gmra.mrb[20].mxu0 %v2700_v41  ;;  %v8489_v41 = vld [vmem:[#allocation19 + $0xe8] sm:$0xff]  }
 0x9ab   : > { %7803 = vmatpush3.bf16.msra.mxu0 %v8470_v62 }
 0x9ac   : > { %7804 = vmatprep.subr.bf16.mxu0 %v8472_v60 }
 0x9af   : > { %7805 = vmatpush3.bf16.msra.mxu0 %v8474_v61 }
 0x9b0   : > { %7806 = vmatprep.subr.bf16.mxu0 %v8476_v63 }
 0x9b3   : > { %7807 = vmatpush3.bf16.msra.mxu0 %v8478_v3  ;;  %v1257_v3 = vld [vmem:[%s1071_s12 + $0x8] sm:$0xff] }
 0x9b4   : > { %7808 = vmatprep.subr.bf16.mxu0 %v8480_v5 }
 0x9b7   : > { %7809 = vmatpush3.bf16.msra.mxu0 %v8482_v7  ;;  %v8500_v7 = vld [vmem:[#allocation22] ss:$8 sps:$4 sm:$0xff]  }
 0x9b8   : > { %7810 = vmatprep.subr.bf16.mxu0 %v8484_v8  ;;  %v8503_v8 = vld [vmem:[#allocation22 + $0x100] ss:$8 sps:$4 sm:$0xff]  }
 0x9bb   : > { %7811 = vmatpush3.bf16.msra.mxu0 %v8486_v9 }
 0x9bc   : > { %7812 = vmatprep.subr.bf16.mxu0 %v8488_v10  ;;  %v8508_v10 = vld [vmem:[#allocation22 + $0x14] ss:$8 sps:$4 sm:$0xff]  }
 0x9bf   : > { %7813 = vmatpush3.bf16.msra.mxu0 %v8490_v11  ;;  %v8511_v11 = vld [vmem:[#allocation22 + $0x114] ss:$8 sps:$4 sm:$0xff]  }
 0x9c0   : > { %7814 = vmatprep.subr.bf16.mxu0 %v8492_v43  ;;  %v8551_v43 = vld [vmem:[#allocation22 + $0x180] ss:$8 sps:$4 sm:$0xff]  }
 0x9c3   : > { %7815 = vmatpush3.bf16.msra.mxu0 %v8494_v45  ;;  %v8559_v45 = vld [vmem:[#allocation22 + $0x194] ss:$8 sps:$4 sm:$0xff]  }
 0x9c4   : > { %7816 = vmatprep.subr.bf16.mxu0 %v8496_v47  ;;  %v8557_v47 = vld [vmem:[#allocation22 + $0x190] ss:$8 sps:$4 sm:$0xff]  }
 0x9c7   : > { %7817 = vmatpush3.bf16.msra.mxu0 %v8498_v49  ;;  %v8565_v49 = vld [vmem:[#allocation22 + $0x1a4] ss:$8 sps:$4 sm:$0xff]  }
 0x9c8   : > { %3623 = vmatprep.subr.bf16.mxu0 %v8502_v51  ;;  %v8563_v51 = vld [vmem:[#allocation22 + $0x1a0] ss:$8 sps:$4 sm:$0xff]  }
 0xa7d   : > { %v7796_v12 = vpop.f32.mrb[20].mxu0 }
 0xa7e   : > { %v7797_v14 = vpop.f32.mrb[21].mxu0 }
 0xa7f   : > { %v7798_v15 = vadd.f32 %v7797_v14, %v7796_v12  ;;  %v7799_v16 = vpop.f32.mrb[22].mxu0  ;;  %v8509_v12 = vld [vmem:[#allocation22 + $0x110] ss:$8 sps:$4 sm:$0xff]   ;;  %v8517_v14 = vld [vmem:[#allocation22 + $0x124] ss:$8 sps:$4 sm:$0xff]  }
 0xa80   : > { %v7800_v17 = vpop.f32.mrb[23].mxu0  ;;  %v8515_v16 = vld [vmem:[#allocation22 + $0x120] ss:$8 sps:$4 sm:$0xff]  }
 0xa81   : > { %v2839_v18 = vadd.f32 %v7798_v15, %v7266_v13  ;;  %v8514_v13 = vld [vmem:[#allocation22 + $0x24] ss:$8 sps:$4 sm:$0xff]   ;;  %v8512_v15 = vld [vmem:[#allocation22 + $0x20] ss:$8 sps:$4 sm:$0xff]   ;;  %v8520_v17 = vld [vmem:[#allocation22 + $0x34] ss:$8 sps:$4 sm:$0xff]  }
 0xa83   : > { %v2845_v19 = vmul.f32 0.044715, %v2839_v18  ;;  %v2844_v25 = vmul.f32 0.5, %v2839_v18 }
 0xa85   : > { %v2846_v20 = vmul.f32 %v2845_v19, %v2839_v18  ;;  %v8518_v19 = vld [vmem:[#allocation22 + $0x30] ss:$8 sps:$4 sm:$0xff]  }
 0xa87   : > { %v2847_v21 = vmul.f32 %v2846_v20, %v2839_v18  ;;  %v8521_v20 = vld [vmem:[#allocation22 + $0x130] ss:$8 sps:$4 sm:$0xff]  }
 0xa89   : > { %v2848_v22 = vadd.f32 %v2847_v21, %v2839_v18  ;;  %v8523_v18 = vld [vmem:[#allocation22 + $0x134] ss:$8 sps:$4 sm:$0xff]   ;;  %v8526_v21 = vld [vmem:[#allocation22 + $0x44] ss:$8 sps:$4 sm:$0xff]  }
 0xa8b   : > { %v2849_v23 = vmul.f32 0.7978846, %v2848_v22  ;;  %v8529_v22 = vld [vmem:[#allocation22 + $0x144] ss:$8 sps:$4 sm:$0xff]  }
 0xa8d   : > { %8886 = vtanh.f32 %v2849_v23  ;;  %v8524_v23 = vld [vmem:[#allocation22 + $0x40] ss:$8 sps:$4 sm:$0xff]  }
 0xa97   : > { %v8887_v24 = vpop.eup %8886 }
 0xa98   : > { %v2851_v26 = vadd.f32 1.0, %v8887_v24  ;;  %v8527_v24 = vld [vmem:[#allocation22 + $0x140] ss:$8 sps:$4 sm:$0xff]  }
 0xa9a   : > { %v2852_v27 = vmul.f32 %v2851_v26, %v2844_v25  ;;  %v8532_v25 = vld [vmem:[#allocation22 + $0x54] ss:$8 sps:$4 sm:$0xff]  }
 0xa9b   : > { %v8535_v26 = vld [vmem:[#allocation22 + $0x154] ss:$8 sps:$4 sm:$0xff]  }
 0xa9c   : > { %v2853_v29 = vpack.c.bf16 %v2852_v27, %v2852_v27  ;;  %v8530_v27 = vld [vmem:[#allocation22 + $0x50] ss:$8 sps:$4 sm:$0xff]  }
 0xa9e   : > { %2978 = vmatmul.mubr.bf16.vlgmr.msra.gmra.mrb[20].mxu1 %v2853_v29  ;;  %v8538_v29 = vld [vmem:[#allocation22 + $0x64] ss:$8 sps:$4 sm:$0xff]  }
 0xa9f   : > { %7825 = vmatpush3.bf16.msra.mxu1 %v8471_v28  ;;  %v8533_v28 = vld [vmem:[#allocation22 + $0x150] ss:$8 sps:$4 sm:$0xff]  }
 0xaa0   : > { %7826 = vmatprep.subr.bf16.mxu1 %v8473_v30  ;;  %v8541_v30 = vld [vmem:[#allocation22 + $0x164] ss:$8 sps:$4 sm:$0xff]  }
 0xaa3   : > { %7827 = vmatpush3.bf16.msra.mxu1 %v8475_v31  ;;  %v8536_v31 = vld [vmem:[#allocation22 + $0x60] ss:$8 sps:$4 sm:$0xff]  }
 0xaa4   : > { %7828 = vmatprep.subr.bf16.mxu1 %v8477_v32  ;;  %v8539_v32 = vld [vmem:[#allocation22 + $0x160] ss:$8 sps:$4 sm:$0xff]  }
 0xaa7   : > { %7829 = vmatpush3.bf16.msra.mxu1 %v8479_v33  ;;  %v8544_v33 = vld [vmem:[#allocation22 + $0x74] ss:$8 sps:$4 sm:$0xff]  }
 0xaa8   : > { %7830 = vmatprep.subr.bf16.mxu1 %v8481_v34  ;;  %v8547_v34 = vld [vmem:[#allocation22 + $0x174] ss:$8 sps:$4 sm:$0xff]  }
 0xaab   : > { %7831 = vmatpush3.bf16.msra.mxu1 %v8483_v35  ;;  %v8542_v35 = vld [vmem:[#allocation22 + $0x70] ss:$8 sps:$4 sm:$0xff]  }
 0xaac   : > { %7832 = vmatprep.subr.bf16.mxu1 %v8485_v38  ;;  %v8545_v38 = vld [vmem:[#allocation22 + $0x170] ss:$8 sps:$4 sm:$0xff]  }
 0xaaf   : > { %7833 = vmatpush3.bf16.msra.mxu1 %v8487_v40  ;;  %v8550_v40 = vld [vmem:[#allocation22 + $0x84] ss:$8 sps:$4 sm:$0xff]  }
 0xab0   : > { %7834 = vmatprep.subr.bf16.mxu1 %v8489_v41  ;;  %v8553_v41 = vld [vmem:[#allocation22 + $0x184] ss:$8 sps:$4 sm:$0xff]  }
 0xab3   : > { %7835 = vmatpush3.bf16.msra.mxu1 %v8491_v42  ;;  %v8548_v42 = vld [vmem:[#allocation22 + $0x80] ss:$8 sps:$4 sm:$0xff]  }
 0xab4   : > { %7836 = vmatprep.subr.bf16.mxu1 %v8493_v44  ;;  %v8556_v44 = vld [vmem:[#allocation22 + $0x94] ss:$8 sps:$4 sm:$0xff]  }
 0xab7   : > { %7837 = vmatpush3.bf16.msra.mxu1 %v8495_v46  ;;  %v8554_v46 = vld [vmem:[#allocation22 + $0x90] ss:$8 sps:$4 sm:$0xff]  }
 0xab8   : > { %7838 = vmatprep.subr.bf16.mxu1 %v8497_v48  ;;  %v8562_v48 = vld [vmem:[#allocation22 + $0xa4] ss:$8 sps:$4 sm:$0xff]  }
 0xabb   : > { %7839 = vmatpush3.bf16.msra.mxu1 %v8499_v50  ;;  %v8560_v50 = vld [vmem:[#allocation22 + $0xa0] ss:$8 sps:$4 sm:$0xff]  }
 0xabc   : > { %3824 = vmatprep.subr.bf16.mxu1 %v8505_v52  ;;  %v8568_v52 = vld [vmem:[#allocation22 + $0xb4] ss:$8 sps:$4 sm:$0xff]  }
 0xb71   : > { %v2979_v56 = vpop.f32.mrb[20].mxu1 }
 0xb72   : > { %v2980_v57 = vadd.f32 %v2979_v56, %v2858_v54  ;;  %v2981_v58 = vpop.f32.mrb[21].mxu1  ;;  %v8566_v54 = vld [vmem:[#allocation22 + $0xb0] ss:$8 sps:$4 sm:$0xff]   ;;  %v8574_v56 = vld [vmem:[#allocation22 + $0xc4] ss:$8 sps:$4 sm:$0xff]  }
 0xb73   : > { %v2982_v59 = vadd.f32 %v2981_v58, %v2862_v55  ;;  %v2983_v62 = vpop.f32.mrb[22].mxu1  ;;  %v8569_v55 = vld [vmem:[#allocation22 + $0x1b0] ss:$8 sps:$4 sm:$0xff]   ;;  %v8572_v58 = vld [vmem:[#allocation22 + $0xc0] ss:$8 sps:$4 sm:$0xff]  }
 0xb74   : > { %v10854_v60 = vadd.f32 %v2980_v57, %v10842_v37  ;;  %v2984_v61 = vpop.f32.mrb[23].mxu1  ;;  %v3156_v37 = vpack.c.bf16 %v1257_v3, %v1257_v3  ;;  %v8577_v57 = vld [vmem:[#allocation22 + $0x1c4] ss:$8 sps:$4 sm:$0xff]   ;;  %v8580_v62 = vld [vmem:[#allocation22 + $0xd4] ss:$8 sps:$4 sm:$0xff]  }
 0xb75   : > { %v10857_v63 = vadd.f32 %v2982_v59, %v10845_v39  ;;  %v8506_v39 = vld [vmem:[#allocation22 + $0x10] ss:$8 sps:$4 sm:$0xff]   ;;  %v8575_v59 = vld [vmem:[#allocation22 + $0x1c0] ss:$8 sps:$4 sm:$0xff]   ;;  %v8583_v61 = vld [vmem:[#allocation22 + $0x1d4] ss:$8 sps:$4 sm:$0xff]  }
 0xb76   : > { %v3153_v9 = vpack.c.bf16 %v10854_v60, %v10854_v60  ;;  %v8578_v3 = vld [vmem:[#allocation22 + $0xd0] ss:$8 sps:$4 sm:$0xff]  }
 0xb77   : > { %v3154_v5 = vpack.c.bf16 %v10857_v63, %v10857_v63 }
 0xb79   : > { %3297 = vmatprep.mubr.bf16.mxu0 %v3154_v5  ;;  %3433 = vmatprep.mubr.bf16.mxu1 %v3154_v5  ;;  %v8581_v5 = vld [vmem:[#allocation22 + $0x1d0] ss:$8 sps:$4 sm:$0xff]  }
 0xb7a   : > { %3298 = vmatmul.mubr.bf16.vlgmr.msra.gmra.mrb[24].mxu0 %v3153_v9  ;;  %3434 = vmatmul.mubr.bf16.vlgmr.msra.gmra.mrb[24].mxu1 %v3153_v9  ;;  %v8584_v9 = vld [vmem:[#allocation22 + $0xe0] ss:$8 sps:$4 sm:$0xff]  }
 0xb7b   : > { %3624 = vmatpush1.bf16.msra.mxu0 %v8500_v7  ;;  %3825 = vmatpush1.bf16.msra.mxu1 %v8503_v8  ;;  %v8586_v7 = vld [vmem:[#allocation22 + $0xe4] ss:$8 sps:$4 sm:$0xff]  }
 0xb7c   : > { %3625 = vmatprep.subr.bf16.mxu0 %v8508_v10  ;;  %3826 = vmatprep.subr.bf16.mxu1 %v8511_v11  ;;  %v8589_v8 = vld [vmem:[#allocation22 + $0x1e4] ss:$8 sps:$4 sm:$0xff]   ;;  %v8587_v10 = vld [vmem:[#allocation22 + $0x1e0] ss:$8 sps:$4 sm:$0xff]   ;;  %v8592_v11 = vld [vmem:[#allocation22 + $0xf4] ss:$8 sps:$4 sm:$0xff]  }
 0xb7d   : > { %3655 = vmatprep.mubr.bf16.mxu0 %v3156_v37  ;;  %3856 = vmatprep.mubr.bf16.mxu1 %v3156_v37  ;;  %v8595_v37 = vld [vmem:[#allocation22 + $0x1f4] ss:$8 sps:$4 sm:$0xff]  }
 0xb7f   : > { %3626 = vmatpush1.bf16.msra.mxu0 %v8506_v39  ;;  %3827 = vmatpush1.bf16.msra.mxu1 %v8509_v12  ;;  %v8590_v39 = vld [vmem:[#allocation22 + $0xf0] ss:$8 sps:$4 sm:$0xff]  }
 0xb80   : > { %3627 = vmatprep.subr.bf16.mxu0 %v8514_v13  ;;  %3828 = vmatprep.subr.bf16.mxu1 %v8517_v14  ;;  %v8593_v12 = vld [vmem:[#allocation22 + $0x1f0] ss:$8 sps:$4 sm:$0xff]  }
 0xb81   : > { %v1256_v13 = vld [vmem:[%s1071_s12] sm:$0xff] }
 0xb82   : > { %v3155_v14 = vpack.c.bf16 %v1256_v13, %v1256_v13 }
 0xb83   : > { %3628 = vmatpush1.bf16.msra.mxu0 %v8512_v15  ;;  %3829 = vmatpush1.bf16.msra.mxu1 %v8515_v16 }
 0xb84   : > { %3629 = vmatprep.subr.bf16.mxu0 %v8520_v17  ;;  %3830 = vmatprep.subr.bf16.mxu1 %v8523_v18 }
 0xb87   : > { %3630 = vmatpush1.bf16.msra.mxu0 %v8518_v19  ;;  %3831 = vmatpush1.bf16.msra.mxu1 %v8521_v20 }
 0xb88   : > { %3631 = vmatprep.subr.bf16.mxu0 %v8526_v21  ;;  %3832 = vmatprep.subr.bf16.mxu1 %v8529_v22 }
 0xb8b   : > { %3632 = vmatpush1.bf16.msra.mxu0 %v8524_v23  ;;  %3833 = vmatpush1.bf16.msra.mxu1 %v8527_v24 }
 0xb8c   : > { %3633 = vmatprep.subr.bf16.mxu0 %v8532_v25  ;;  %3834 = vmatprep.subr.bf16.mxu1 %v8535_v26  ;;  %v3118_v25 = vld [vmem:[#allocation23] sm:$0x3]  ;;  %v3119_v26 = vld [vmem:[#allocation23 + $0x2] sm:$0x3] }
 0xb8f   : > { %3634 = vmatpush1.bf16.msra.mxu0 %v8530_v27  ;;  %3835 = vmatpush1.bf16.msra.mxu1 %v8533_v28  ;;  %v3446_v27 = vrot.slane %v3118_v25, %v10791_v2  ;;  %v3454_v28 = vrot.slane %v3119_v26, %v10791_v2 }
 0xb90   : > { %3635 = vmatprep.subr.bf16.mxu0 %v8538_v29  ;;  %3836 = vmatprep.subr.bf16.mxu1 %v8541_v30 }
 0xb93   : > { %3636 = vmatpush1.bf16.msra.mxu0 %v8536_v31  ;;  %3837 = vmatpush1.bf16.msra.mxu1 %v8539_v32  ;;  %v3450_v31 = vrot.slane %v3118_v25, %v10788_v1  ;;  %v3458_v32 = vrot.slane %v3119_v26, %v10788_v1 }
 0xb94   : > { %3637 = vmatprep.subr.bf16.mxu0 %v8544_v33  ;;  %3838 = vmatprep.subr.bf16.mxu1 %v8547_v34 }
 0xb97   : > { %3638 = vmatpush1.bf16.msra.mxu0 %v8542_v35  ;;  %3839 = vmatpush1.bf16.msra.mxu1 %v8545_v38 }
 0xb98   : > { %3639 = vmatprep.subr.bf16.mxu0 %v8550_v40  ;;  %3840 = vmatprep.subr.bf16.mxu1 %v8553_v41 }
 0xb9b   : > { %3640 = vmatpush1.bf16.msra.mxu0 %v8548_v42  ;;  %3841 = vmatpush1.bf16.msra.mxu1 %v8551_v43  ;;  %v7299_v42 = vld [vmem:[#allocation20] ss:$0 sm:$0xff]  ;;  %v7300_v43 = vld [vmem:[#allocation20 + $0x1] ss:$0 sm:$0xff] }
 0xb9c   : > { %3641 = vmatprep.subr.bf16.mxu0 %v8556_v44  ;;  %3842 = vmatprep.subr.bf16.mxu1 %v8559_v45 }
 0xb9f   : > { %3642 = vmatpush1.bf16.msra.mxu0 %v8554_v46  ;;  %3843 = vmatpush1.bf16.msra.mxu1 %v8557_v47 }
 0xba0   : > { %3643 = vmatprep.subr.bf16.mxu0 %v8562_v48  ;;  %3844 = vmatprep.subr.bf16.mxu1 %v8565_v49 }
 0xba3   : > { %3644 = vmatpush1.bf16.msra.mxu0 %v8560_v50  ;;  %3845 = vmatpush1.bf16.msra.mxu1 %v8563_v51 }
 0xba4   : > { %3645 = vmatprep.subr.bf16.mxu0 %v8568_v52  ;;  %3846 = vmatprep.subr.bf16.mxu1 %v8571_v53 }
 0xba7   : > { %3646 = vmatpush1.bf16.msra.mxu0 %v8566_v54  ;;  %3847 = vmatpush1.bf16.msra.mxu1 %v8569_v55 }
 0xba8   : > { %3647 = vmatprep.subr.bf16.mxu0 %v8574_v56  ;;  %3848 = vmatprep.subr.bf16.mxu1 %v8577_v57 }
 0xbab   : > { %3648 = vmatpush1.bf16.msra.mxu0 %v8572_v58  ;;  %3849 = vmatpush1.bf16.msra.mxu1 %v8575_v59 }
 0xbac   : > { %3649 = vmatprep.subr.bf16.mxu0 %v8580_v62  ;;  %3850 = vmatprep.subr.bf16.mxu1 %v8583_v61 }
 0xbaf   : > { %3650 = vmatpush1.bf16.msra.mxu0 %v8578_v3  ;;  %3851 = vmatpush1.bf16.msra.mxu1 %v8581_v5 }
 0xbb0   : > { %3651 = vmatprep.subr.bf16.mxu0 %v8586_v7  ;;  %3852 = vmatprep.subr.bf16.mxu1 %v8589_v8 }
 0xbb3   : > { %3652 = vmatpush1.bf16.msra.mxu0 %v8584_v9  ;;  %3853 = vmatpush1.bf16.msra.mxu1 %v8587_v10 }
 0xbb4   : > { %3653 = vmatprep.subr.bf16.mxu0 %v8592_v11  ;;  %3854 = vmatprep.subr.bf16.mxu1 %v8595_v37 }
 0xbb7   : > { %3654 = vmatpush1.bf16.msra.mxu0 %v8590_v39  ;;  %3855 = vmatpush1.bf16.msra.mxu1 %v8593_v12 }
 0xbb8   : > { %7900 = vmatprep.subr.bf16.mxu0 %v9875_v4  ;;  %7906 = vmatprep.subr.bf16.mxu1 %v9875_v4 }
 0xbba   : > { %3656 = vmatmul.mubr.bf16.vlgmr.msra.gmra.mrb[28].mxu0 %v3155_v14  ;;  %3857 = vmatmul.mubr.bf16.vlgmr.msra.gmra.mrb[28].mxu1 %v3155_v14 }
 0xbbb   : > { %7902 = vmatprep.mubr.msk.bf16.mxu0 %vm9876_vm0, %v9875_v4  ;;  %7908 = vmatprep.mubr.msk.bf16.mxu1 %vm9876_vm0, %v9875_v4 }
 0xc4d   : > { %v7818_v15 = vpop.f32.mrb[24].mxu0  ;;  %v7840_v16 = vpop.f32.mrb[24].mxu1 }
 0xc4e   : > { %v7819_v17 = vpop.f32.mrb[25].mxu0  ;;  %v7841_v18 = vpop.f32.mrb[25].mxu1 }
 0xc4f   : > { %v7820_v19 = vadd.f32 %v7819_v17, %v7818_v15  ;;  %v7842_v20 = vadd.f32 %v7841_v18, %v7840_v16  ;;  %v7821_v21 = vpop.f32.mrb[26].mxu0  ;;  %v7843_v22 = vpop.f32.mrb[26].mxu1 }
 0xc50   : > { %v7822_v23 = vpop.f32.mrb[27].mxu0  ;;  %v7844_v24 = vpop.f32.mrb[27].mxu1  ;;  %v8601_v21 = vld [vmem:[#allocation25 + $0x84] ss:$8 sps:$4 sm:$0xff]  }
 0xc51   : > { %v3300_v50 = vadd.f32 %v7820_v19, %v7299_v42  ;;  %v3436_v51 = vadd.f32 %v7842_v20, %v7300_v43  ;;  %v8598_v20 = vld [vmem:[#allocation25 + $0x4] ss:$8 sps:$4 sm:$0xff]   ;;  %v8608_v42 = vld [vmem:[#allocation25 + $0x20] ss:$8 sps:$4 sm:$0xff]   ;;  %v8619_v43 = vld [vmem:[#allocation25 + $0xb4] ss:$8 sps:$4 sm:$0xff]  }
 0xc53   : > { %v3865_v54 = vpack.c.bf16 %v3300_v50, %v3300_v50  ;;  %v3866_v55 = vpack.c.bf16 %v3436_v51, %v3436_v51  ;;  %v8620_v50 = vld [vmem:[#allocation25 + $0x40] ss:$8 sps:$4 sm:$0xff]   ;;  %v8631_v51 = vld [vmem:[#allocation25 + $0xd4] ss:$8 sps:$4 sm:$0xff]  }
 0xc8d   : > { %v3657_v29 = vpop.f32.mrb[28].mxu0  ;;  %v3858_v30 = vpop.f32.mrb[28].mxu1 }
 0xc8e   : > { %v3658_v33 = vadd.f32 %v3657_v29, %v3446_v27  ;;  %v3859_v34 = vadd.f32 %v3858_v30, %v3454_v28  ;;  %v3659_v35 = vpop.f32.mrb[29].mxu0  ;;  %v3860_v38 = vpop.f32.mrb[29].mxu1  ;;  %v8599_v28 = vld [vmem:[#allocation25 + $0x80] ss:$8 sps:$4 sm:$0xff]  }
 0xc8f   : > { %v3661_v40 = vpop.f32.mrb[30].mxu0  ;;  %v3862_v41 = vpop.f32.mrb[30].mxu1  ;;  %v3660_v48 = vadd.f32 %v3659_v35, %v3450_v31  ;;  %v3861_v49 = vadd.f32 %v3860_v38, %v3458_v32  ;;  %v8596_v30 = vld [vmem:[#allocation25] ss:$8 sps:$4 sm:$0xff]   ;;  %v8607_v31 = vld [vmem:[#allocation25 + $0x94] ss:$8 sps:$4 sm:$0xff]  }
 0xc90   : > { %v3867_v44 = vpack.c.bf16 %v3658_v33, %v3658_v33  ;;  %v3868_v45 = vpack.c.bf16 %v3859_v34, %v3859_v34  ;;  %v3662_v46 = vpop.f32.mrb[31].mxu0  ;;  %v3863_v47 = vpop.f32.mrb[31].mxu1  ;;  %v8604_v33 = vld [vmem:[#allocation25 + $0x14] ss:$8 sps:$4 sm:$0xff]   ;;  %v8605_v34 = vld [vmem:[#allocation25 + $0x90] ss:$8 sps:$4 sm:$0xff]  }
 0xc91   : > { %v3975_v52 = vpack.c.bf16 %v3660_v48, %v3660_v48  ;;  %v3976_v53 = vpack.c.bf16 %v3861_v49, %v3861_v49  ;;  %v8602_v35 = vld [vmem:[#allocation25 + $0x10] ss:$8 sps:$4 sm:$0xff]   ;;  %v8613_v38 = vld [vmem:[#allocation25 + $0xa4] ss:$8 sps:$4 sm:$0xff]   ;;  %v8611_v41 = vld [vmem:[#allocation25 + $0xa0] ss:$8 sps:$4 sm:$0xff]  }
 0xc92   : > { %7901 = vmatpush3.bf16.xpose.msra.mxu0 %v3867_v44  ;;  %7907 = vmatpush3.bf16.xpose.msra.mxu1 %v3868_v45  ;;  %v8610_v40 = vld [vmem:[#allocation25 + $0x24] ss:$8 sps:$4 sm:$0xff]   ;;  %v8616_v44 = vld [vmem:[#allocation25 + $0x34] ss:$8 sps:$4 sm:$0xff]   ;;  %v8617_v45 = vld [vmem:[#allocation25 + $0xb0] ss:$8 sps:$4 sm:$0xff]  }
 0xc93   : > { %7912 = vmatprep.subr.bf16.mxu0 %v9875_v4  ;;  %7918 = vmatprep.subr.bf16.mxu1 %v9875_v4  ;;  %v3981_v56 = vsel %vm2299_vm1, %v3975_v52, 0  ;;  %v4027_v57 = vsel %vm2299_vm1, %v3976_v53, 0  ;;  %v8614_v46 = vld [vmem:[#allocation25 + $0x30] ss:$8 sps:$4 sm:$0xff]   ;;  %v8625_v47 = vld [vmem:[#allocation25 + $0xc4] ss:$8 sps:$4 sm:$0xff]  }
 0xc94   : > { %v8622_v48 = vld [vmem:[#allocation25 + $0x44] ss:$8 sps:$4 sm:$0xff]   ;;  %v8623_v49 = vld [vmem:[#allocation25 + $0xc0] ss:$8 sps:$4 sm:$0xff]   ;;  %v8628_v52 = vld [vmem:[#allocation25 + $0x54] ss:$8 sps:$4 sm:$0xff]  }
 0xc95   : > { %v8629_v53 = vld [vmem:[#allocation25 + $0xd0] ss:$8 sps:$4 sm:$0xff]  }
 0xc99   : > { %7903 = vmatmul.mubr.bf16.vlgmr.msra.gmra.mrb[32].mxu0 %v3865_v54  ;;  %7909 = vmatmul.mubr.bf16.vlgmr.msra.gmra.mrb[32].mxu1 %v3866_v55  ;;  %v8626_v54 = vld [vmem:[#allocation25 + $0x50] ss:$8 sps:$4 sm:$0xff]   ;;  %v8637_v55 = vld [vmem:[#allocation25 + $0xe4] ss:$8 sps:$4 sm:$0xff]  }
 0xc9a   : > { %7913 = vmatpush3.bf16.msra.mxu0 %v3981_v56  ;;  %7919 = vmatpush3.bf16.msra.mxu1 %v4027_v57  ;;  %v8634_v56 = vld [vmem:[#allocation25 + $0x64] ss:$8 sps:$4 sm:$0xff]   ;;  %v8635_v57 = vld [vmem:[#allocation25 + $0xe0] ss:$8 sps:$4 sm:$0xff]  }
 0xc9b   : > { %7914 = vmatprep.mubr.msk.bf16.mxu0 %vm9876_vm0, %v9875_v4  ;;  %7920 = vmatprep.mubr.msk.bf16.mxu1 %vm9876_vm0, %v9875_v4 }
 0xc9c   : > { %4151 = vmatprep.subr.bf16.mxu0 %v8598_v20  ;;  %4272 = vmatprep.subr.bf16.mxu1 %v8601_v21 }
 0xd6c   : > { %v3903_v58 = vpop.f32.mrb[32].mxu0  ;;  %v3943_v59 = vpop.f32.mrb[32].mxu1 }
 0xd6d   : > { %v3949_v62 = vmul.f32 0.088388346, %v3903_v58  ;;  %v3950_v61 = vmul.f32 0.088388346, %v3943_v59  ;;  %v7904_v3 = vpop.f32.mrb[33].mxu0  ;;  %v7910_v5 = vpop.f32.mrb[33].mxu1 }
 0xd6e   : > { %v3906_v7 = vpop.f32.mrb[34].mxu0  ;;  %v3946_v8 = vpop.f32.mrb[34].mxu1  ;;  %v8632_v58 = vld [vmem:[#allocation25 + $0x60] ss:$8 sps:$4 sm:$0xff]   ;;  %v8643_v59 = vld [vmem:[#allocation25 + $0xf4] ss:$8 sps:$4 sm:$0xff]  }
 0xd6f   : > { %v7905_v9 = vpop.f32.mrb[35].mxu0  ;;  %v7911_v10 = vpop.f32.mrb[35].mxu1  ;;  %v3954_v11 = vsel %vm2269_vm3, %v3950_v61, -inf  ;;  %v3951_v37 = vsel %vm2269_vm3, %v3949_v62, -inf  ;;  %v8638_v3 = vld [vmem:[#allocation25 + $0x70] ss:$8 sps:$4 sm:$0xff]  }
 0xd70   : > { %3955 = vmax.xlane.f32.xlu1 %v3954_v11  ;;  %3952 = vmax.xlane.f32.xlu0 %v3951_v37 }
 0xdfd   : > { %v3956_v39 = vpop.xlane.xlu1 %3955  ;;  %v3953_v12 = vpop.xlane.xlu0 %3952 }
 0xdfe   : > { %v3958_v13 = vsub.f32 %v3950_v61, %v3956_v39  ;;  %v3957_v4 = vsub.f32 %v3949_v62, %v3953_v12  ;;  %v8640_v62 = vld [vmem:[#allocation25 + $0x74] ss:$8 sps:$4 sm:$0xff]   ;;  %v8641_v61 = vld [vmem:[#allocation25 + $0xf0] ss:$8 sps:$4 sm:$0xff]  }
 0xe00   : > { %v3961_v14 = vmul.f32 1.442695, %v3958_v13  ;;  %v3959_v15 = vmul.f32 1.442695, %v3957_v4  ;;  %v3152_v4 = vld [vmem:[#allocation26] sm:$0x3] }
 0xe02   : > { %8888 = vpow2.f32 %v3961_v14 }
 0xe03   : > { %8890 = vpow2.f32 %v3959_v15  ;;  %v4319_v15 = vrot.slane %v3152_v4, %v10791_v2 }
 0xe0c   : > { %v8889_v16 = vpop.eup %8888 }
 0xe0d   : > { %v8891_v17 = vpop.eup %8890  ;;  %v3966_v18 = vsel %vm2269_vm3, %v8889_v16, 0.0 }
 0xe0e   : > { %3967 = vadd.xlane.f32.xlu1 %v3966_v18  ;;  %v3963_v19 = vsel %vm2269_vm3, %v8891_v17, 0.0  ;;  %v4323_v18 = vrot.slane %v3152_v4, %v10788_v1  ;;  %v4419_v4 = vld [vmem:[#allocation28 + $0x168] sm:$0xff] }
 0xe0f   : > { %3964 = vadd.xlane.f32.xlu0 %v3963_v19 }
 0xe9b   : > { %v3968_v22 = vpop.xlane.xlu1 %3967 }
 0xe9c   : > { %8892 = vrcp.f32 %v3968_v22  ;;  %v3965_v23 = vpop.xlane.xlu0 %3964 }
 0xe9d   : > { %8894 = vrcp.f32 %v3965_v23 }
 0xea6   : > { %v8893_v24 = vpop.eup %8892 }
 0xea7   : > { %v8895_v25 = vpop.eup %8894  ;;  %v3972_v26 = vmul.f32 %v8893_v24, %v8889_v16 }
 0xea8   : > { %v3971_v27 = vmul.f32 %v8895_v25, %v8891_v17 }
 0xea9   : > { %v3974_v29 = vpack.c.bf16 %v3972_v26, %v3972_v26 }
 0xeaa   : > { %v3973_v32 = vpack.c.bf16 %v3971_v27, %v3971_v27 }
 0xeab   : > { %7921 = vmatmul.mubr.msk.bf16.vlgmr.msra.gmra.mrb[36].mxu1 %vm2269_vm3, %v3974_v29 }
 0xeac   : > { %7915 = vmatmul.mubr.msk.bf16.vlgmr.msra.gmra.mrb[36].mxu0 %vm2269_vm3, %v3973_v32  ;;  %4273 = vmatpush1.bf16.msra.mxu1 %v8599_v28  ;;  %v4378_v32 = vld [vmem:[#allocation28 + $0x20] sm:$0xff] }
 0xead   : > { %4152 = vmatpush1.bf16.msra.mxu0 %v8596_v30  ;;  %4274 = vmatprep.subr.bf16.mxu1 %v8607_v31  ;;  %v4374_v31 = vld [vmem:[#allocation28] sm:$0xff] }
 0xeae   : > { %4153 = vmatprep.subr.bf16.mxu0 %v8604_v33  ;;  %4183 = vmatprep.mubr.bf16.mxu0 %v9877_v36  ;;  %v4375_v33 = vld [vmem:[#allocation28 + $0x8] sm:$0xff] }
 0xeaf   : > { %4304 = vmatprep.mubr.bf16.mxu1 %v9877_v36 }
 0xeb0   : > { %4275 = vmatpush1.bf16.msra.mxu1 %v8605_v34  ;;  %v7431_v34 = vcombine.low %v4374_v31, %v4378_v32 }
 0xeb1   : > { %4154 = vmatpush1.bf16.msra.mxu0 %v8602_v35  ;;  %4276 = vmatprep.subr.bf16.mxu1 %v8613_v38  ;;  %v7432_v35 = vcombine.high %v4374_v31, %v4378_v32  ;;  %v4379_v38 = vld [vmem:[#allocation28 + $0x28] sm:$0xff] }
 0xeb2   : > { %4155 = vmatprep.subr.bf16.mxu0 %v8610_v40  ;;  %v4382_v40 = vld [vmem:[#allocation28 + $0x40] sm:$0xff]  ;;  %v4435_v31 = vld [vmem:[#allocation28 + $0x1e8] sm:$0xff] }
 0xeb4   : > { %4277 = vmatpush1.bf16.msra.mxu1 %v8611_v41  ;;  %v4386_v41 = vld [vmem:[#allocation28 + $0x60] sm:$0xff] }
 0xeb5   : > { %4156 = vmatpush1.bf16.msra.mxu0 %v8608_v42  ;;  %4278 = vmatprep.subr.bf16.mxu1 %v8619_v43  ;;  %v7433_v42 = vcombine.low %v4375_v33, %v4379_v38  ;;  %v7434_v43 = vcombine.high %v4375_v33, %v4379_v38  ;;  %v4438_v38 = vld [vmem:[#allocation28 + $0x200] sm:$0xff] }
 0xeb6   : > { %4157 = vmatprep.subr.bf16.mxu0 %v8616_v44  ;;  %v7440_v44 = vcombine.high %v4382_v40, %v4386_v41 }
 0xeb8   : > { %4279 = vmatpush1.bf16.msra.mxu1 %v8617_v45  ;;  %v4387_v45 = vld [vmem:[#allocation28 + $0x68] sm:$0xff] }
 0xeb9   : > { %4158 = vmatpush1.bf16.msra.mxu0 %v8614_v46  ;;  %4280 = vmatprep.subr.bf16.mxu1 %v8625_v47  ;;  %v4390_v46 = vld [vmem:[#allocation28 + $0x80] sm:$0xff] }
 0xeba   : > { %4159 = vmatprep.subr.bf16.mxu0 %v8622_v48  ;;  %v4394_v47 = vld [vmem:[#allocation28 + $0xa0] sm:$0xff]  ;;  %v4391_v48 = vld [vmem:[#allocation28 + $0x88] sm:$0xff] }
 0xebc   : > { %4281 = vmatpush1.bf16.msra.mxu1 %v8623_v49  ;;  %v4395_v49 = vld [vmem:[#allocation28 + $0xa8] sm:$0xff] }
 0xebd   : > { %4160 = vmatpush1.bf16.msra.mxu0 %v8620_v50  ;;  %4282 = vmatprep.subr.bf16.mxu1 %v8631_v51  ;;  %v7439_v50 = vcombine.low %v4382_v40, %v4386_v41  ;;  %v4442_v40 = vld [vmem:[#allocation28 + $0x220] sm:$0xff]  ;;  %v4439_v41 = vld [vmem:[#allocation28 + $0x208] sm:$0xff] }
 0xebe   : > { %4161 = vmatprep.subr.bf16.mxu0 %v8628_v52  ;;  %v7448_v52 = vcombine.high %v4390_v46, %v4394_v47 }
 0xec0   : > { %4283 = vmatpush1.bf16.msra.mxu1 %v8629_v53  ;;  %v7450_v53 = vcombine.high %v4391_v48, %v4395_v49 }
 0xec1   : > { %4162 = vmatpush1.bf16.msra.mxu0 %v8626_v54  ;;  %4284 = vmatprep.subr.bf16.mxu1 %v8637_v55  ;;  %v4398_v54 = vld [vmem:[#allocation28 + $0xc0] sm:$0xff] }
 0xec2   : > { %4163 = vmatprep.subr.bf16.mxu0 %v8634_v56  ;;  %v4402_v55 = vld [vmem:[#allocation28 + $0xe0] sm:$0xff]  ;;  %v4399_v56 = vld [vmem:[#allocation28 + $0xc8] sm:$0xff] }
 0xec4   : > { %4285 = vmatpush1.bf16.msra.mxu1 %v8635_v57  ;;  %v4403_v57 = vld [vmem:[#allocation28 + $0xe8] sm:$0xff] }
 0xec5   : > { %4164 = vmatpush1.bf16.msra.mxu0 %v8632_v58  ;;  %4286 = vmatprep.subr.bf16.mxu1 %v8643_v59  ;;  %v7447_v58 = vcombine.low %v4390_v46, %v4394_v47  ;;  %v7449_v59 = vcombine.low %v4391_v48, %v4395_v49  ;;  %v4446_v46 = vld [vmem:[#allocation28 + $0x240] sm:$0xff]  ;;  %v4447_v47 = vld [vmem:[#allocation28 + $0x248] sm:$0xff]  ;;  %v7495_v49 = vcombine.low %v4438_v38, %v4442_v40 }
 0xec6   : > { %4165 = vmatprep.subr.bf16.mxu0 %v8640_v62  ;;  %v7456_v62 = vcombine.high %v4398_v54, %v4402_v55  ;;  %v4451_v48 = vld [vmem:[#allocation28 + $0x268] sm:$0xff] }
 0xec8   : > { %4287 = vmatpush1.bf16.msra.mxu1 %v8641_v61  ;;  %v7458_v61 = vcombine.high %v4399_v56, %v4403_v57 }
 0xec9   : > { %4166 = vmatpush1.bf16.msra.mxu0 %v8638_v3  ;;  %5356 = vmatprep.subr.bf16.mxu1 %v7434_v43  ;;  %v4406_v3 = vld [vmem:[#allocation28 + $0x100] sm:$0xff] }
 0xeca   : > { %5315 = vmatprep.subr.bf16.mxu0 %v7432_v35 }
 0xf7e   : > { %v4063_v5 = vpop.f32.mrb[36].mxu1 }
 0xf7f   : > { %v4017_v7 = vpop.f32.mrb[36].mxu0  ;;  %v4070_v8 = vpack.c.bf16 %v4063_v5, %v4063_v5  ;;  %v7922_v9 = vpop.f32.mrb[37].mxu1  ;;  %v4410_v5 = vld [vmem:[#allocation28 + $0x120] sm:$0xff] }
 0xf80   : > { %v4069_v10 = vpack.c.bf16 %v4017_v7, %v4017_v7  ;;  %v7916_v11 = vpop.f32.mrb[37].mxu0  ;;  %v4066_v37 = vpop.f32.mrb[38].mxu1  ;;  %v4407_v7 = vld [vmem:[#allocation28 + $0x108] sm:$0xff]  ;;  %v7455_v9 = vcombine.low %v4398_v54, %v4402_v55  ;;  %v4458_v54 = vld [vmem:[#allocation28 + $0x2a0] sm:$0xff] }
 0xf81   : > { %v4020_v39 = vpop.f32.mrb[38].mxu0  ;;  %v7923_v12 = vpop.f32.mrb[39].mxu1  ;;  %4305 = vmatmul.mubr.bf16.vlgmr.msra.gmra.mrb[40].mxu1 %v4070_v8  ;;  %v4411_v8 = vld [vmem:[#allocation28 + $0x128] sm:$0xff]  ;;  %v7464_v11 = vcombine.high %v4406_v3, %v4410_v5 }
 0xf82   : > { %v7917_v13 = vpop.f32.mrb[39].mxu0  ;;  %4184 = vmatmul.mubr.bf16.vlgmr.msra.gmra.mrb[40].mxu0 %v4069_v10  ;;  %5357 = vmatpush1.bf16.msra.mxu1 %v7433_v42  ;;  %v7457_v10 = vcombine.low %v4399_v56, %v4403_v57  ;;  %v7466_v37 = vcombine.high %v4407_v7, %v4411_v8  ;;  %v4414_v39 = vld [vmem:[#allocation28 + $0x140] sm:$0xff]  ;;  %v4443_v42 = vld [vmem:[#allocation28 + $0x228] sm:$0xff] }
 0xf83   : > { %5316 = vmatpush1.bf16.msra.mxu0 %v7431_v34  ;;  %v4418_v12 = vld [vmem:[#allocation28 + $0x160] sm:$0xff]  ;;  %v4415_v13 = vld [vmem:[#allocation28 + $0x148] sm:$0xff] }
 0xf84   : > { %5317 = vmatprep.subr.bf16.mxu0 %v7440_v44  ;;  %v4455_v55 = vld [vmem:[#allocation28 + $0x288] sm:$0xff] }
 0xf85   : > { %v4459_v56 = vld [vmem:[#allocation28 + $0x2a8] sm:$0xff] }
 0xf87   : > { %5318 = vmatpush1.bf16.msra.mxu0 %v7439_v50  ;;  %v7497_v50 = vcombine.low %v4439_v41, %v4443_v42 }
 0xf88   : > { %5319 = vmatprep.subr.bf16.mxu0 %v7448_v52  ;;  %v7506_v52 = vcombine.high %v4447_v47, %v4451_v48 }
 0xf8b   : > { %5320 = vmatpush1.bf16.msra.mxu0 %v7447_v58  ;;  %v7505_v58 = vcombine.low %v4447_v47, %v4451_v48  ;;  %v4495_v47 = vld [vmem:[#allocation28 + $0x3c8] sm:$0xff] }
 0xf8c   : > { %5321 = vmatprep.subr.bf16.mxu0 %v7456_v62  ;;  %v7514_v62 = vcombine.high %v4455_v55, %v4459_v56 }
 0xf8f   : > { %5322 = vmatpush1.bf16.msra.mxu0 %v7455_v9 }
 0xf90   : > { %5323 = vmatprep.subr.bf16.mxu0 %v7464_v11 }
0x1054   : > { %v4306_v14 = vpop.f32.mrb[40].mxu1 }
0x1055   : > { %v4185_v16 = vpop.f32.mrb[40].mxu0  ;;  %v4308_v17 = vpop.f32.mrb[41].mxu1 }
0x1056   : > { %v4313_v19 = vadd.f32 %v4306_v14, %v4185_v16  ;;  %v4187_v20 = vpop.f32.mrb[41].mxu0  ;;  %v4310_v21 = vpop.f32.mrb[42].mxu1  ;;  %v7463_v14 = vcombine.low %v4406_v3, %v4410_v5  ;;  %v7472_v16 = vcombine.high %v4414_v39, %v4418_v12  ;;  %v7513_v3 = vcombine.low %v4455_v55, %v4459_v56  ;;  %v4377_v55 = vld [vmem:[#allocation28 + $0x18] sm:$0xff] }
0x1057   : > { %v4314_v22 = vadd.f32 %v4308_v17, %v4187_v20  ;;  %v4189_v23 = vpop.f32.mrb[42].mxu0  ;;  %v4311_v24 = vpop.f32.mrb[43].mxu1  ;;  %v7474_v17 = vcombine.high %v4415_v13, %v4419_v4  ;;  %v4423_v20 = vld [vmem:[#allocation28 + $0x188] sm:$0xff] }
0x1058   : > { %v4326_v25 = vadd.f32 %v4319_v15, %v4313_v19  ;;  %v4190_v26 = vpop.f32.mrb[43].mxu0  ;;  %v7465_v15 = vcombine.low %v4407_v7, %v4411_v8  ;;  %v4426_v19 = vld [vmem:[#allocation28 + $0x1a0] sm:$0xff]  ;;  %v4427_v21 = vld [vmem:[#allocation28 + $0x1a8] sm:$0xff]  ;;  %5324 = vmatpush1.bf16.msra.mxu0 %v7463_v14  ;;  %v7473_v23 = vcombine.low %v4415_v13, %v4419_v4 }
0x1059   : > { %v4327_v27 = vadd.f32 %v4323_v18, %v4314_v22  ;;  %v4422_v18 = vld [vmem:[#allocation28 + $0x180] sm:$0xff]  ;;  %v7471_v22 = vcombine.low %v4414_v39, %v4418_v12  ;;  %5325 = vmatprep.subr.bf16.mxu0 %v7472_v16  ;;  %v7481_v33 = vcombine.low %v4423_v20, %v4427_v21  ;;  %v4463_v13 = vld [vmem:[#allocation28 + $0x2c8] sm:$0xff] }
0x105a   : > { %v10896_v28 = vadd.f32 %v4326_v25, %v10854_v60  ;;  %v4383_v60 = vld [vmem:[#allocation28 + $0x48] sm:$0xff]  ;;  %v7480_v24 = vcombine.high %v4422_v18, %v4426_v19  ;;  %v7482_v25 = vcombine.high %v4423_v20, %v4427_v21  ;;  %v4430_v26 = vld [vmem:[#allocation28 + $0x1c0] sm:$0xff]  ;;  %v7479_v32 = vcombine.low %v4422_v18, %v4426_v19 }
0x105b   : > { %v10899_v29 = vadd.f32 %v4327_v27, %v10857_v63  ;;  %v7442_v63 = vcombine.high %v4383_v60, %v4387_v45  ;;  %v7441_v51 = vcombine.low %v4383_v60, %v4387_v45  ;;  %v4434_v27 = vld [vmem:[#allocation28 + $0x1e0] sm:$0xff]  ;;  %v7496_v60 = vcombine.high %v4438_v38, %v4442_v40  ;;  %v4467_v14 = vld [vmem:[#allocation28 + $0x2e8] sm:$0xff] }
0x105c   : > { %5326 = vmatpush1.bf16.msra.mxu0 %v7471_v22  ;;  %v7488_v34 = vcombine.high %v4430_v26, %v4434_v27  ;;  %v7487_v43 = vcombine.low %v4430_v26, %v4434_v27  ;;  %v7498_v45 = vcombine.high %v4439_v41, %v4443_v42  ;;  %v4462_v39 = vld [vmem:[#allocation28 + $0x2c0] sm:$0xff]  ;;  %v7521_v16 = vcombine.low %v4463_v13, %v4467_v14  ;;  %v4471_v20 = vld [vmem:[#allocation28 + $0x308] sm:$0xff] }
0x105d   : > { %v4332_v30 = vadd.f32 %v10899_v29, %v10896_v28  ;;  %5358 = vmatprep.subr.bf16.mxu1 %v7442_v63  ;;  %5327 = vmatprep.subr.bf16.mxu0 %v7480_v24  ;;  %v4450_v63 = vld [vmem:[#allocation28 + $0x260] sm:$0xff]  ;;  %v4475_v22 = vld [vmem:[#allocation28 + $0x328] sm:$0xff] }
0x105e   : > { %5359 = vmatpush1.bf16.msra.mxu1 %v7441_v51  ;;  %v7504_v51 = vcombine.high %v4446_v46, %v4450_v63  ;;  %v7503_v57 = vcombine.low %v4446_v46, %v4450_v63  ;;  %v4466_v12 = vld [vmem:[#allocation28 + $0x2e0] sm:$0xff]  ;;  %v7529_v24 = vcombine.low %v4471_v20, %v4475_v22  ;;  %v4487_v41 = vld [vmem:[#allocation28 + $0x388] sm:$0xff] }
0x105f   : > { %4333 = vadd.xlane.f32.xlu0 %v4332_v30  ;;  %5360 = vmatprep.subr.bf16.mxu1 %v7450_v53  ;;  %v4431_v30 = vld [vmem:[#allocation28 + $0x1c8] sm:$0xff]  ;;  %v4454_v53 = vld [vmem:[#allocation28 + $0x280] sm:$0xff]  ;;  %v7520_v4 = vcombine.high %v4462_v39, %v4466_v12 }
0x1060   : > { %v7490_v35 = vcombine.high %v4431_v30, %v4435_v31  ;;  %5328 = vmatpush1.bf16.msra.mxu0 %v7479_v32  ;;  %v7489_v44 = vcombine.low %v4431_v30, %v4435_v31  ;;  %v4470_v18 = vld [vmem:[#allocation28 + $0x300] sm:$0xff]  ;;  %v4479_v30 = vld [vmem:[#allocation28 + $0x348] sm:$0xff] }
0x1061   : > { %5329 = vmatprep.subr.bf16.mxu0 %v7488_v34  ;;  %v4474_v19 = vld [vmem:[#allocation28 + $0x320] sm:$0xff]  ;;  %v4483_v32 = vld [vmem:[#allocation28 + $0x368] sm:$0xff] }
0x1062   : > { %5361 = vmatpush1.bf16.msra.mxu1 %v7449_v59  ;;  %v7512_v59 = vcombine.high %v4454_v53, %v4458_v54  ;;  %v7528_v21 = vcombine.high %v4470_v18, %v4474_v19  ;;  %v4478_v26 = vld [vmem:[#allocation28 + $0x340] sm:$0xff]  ;;  %v7537_v34 = vcombine.low %v4479_v30, %v4483_v32 }
0x1063   : > { %5362 = vmatprep.subr.bf16.mxu1 %v7458_v61  ;;  %v7511_v61 = vcombine.low %v4454_v53, %v4458_v54  ;;  %v4482_v27 = vld [vmem:[#allocation28 + $0x360] sm:$0xff]  ;;  %v4376_v53 = vld [vmem:[#allocation28 + $0x10] sm:$0xff] }
0x1064   : > { %5330 = vmatpush1.bf16.msra.mxu0 %v7487_v43  ;;  %v7536_v31 = vcombine.high %v4478_v26, %v4482_v27  ;;  %v4486_v38 = vld [vmem:[#allocation28 + $0x380] sm:$0xff]  ;;  %v4491_v43 = vld [vmem:[#allocation28 + $0x3a8] sm:$0xff]  ;;  %v4380_v54 = vld [vmem:[#allocation28 + $0x30] sm:$0xff] }
0x1065   : > { %5331 = vmatprep.subr.bf16.mxu0 %v7496_v60  ;;  %v4490_v40 = vld [vmem:[#allocation28 + $0x3a0] sm:$0xff]  ;;  %v7545_v60 = vcombine.low %v4487_v41, %v4491_v43  ;;  %v7436_v56 = vcombine.high %v4376_v53, %v4380_v54 }
0x1066   : > { %5363 = vmatpush1.bf16.msra.mxu1 %v7457_v10  ;;  %v7544_v42 = vcombine.high %v4486_v38, %v4490_v40  ;;  %v4494_v46 = vld [vmem:[#allocation28 + $0x3c0] sm:$0xff] }
0x1067   : > { %5364 = vmatprep.subr.bf16.mxu1 %v7466_v37  ;;  %v4498_v63 = vld [vmem:[#allocation28 + $0x3e0] sm:$0xff] }
0x1068   : > { %5332 = vmatpush1.bf16.msra.mxu0 %v7495_v49  ;;  %v7551_v48 = vcombine.low %v4494_v46, %v4498_v63  ;;  %v7552_v49 = vcombine.high %v4494_v46, %v4498_v63  ;;  %v4412_v46 = vld [vmem:[#allocation28 + $0x130] sm:$0xff]  ;;  %v4409_v63 = vld [vmem:[#allocation28 + $0x118] sm:$0xff] }
0x1069   : > { %5333 = vmatprep.subr.bf16.mxu0 %v7504_v51 }
0x106a   : > { %5365 = vmatpush1.bf16.msra.mxu1 %v7465_v15  ;;  %v7519_v15 = vcombine.low %v4462_v39, %v4466_v12 }
0x106b   : > { %5366 = vmatprep.subr.bf16.mxu1 %v7474_v17  ;;  %v7522_v17 = vcombine.high %v4463_v13, %v4467_v14 }
0x106c   : > { %5334 = vmatpush1.bf16.msra.mxu0 %v7503_v57  ;;  %v4381_v57 = vld [vmem:[#allocation28 + $0x38] sm:$0xff] }
0x106d   : > { %5335 = vmatprep.subr.bf16.mxu0 %v7512_v59  ;;  %v7437_v59 = vcombine.low %v4377_v55, %v4381_v57 }
0x106e   : > { %5367 = vmatpush1.bf16.msra.mxu1 %v7473_v23  ;;  %v7527_v23 = vcombine.low %v4470_v18, %v4474_v19  ;;  %v4384_v19 = vld [vmem:[#allocation28 + $0x50] sm:$0xff] }
0x106f   : > { %5368 = vmatprep.subr.bf16.mxu1 %v7482_v25  ;;  %v7530_v25 = vcombine.high %v4471_v20, %v4475_v22  ;;  %v4388_v20 = vld [vmem:[#allocation28 + $0x70] sm:$0xff]  ;;  %v4389_v22 = vld [vmem:[#allocation28 + $0x78] sm:$0xff] }
0x1070   : > { %5336 = vmatpush1.bf16.msra.mxu0 %v7511_v61 }
0x1071   : > { %5337 = vmatprep.subr.bf16.mxu0 %v7520_v4 }
0x1072   : > { %5369 = vmatpush1.bf16.msra.mxu1 %v7481_v33  ;;  %v7535_v33 = vcombine.low %v4478_v26, %v4482_v27  ;;  %v4396_v26 = vld [vmem:[#allocation28 + $0xb0] sm:$0xff]  ;;  %v4393_v27 = vld [vmem:[#allocation28 + $0x98] sm:$0xff] }
0x1073   : > { %5370 = vmatprep.subr.bf16.mxu1 %v7490_v35  ;;  %v7538_v35 = vcombine.high %v4479_v30, %v4483_v32  ;;  %v4397_v30 = vld [vmem:[#allocation28 + $0xb8] sm:$0xff] }
0x1074   : > { %5338 = vmatpush1.bf16.msra.mxu0 %v7519_v15 }
0x1075   : > { %5339 = vmatprep.subr.bf16.mxu0 %v7528_v21  ;;  %v4385_v21 = vld [vmem:[#allocation28 + $0x58] sm:$0xff] }
0x1076   : > { %5371 = vmatpush1.bf16.msra.mxu1 %v7489_v44  ;;  %v7543_v44 = vcombine.low %v4486_v38, %v4490_v40  ;;  %v7445_v32 = vcombine.low %v4385_v21, %v4389_v22  ;;  %v4404_v38 = vld [vmem:[#allocation28 + $0xf0] sm:$0xff]  ;;  %v4401_v40 = vld [vmem:[#allocation28 + $0xd8] sm:$0xff] }
0x1077   : > { %5372 = vmatprep.subr.bf16.mxu1 %v7498_v45  ;;  %v7546_v45 = vcombine.high %v4487_v41, %v4491_v43  ;;  %v4405_v41 = vld [vmem:[#allocation28 + $0xf8] sm:$0xff]  ;;  %v7453_v43 = vcombine.low %v4393_v27, %v4397_v30 }
0x1078   : > { %5340 = vmatpush1.bf16.msra.mxu0 %v7527_v23 }
0x1079   : > { %5341 = vmatprep.subr.bf16.mxu0 %v7536_v31  ;;  %v7443_v31 = vcombine.low %v4384_v19, %v4388_v20 }
0x107a   : > { %5373 = vmatpush1.bf16.msra.mxu1 %v7497_v50  ;;  %v4499_v50 = vld [vmem:[#allocation28 + $0x3e8] sm:$0xff] }
0x107b   : > { %5374 = vmatprep.subr.bf16.mxu1 %v7506_v52  ;;  %v7553_v51 = vcombine.low %v4495_v47, %v4499_v50  ;;  %v7554_v52 = vcombine.high %v4495_v47, %v4499_v50  ;;  %v4413_v47 = vld [vmem:[#allocation28 + $0x138] sm:$0xff] }
0x107c   : > { %5342 = vmatpush1.bf16.msra.mxu0 %v7535_v33 }
0x107d   : > { %5343 = vmatprep.subr.bf16.mxu0 %v7544_v42 }
0x107e   : > { %5375 = vmatpush1.bf16.msra.mxu1 %v7505_v58  ;;  %v7435_v58 = vcombine.low %v4376_v53, %v4380_v54  ;;  %v4420_v53 = vld [vmem:[#allocation28 + $0x170] sm:$0xff]  ;;  %v4417_v54 = vld [vmem:[#allocation28 + $0x158] sm:$0xff] }
0x107f   : > { %5376 = vmatprep.subr.bf16.mxu1 %v7514_v62  ;;  %v7438_v62 = vcombine.high %v4377_v55, %v4381_v57  ;;  %v4421_v55 = vld [vmem:[#allocation28 + $0x178] sm:$0xff]  ;;  %v7469_v57 = vcombine.low %v4409_v63, %v4413_v47 }
0x1080   : > { %5344 = vmatpush1.bf16.msra.mxu0 %v7543_v44 }
0x1081   : > { %5345 = vmatprep.subr.bf16.mxu0 %v7552_v49  ;;  %v7461_v49 = vcombine.low %v4401_v40, %v4405_v41 }
0x1082   : > { %5377 = vmatpush1.bf16.msra.mxu1 %v7513_v3 }
0x1083   : > { %5378 = vmatprep.subr.bf16.mxu1 %v7522_v17 }
0x1084   : > { %5346 = vmatpush1.bf16.msra.mxu0 %v7551_v48 }
0x1085   : > { %5397 = vmatprep.subr.bf16.mxu0 %v7436_v56 }
0x1086   : > { %5379 = vmatpush1.bf16.msra.mxu1 %v7521_v16 }
0x1087   : > { %5380 = vmatprep.subr.bf16.mxu1 %v7530_v25  ;;  %v4392_v25 = vld [vmem:[#allocation28 + $0x90] sm:$0xff] }
0x1088   : > { %v7452_v33 = vcombine.high %v4392_v25, %v4396_v26  ;;  %v7451_v42 = vcombine.low %v4392_v25, %v4396_v26  ;;  %v4452_v26 = vld [vmem:[#allocation28 + $0x270] sm:$0xff] }
0x108a   : > { %5381 = vmatpush1.bf16.msra.mxu1 %v7529_v24 }
0x108b   : > { %5382 = vmatprep.subr.bf16.mxu1 %v7538_v35  ;;  %v4400_v35 = vld [vmem:[#allocation28 + $0xd0] sm:$0xff] }
0x108c   : > { %v7460_v44 = vcombine.high %v4400_v35, %v4404_v38  ;;  %v7459_v48 = vcombine.low %v4400_v35, %v4404_v38  ;;  %v4456_v35 = vld [vmem:[#allocation28 + $0x290] sm:$0xff] }
0x108d   : > { %v4460_v38 = vld [vmem:[#allocation28 + $0x2b0] sm:$0xff] }
0x108e   : > { %5383 = vmatpush1.bf16.msra.mxu1 %v7537_v34  ;;  %v7454_v34 = vcombine.high %v4393_v27, %v4397_v30  ;;  %v4449_v27 = vld [vmem:[#allocation28 + $0x258] sm:$0xff] }
0x108f   : > { %5384 = vmatprep.subr.bf16.mxu1 %v7546_v45  ;;  %v4408_v45 = vld [vmem:[#allocation28 + $0x110] sm:$0xff]  ;;  %v4453_v30 = vld [vmem:[#allocation28 + $0x278] sm:$0xff] }
0x1090   : > { %v7468_v50 = vcombine.high %v4408_v45, %v4412_v46  ;;  %v7467_v56 = vcombine.low %v4408_v45, %v4412_v46  ;;  %v4464_v45 = vld [vmem:[#allocation28 + $0x2d0] sm:$0xff] }
0x1091   : > { %v4468_v46 = vld [vmem:[#allocation28 + $0x2f0] sm:$0xff] }
0x1092   : > { %5385 = vmatpush1.bf16.msra.mxu1 %v7545_v60  ;;  %v7462_v60 = vcombine.high %v4401_v40, %v4405_v41  ;;  %v4457_v40 = vld [vmem:[#allocation28 + $0x298] sm:$0xff] }
0x1093   : > { %5386 = vmatprep.subr.bf16.mxu1 %v7554_v52  ;;  %v4416_v52 = vld [vmem:[#allocation28 + $0x150] sm:$0xff]  ;;  %v4461_v41 = vld [vmem:[#allocation28 + $0x2b8] sm:$0xff] }
0x1096   : > { %5387 = vmatpush1.bf16.msra.mxu1 %v7553_v51  ;;  %v7470_v51 = vcombine.high %v4409_v63, %v4413_v47  ;;  %v4465_v63 = vld [vmem:[#allocation28 + $0x2d8] sm:$0xff] }
0x1097   : > { %5438 = vmatprep.subr.bf16.mxu1 %v7438_v62  ;;  %v4424_v62 = vld [vmem:[#allocation28 + $0x190] sm:$0xff]  ;;  %v4469_v47 = vld [vmem:[#allocation28 + $0x2f8] sm:$0xff] }
0x10ec   : > { %v4334_v5 = vpop.xlane.xlu0 %4333 }
0x10ed   : > { %v4335_v7 = vmul.f32 0.00390625, %v4334_v5 }
0x10ef   : > { %v10904_v8 = vsub.f32 %v10896_v28, %v4335_v7  ;;  %v10907_v9 = vsub.f32 %v10899_v29, %v4335_v7  ;;  %v4330_v7 = vld [vmem:[#allocation10] sm:$0x3] }
0x10f1   : > { %v4338_v10 = vmul.f32 %v10904_v8, %v10904_v8  ;;  %v4339_v11 = vmul.f32 %v10907_v9, %v10907_v9 }
0x10f3   : > { %v4340_v37 = vadd.f32 %v4339_v11, %v4338_v10  ;;  %v4331_v10 = vld [vmem:[#allocation11] sm:$0x3]  ;;  %v4356_v11 = vrot.slane %v4330_v7, %v10788_v1 }
0x10f4   : > { %v4369_v4 = vrot.slane %v4331_v10, %v10788_v1  ;;  %v4365_v14 = vrot.slane %v4331_v10, %v10791_v2  ;;  %v7477_v10 = vcombine.low %v4417_v54, %v4421_v55 }
0x10f5   : > { %4341 = vadd.xlane.f32.xlu1 %v4340_v37  ;;  %v4352_v37 = vrot.slane %v4330_v7, %v10791_v2  ;;  %v7475_v7 = vcombine.low %v4416_v52, %v4420_v53 }
0x1182   : > { %v4342_v61 = vpop.xlane.xlu1 %4341 }
0x1183   : > { %v4343_v3 = vmul.f32 0.00390625, %v4342_v61  ;;  %v4428_v61 = vld [vmem:[#allocation28 + $0x1b0] sm:$0xff] }
0x1185   : > { %v4344_v5 = vadd.f32 1e-05, %v4343_v3  ;;  %v4425_v3 = vld [vmem:[#allocation28 + $0x198] sm:$0xff] }
0x1187   : > { %8896 = vrsqrt.f32 %v4344_v5  ;;  %v4429_v5 = vld [vmem:[#allocation28 + $0x1b8] sm:$0xff] }
0x1191   : > { %v8897_v39 = vpop.eup %8896 }
0x1192   : > { %v4346_v12 = vmul.f32 %v8897_v39, %v10904_v8  ;;  %v4347_v13 = vmul.f32 %v8897_v39, %v10907_v9  ;;  %v7444_v8 = vcombine.high %v4384_v19, %v4388_v20  ;;  %v7446_v9 = vcombine.high %v4385_v21, %v4389_v22  ;;  %v4432_v39 = vld [vmem:[#allocation28 + $0x1d0] sm:$0xff]  ;;  %v4441_v20 = vld [vmem:[#allocation28 + $0x218] sm:$0xff] }
0x1193   : > { %v4444_v19 = vld [vmem:[#allocation28 + $0x230] sm:$0xff]  ;;  %v4445_v21 = vld [vmem:[#allocation28 + $0x238] sm:$0xff] }
0x1194   : > { %v4360_v15 = vmul.f32 %v4356_v11, %v4347_v13  ;;  %v4359_v16 = vmul.f32 %v4352_v37, %v4346_v12  ;;  %v7484_v11 = vcombine.high %v4424_v62, %v4428_v61  ;;  %v7486_v37 = vcombine.high %v4425_v3, %v4429_v5  ;;  %v4436_v12 = vld [vmem:[#allocation28 + $0x1f0] sm:$0xff]  ;;  %v4433_v13 = vld [vmem:[#allocation28 + $0x1d8] sm:$0xff] }
0x1195   : > { %v7491_v22 = vcombine.low %v4432_v39, %v4436_v12 }
0x1196   : > { %v4373_v17 = vadd.f32 %v4369_v4, %v4360_v15  ;;  %v4372_v18 = vadd.f32 %v4365_v14, %v4359_v16  ;;  %v4437_v4 = vld [vmem:[#allocation28 + $0x1f8] sm:$0xff]  ;;  %v7483_v14 = vcombine.low %v4424_v62, %v4428_v61  ;;  %v7485_v15 = vcombine.low %v4425_v3, %v4429_v5  ;;  %v4480_v62 = vld [vmem:[#allocation28 + $0x350] sm:$0xff] }
0x1197   : > { %v7492_v16 = vcombine.high %v4432_v39, %v4436_v12  ;;  %v4484_v61 = vld [vmem:[#allocation28 + $0x370] sm:$0xff]  ;;  %v4481_v3 = vld [vmem:[#allocation28 + $0x358] sm:$0xff] }
0x1198   : > { %v4633_v23 = vpack.c.bf16 %v4373_v17, %v4373_v17  ;;  %v10919_v24 = vpack.c.bf16 %v4372_v18, %v4372_v18  ;;  %v7494_v17 = vcombine.high %v4433_v13, %v4437_v4  ;;  %v4440_v18 = vld [vmem:[#allocation28 + $0x210] sm:$0xff]  ;;  %v4485_v5 = vld [vmem:[#allocation28 + $0x378] sm:$0xff] }
0x1199   : > { %v7500_v25 = vcombine.high %v4440_v18, %v4444_v19  ;;  %v4488_v39 = vld [vmem:[#allocation28 + $0x390] sm:$0xff] }
0x119a   : > { %5347 = vmatprep.mubr.bf16.mxu0 %v4633_v23  ;;  %5388 = vmatprep.mubr.bf16.mxu1 %v4633_v23  ;;  %v4492_v12 = vld [vmem:[#allocation28 + $0x3b0] sm:$0xff] }
0x119b   : > { %5348 = vmatmul.mubr.bf16.vlgmr.msra.gmra.mrb[44].mxu0 %v10919_v24  ;;  %5389 = vmatmul.mubr.bf16.vlgmr.msra.gmra.mrb[44].mxu1 %v10919_v24 }
0x119c   : > { %5398 = vmatpush1.bf16.msra.mxu0 %v7435_v58  ;;  %5439 = vmatpush1.bf16.msra.mxu1 %v7437_v59  ;;  %v7476_v58 = vcombine.high %v4416_v52, %v4420_v53  ;;  %v7478_v59 = vcombine.high %v4417_v54, %v4421_v55  ;;  %v4472_v52 = vld [vmem:[#allocation28 + $0x310] sm:$0xff]  ;;  %v4473_v54 = vld [vmem:[#allocation28 + $0x318] sm:$0xff] }
0x119d   : > { %5429 = vmatprep.mubr.bf16.mxu0 %v4633_v23  ;;  %5470 = vmatprep.mubr.bf16.mxu1 %v4633_v23  ;;  %v7493_v23 = vcombine.low %v4433_v13, %v4437_v4  ;;  %v4476_v53 = vld [vmem:[#allocation28 + $0x330] sm:$0xff]  ;;  %v4477_v55 = vld [vmem:[#allocation28 + $0x338] sm:$0xff] }
0x119e   : > { %5399 = vmatprep.subr.bf16.mxu0 %v7444_v8  ;;  %5440 = vmatprep.subr.bf16.mxu1 %v7446_v9  ;;  %v7502_v8 = vcombine.high %v4441_v20, %v4445_v21  ;;  %v4448_v9 = vld [vmem:[#allocation28 + $0x250] sm:$0xff]  ;;  %v4489_v13 = vld [vmem:[#allocation28 + $0x398] sm:$0xff] }
0x119f   : > { %v4493_v4 = vld [vmem:[#allocation28 + $0x3b8] sm:$0xff] }
0x11a0   : > { %5400 = vmatpush1.bf16.msra.mxu0 %v7443_v31  ;;  %5441 = vmatpush1.bf16.msra.mxu1 %v7445_v32  ;;  %v7499_v31 = vcombine.low %v4440_v18, %v4444_v19  ;;  %v7501_v32 = vcombine.low %v4441_v20, %v4445_v21  ;;  %v4496_v18 = vld [vmem:[#allocation28 + $0x3d0] sm:$0xff]  ;;  %v4497_v20 = vld [vmem:[#allocation28 + $0x3d8] sm:$0xff] }
0x11a1   : > { %5401 = vmatprep.subr.bf16.mxu0 %v7452_v33  ;;  %5442 = vmatprep.subr.bf16.mxu1 %v7454_v34  ;;  %v7508_v33 = vcombine.high %v4448_v9, %v4452_v26  ;;  %v7510_v34 = vcombine.high %v4449_v27, %v4453_v30  ;;  %v4500_v19 = vld [vmem:[#allocation28 + $0x3f0] sm:$0xff]  ;;  %v4501_v21 = vld [vmem:[#allocation28 + $0x3f8] sm:$0xff] }
0x11a4   : > { %5402 = vmatpush1.bf16.msra.mxu0 %v7451_v42  ;;  %5443 = vmatpush1.bf16.msra.mxu1 %v7453_v43  ;;  %v7507_v42 = vcombine.low %v4448_v9, %v4452_v26  ;;  %v7509_v43 = vcombine.low %v4449_v27, %v4453_v30  ;;  %v7555_v9 = vcombine.low %v4496_v18, %v4500_v19  ;;  %v8646_v27 = vld [vmem:[#allocation31 + $0x4] ss:$8 sps:$4 sm:$0xff]  }
0x11a5   : > { %5403 = vmatprep.subr.bf16.mxu0 %v7460_v44  ;;  %5444 = vmatprep.subr.bf16.mxu1 %v7462_v60  ;;  %v7516_v44 = vcombine.high %v4456_v35, %v4460_v38  ;;  %v7518_v60 = vcombine.high %v4457_v40, %v4461_v41  ;;  %v7557_v26 = vcombine.low %v4497_v20, %v4501_v21  ;;  %v8649_v30 = vld [vmem:[#allocation31 + $0x104] ss:$8 sps:$4 sm:$0xff]  }
0x11a8   : > { %5404 = vmatpush1.bf16.msra.mxu0 %v7459_v48  ;;  %5445 = vmatpush1.bf16.msra.mxu1 %v7461_v49  ;;  %v7515_v48 = vcombine.low %v4456_v35, %v4460_v38  ;;  %v7517_v49 = vcombine.low %v4457_v40, %v4461_v41  ;;  %v8650_v35 = vld [vmem:[#allocation31 + $0x10] ss:$8 sps:$4 sm:$0xff]   ;;  %v8658_v40 = vld [vmem:[#allocation31 + $0x24] ss:$8 sps:$4 sm:$0xff]  }
0x11a9   : > { %5405 = vmatprep.subr.bf16.mxu0 %v7468_v50  ;;  %5446 = vmatprep.subr.bf16.mxu1 %v7470_v51  ;;  %v7524_v50 = vcombine.high %v4464_v45, %v4468_v46  ;;  %v7526_v51 = vcombine.high %v4465_v63, %v4469_v47  ;;  %v8653_v38 = vld [vmem:[#allocation31 + $0x110] ss:$8 sps:$4 sm:$0xff]   ;;  %v8661_v41 = vld [vmem:[#allocation31 + $0x124] ss:$8 sps:$4 sm:$0xff]  }
0x11ac   : > { %5406 = vmatpush1.bf16.msra.mxu0 %v7467_v56  ;;  %5447 = vmatpush1.bf16.msra.mxu1 %v7469_v57  ;;  %v7523_v56 = vcombine.low %v4464_v45, %v4468_v46  ;;  %v7525_v57 = vcombine.low %v4465_v63, %v4469_v47  ;;  %v8662_v45 = vld [vmem:[#allocation31 + $0x30] ss:$8 sps:$4 sm:$0xff]   ;;  %v8670_v46 = vld [vmem:[#allocation31 + $0x44] ss:$8 sps:$4 sm:$0xff]   ;;  %v8668_v47 = vld [vmem:[#allocation31 + $0x40] ss:$8 sps:$4 sm:$0xff]  }
0x11ad   : > { %5407 = vmatprep.subr.bf16.mxu0 %v7476_v58  ;;  %5448 = vmatprep.subr.bf16.mxu1 %v7478_v59  ;;  %v7532_v58 = vcombine.high %v4472_v52, %v4476_v53  ;;  %v7534_v59 = vcombine.high %v4473_v54, %v4477_v55  ;;  %v8673_v63 = vld [vmem:[#allocation31 + $0x144] ss:$8 sps:$4 sm:$0xff]  }
0x11b0   : > { %5408 = vmatpush1.bf16.msra.mxu0 %v7475_v7  ;;  %5449 = vmatpush1.bf16.msra.mxu1 %v7477_v10  ;;  %v7531_v7 = vcombine.low %v4472_v52, %v4476_v53  ;;  %v7533_v10 = vcombine.low %v4473_v54, %v4477_v55  ;;  %v8677_v52 = vld [vmem:[#allocation31 + $0x150] ss:$8 sps:$4 sm:$0xff]   ;;  %v8682_v53 = vld [vmem:[#allocation31 + $0x64] ss:$8 sps:$4 sm:$0xff]   ;;  %v8680_v55 = vld [vmem:[#allocation31 + $0x60] ss:$8 sps:$4 sm:$0xff]  }
0x11b1   : > { %5409 = vmatprep.subr.bf16.mxu0 %v7484_v11  ;;  %5450 = vmatprep.subr.bf16.mxu1 %v7486_v37  ;;  %v7540_v11 = vcombine.high %v4480_v62, %v4484_v61  ;;  %v7542_v37 = vcombine.high %v4481_v3, %v4485_v5  ;;  %v8685_v54 = vld [vmem:[#allocation31 + $0x164] ss:$8 sps:$4 sm:$0xff]  }
0x11b4   : > { %5410 = vmatpush1.bf16.msra.mxu0 %v7483_v14  ;;  %5451 = vmatpush1.bf16.msra.mxu1 %v7485_v15  ;;  %v7539_v14 = vcombine.low %v4480_v62, %v4484_v61  ;;  %v7541_v15 = vcombine.low %v4481_v3, %v4485_v5  ;;  %v8689_v62 = vld [vmem:[#allocation31 + $0x170] ss:$8 sps:$4 sm:$0xff]   ;;  %v8694_v61 = vld [vmem:[#allocation31 + $0x84] ss:$8 sps:$4 sm:$0xff]   ;;  %v8692_v5 = vld [vmem:[#allocation31 + $0x80] ss:$8 sps:$4 sm:$0xff]  }
0x11b5   : > { %5411 = vmatprep.subr.bf16.mxu0 %v7492_v16  ;;  %5452 = vmatprep.subr.bf16.mxu1 %v7494_v17  ;;  %v7548_v16 = vcombine.high %v4488_v39, %v4492_v12  ;;  %v7550_v17 = vcombine.high %v4489_v13, %v4493_v4  ;;  %v8697_v3 = vld [vmem:[#allocation31 + $0x184] ss:$8 sps:$4 sm:$0xff]  }
0x11b8   : > { %5412 = vmatpush1.bf16.msra.mxu0 %v7491_v22  ;;  %5453 = vmatpush1.bf16.msra.mxu1 %v7493_v23  ;;  %v7547_v22 = vcombine.low %v4488_v39, %v4492_v12  ;;  %v7549_v23 = vcombine.low %v4489_v13, %v4493_v4  ;;  %v8701_v39 = vld [vmem:[#allocation31 + $0x190] ss:$8 sps:$4 sm:$0xff]   ;;  %v8706_v12 = vld [vmem:[#allocation31 + $0xa4] ss:$8 sps:$4 sm:$0xff]   ;;  %v8704_v4 = vld [vmem:[#allocation31 + $0xa0] ss:$8 sps:$4 sm:$0xff]  }
0x11b9   : > { %5413 = vmatprep.subr.bf16.mxu0 %v7500_v25  ;;  %5454 = vmatprep.subr.bf16.mxu1 %v7502_v8  ;;  %v7556_v25 = vcombine.high %v4496_v18, %v4500_v19  ;;  %v7558_v8 = vcombine.high %v4497_v20, %v4501_v21  ;;  %v8709_v13 = vld [vmem:[#allocation31 + $0x1a4] ss:$8 sps:$4 sm:$0xff]   ;;  %v8713_v18 = vld [vmem:[#allocation31 + $0x1b0] ss:$8 sps:$4 sm:$0xff]   ;;  %v8716_v21 = vld [vmem:[#allocation31 + $0xc0] ss:$8 sps:$4 sm:$0xff]  }
0x11ba   : > { %v8718_v19 = vld [vmem:[#allocation31 + $0xc4] ss:$8 sps:$4 sm:$0xff]  }
0x11bb   : > { %v8721_v20 = vld [vmem:[#allocation31 + $0x1c4] ss:$8 sps:$4 sm:$0xff]  }
0x11bc   : > { %5414 = vmatpush1.bf16.msra.mxu0 %v7499_v31  ;;  %5455 = vmatpush1.bf16.msra.mxu1 %v7501_v32  ;;  %v8644_v31 = vld [vmem:[#allocation31] ss:$8 sps:$4 sm:$0xff]  }
0x11bd   : > { %5415 = vmatprep.subr.bf16.mxu0 %v7508_v33  ;;  %5456 = vmatprep.subr.bf16.mxu1 %v7510_v34  ;;  %v8647_v32 = vld [vmem:[#allocation31 + $0x100] ss:$8 sps:$4 sm:$0xff]   ;;  %v8652_v33 = vld [vmem:[#allocation31 + $0x14] ss:$8 sps:$4 sm:$0xff]  }
0x11be   : > { %v8655_v34 = vld [vmem:[#allocation31 + $0x114] ss:$8 sps:$4 sm:$0xff]  }
0x11c0   : > { %5416 = vmatpush1.bf16.msra.mxu0 %v7507_v42  ;;  %5457 = vmatpush1.bf16.msra.mxu1 %v7509_v43  ;;  %v8656_v42 = vld [vmem:[#allocation31 + $0x20] ss:$8 sps:$4 sm:$0xff]  }
0x11c1   : > { %5417 = vmatprep.subr.bf16.mxu0 %v7516_v44  ;;  %5458 = vmatprep.subr.bf16.mxu1 %v7518_v60  ;;  %v8659_v43 = vld [vmem:[#allocation31 + $0x120] ss:$8 sps:$4 sm:$0xff]   ;;  %v8664_v44 = vld [vmem:[#allocation31 + $0x34] ss:$8 sps:$4 sm:$0xff]  }
0x11c2   : > { %v8667_v60 = vld [vmem:[#allocation31 + $0x134] ss:$8 sps:$4 sm:$0xff]  }
0x11c4   : > { %5418 = vmatpush1.bf16.msra.mxu0 %v7515_v48  ;;  %5459 = vmatpush1.bf16.msra.mxu1 %v7517_v49  ;;  %v8671_v48 = vld [vmem:[#allocation31 + $0x140] ss:$8 sps:$4 sm:$0xff]   ;;  %v8676_v49 = vld [vmem:[#allocation31 + $0x54] ss:$8 sps:$4 sm:$0xff]  }
0x11c5   : > { %5419 = vmatprep.subr.bf16.mxu0 %v7524_v50  ;;  %5460 = vmatprep.subr.bf16.mxu1 %v7526_v51  ;;  %v8679_v50 = vld [vmem:[#allocation31 + $0x154] ss:$8 sps:$4 sm:$0xff]   ;;  %v8674_v51 = vld [vmem:[#allocation31 + $0x50] ss:$8 sps:$4 sm:$0xff]  }
0x11c8   : > { %5420 = vmatpush1.bf16.msra.mxu0 %v7523_v56  ;;  %5461 = vmatpush1.bf16.msra.mxu1 %v7525_v57  ;;  %v8683_v56 = vld [vmem:[#allocation31 + $0x160] ss:$8 sps:$4 sm:$0xff]   ;;  %v8688_v57 = vld [vmem:[#allocation31 + $0x74] ss:$8 sps:$4 sm:$0xff]  }
0x11c9   : > { %5421 = vmatprep.subr.bf16.mxu0 %v7532_v58  ;;  %5462 = vmatprep.subr.bf16.mxu1 %v7534_v59  ;;  %v8691_v58 = vld [vmem:[#allocation31 + $0x174] ss:$8 sps:$4 sm:$0xff]   ;;  %v8686_v59 = vld [vmem:[#allocation31 + $0x70] ss:$8 sps:$4 sm:$0xff]  }
0x11cc   : > { %5422 = vmatpush1.bf16.msra.mxu0 %v7531_v7  ;;  %5463 = vmatpush1.bf16.msra.mxu1 %v7533_v10  ;;  %v8695_v7 = vld [vmem:[#allocation31 + $0x180] ss:$8 sps:$4 sm:$0xff]   ;;  %v8700_v10 = vld [vmem:[#allocation31 + $0x94] ss:$8 sps:$4 sm:$0xff]  }
0x11cd   : > { %5423 = vmatprep.subr.bf16.mxu0 %v7540_v11  ;;  %5464 = vmatprep.subr.bf16.mxu1 %v7542_v37  ;;  %v8703_v11 = vld [vmem:[#allocation31 + $0x194] ss:$8 sps:$4 sm:$0xff]   ;;  %v8698_v37 = vld [vmem:[#allocation31 + $0x90] ss:$8 sps:$4 sm:$0xff]  }
0x11d0   : > { %5424 = vmatpush1.bf16.msra.mxu0 %v7539_v14  ;;  %5465 = vmatpush1.bf16.msra.mxu1 %v7541_v15  ;;  %v8707_v14 = vld [vmem:[#allocation31 + $0x1a0] ss:$8 sps:$4 sm:$0xff]   ;;  %v8712_v15 = vld [vmem:[#allocation31 + $0xb4] ss:$8 sps:$4 sm:$0xff]  }
0x11d1   : > { %5425 = vmatprep.subr.bf16.mxu0 %v7548_v16  ;;  %5466 = vmatprep.subr.bf16.mxu1 %v7550_v17  ;;  %v8715_v16 = vld [vmem:[#allocation31 + $0x1b4] ss:$8 sps:$4 sm:$0xff]   ;;  %v8710_v17 = vld [vmem:[#allocation31 + $0xb0] ss:$8 sps:$4 sm:$0xff]  }
0x11d4   : > { %5426 = vmatpush1.bf16.msra.mxu0 %v7547_v22  ;;  %5467 = vmatpush1.bf16.msra.mxu1 %v7549_v23  ;;  %v8719_v22 = vld [vmem:[#allocation31 + $0x1c0] ss:$8 sps:$4 sm:$0xff]   ;;  %v8724_v23 = vld [vmem:[#allocation31 + $0xd4] ss:$8 sps:$4 sm:$0xff]  }
0x11d5   : > { %5427 = vmatprep.subr.bf16.mxu0 %v7556_v25  ;;  %5468 = vmatprep.subr.bf16.mxu1 %v7558_v8  ;;  %v8727_v25 = vld [vmem:[#allocation31 + $0x1d4] ss:$8 sps:$4 sm:$0xff]   ;;  %v8722_v8 = vld [vmem:[#allocation31 + $0xd0] ss:$8 sps:$4 sm:$0xff]  }
0x11d8   : > { %5428 = vmatpush1.bf16.msra.mxu0 %v7555_v9  ;;  %5469 = vmatpush1.bf16.msra.mxu1 %v7557_v26  ;;  %v8725_v9 = vld [vmem:[#allocation31 + $0x1d0] ss:$8 sps:$4 sm:$0xff]   ;;  %v8730_v26 = vld [vmem:[#allocation31 + $0xe4] ss:$8 sps:$4 sm:$0xff]  }
0x11d9   : > { %6210 = vmatprep.subr.bf16.mxu0 %v8646_v27  ;;  %6251 = vmatprep.subr.bf16.mxu1 %v8649_v30  ;;  %v8733_v27 = vld [vmem:[#allocation31 + $0x1e4] ss:$8 sps:$4 sm:$0xff]   ;;  %v8728_v30 = vld [vmem:[#allocation31 + $0xe0] ss:$8 sps:$4 sm:$0xff]  }
0x11db   : > { %5430 = vmatmul.mubr.bf16.vlgmr.msra.gmra.mrb[48].mxu0 %v10919_v24  ;;  %5471 = vmatmul.mubr.bf16.vlgmr.msra.gmra.mrb[48].mxu1 %v10919_v24  ;;  %v8665_v24 = vld [vmem:[#allocation31 + $0x130] ss:$8 sps:$4 sm:$0xff]  }
0x11dc   : > { %6211 = vmatpush1.bf16.msra.mxu0 %v8644_v31  ;;  %6252 = vmatpush1.bf16.msra.mxu1 %v8647_v32  ;;  %v8731_v31 = vld [vmem:[#allocation31 + $0x1e0] ss:$8 sps:$4 sm:$0xff]   ;;  %v8736_v32 = vld [vmem:[#allocation31 + $0xf4] ss:$8 sps:$4 sm:$0xff]  }
0x11dd   : > { %6212 = vmatprep.subr.bf16.mxu0 %v8652_v33  ;;  %6253 = vmatprep.subr.bf16.mxu1 %v8655_v34  ;;  %v8739_v33 = vld [vmem:[#allocation31 + $0x1f4] ss:$8 sps:$4 sm:$0xff]   ;;  %v8734_v34 = vld [vmem:[#allocation31 + $0xf0] ss:$8 sps:$4 sm:$0xff]  }
0x11e0   : > { %6213 = vmatpush1.bf16.msra.mxu0 %v8650_v35  ;;  %6254 = vmatpush1.bf16.msra.mxu1 %v8653_v38  ;;  %v8737_v35 = vld [vmem:[#allocation31 + $0x1f0] ss:$8 sps:$4 sm:$0xff]   ;;  %v8742_v38 = vld [vmem:[#allocation31 + $0x204] ss:$8 sps:$4 sm:$0xff]  }
0x11e1   : > { %6214 = vmatprep.subr.bf16.mxu0 %v8658_v40  ;;  %6255 = vmatprep.subr.bf16.mxu1 %v8661_v41  ;;  %v8745_v40 = vld [vmem:[#allocation31 + $0x304] ss:$8 sps:$4 sm:$0xff]   ;;  %v10925_v41 = vld [vmem:[#allocation29] sm:$0xff] }
0x11e4   : > { %6215 = vmatpush1.bf16.msra.mxu0 %v8656_v42  ;;  %6256 = vmatpush1.bf16.msra.mxu1 %v8659_v43  ;;  %v4649_v42 = vsub.s32 3, %v10785_v0  ;;  %v4638_v43 = vrot.slane %v10925_v41, %v10791_v2 }
0x11e5   : > { %6216 = vmatprep.subr.bf16.mxu0 %v8664_v44  ;;  %6257 = vmatprep.subr.bf16.mxu1 %v8667_v60  ;;  %v4646_v44 = vrot.slane %v10925_v41, %v10812_v6  ;;  %v4642_v60 = vrot.slane %v10925_v41, %v10788_v1 }
0x11e8   : > { %6217 = vmatpush1.bf16.msra.mxu0 %v8662_v45  ;;  %6258 = vmatpush1.bf16.msra.mxu1 %v8665_v24  ;;  %v4650_v45 = vrot.slane %v10925_v41, %v4649_v42 }
0x11e9   : > { %6218 = vmatprep.subr.bf16.mxu0 %v8670_v46  ;;  %6259 = vmatprep.subr.bf16.mxu1 %v8673_v63 }
0x11ec   : > { %6219 = vmatpush1.bf16.msra.mxu0 %v8668_v47  ;;  %6260 = vmatpush1.bf16.msra.mxu1 %v8671_v48 }
0x11ed   : > { %6220 = vmatprep.subr.bf16.mxu0 %v8676_v49  ;;  %6261 = vmatprep.subr.bf16.mxu1 %v8679_v50 }
0x11f0   : > { %6221 = vmatpush1.bf16.msra.mxu0 %v8674_v51  ;;  %6262 = vmatpush1.bf16.msra.mxu1 %v8677_v52 }
0x11f1   : > { %6222 = vmatprep.subr.bf16.mxu0 %v8682_v53  ;;  %6263 = vmatprep.subr.bf16.mxu1 %v8685_v54 }
0x11f4   : > { %6223 = vmatpush1.bf16.msra.mxu0 %v8680_v55  ;;  %6264 = vmatpush1.bf16.msra.mxu1 %v8683_v56 }
0x11f5   : > { %6224 = vmatprep.subr.bf16.mxu0 %v8688_v57  ;;  %6265 = vmatprep.subr.bf16.mxu1 %v8691_v58 }
0x11f8   : > { %6225 = vmatpush1.bf16.msra.mxu0 %v8686_v59  ;;  %6266 = vmatpush1.bf16.msra.mxu1 %v8689_v62 }
0x11f9   : > { %6226 = vmatprep.subr.bf16.mxu0 %v8694_v61  ;;  %6267 = vmatprep.subr.bf16.mxu1 %v8697_v3 }
0x11fc   : > { %6227 = vmatpush1.bf16.msra.mxu0 %v8692_v5  ;;  %6268 = vmatpush1.bf16.msra.mxu1 %v8695_v7 }
0x11fd   : > { %6228 = vmatprep.subr.bf16.mxu0 %v8700_v10  ;;  %6269 = vmatprep.subr.bf16.mxu1 %v8703_v11 }
0x1200   : > { %6229 = vmatpush1.bf16.msra.mxu0 %v8698_v37  ;;  %6270 = vmatpush1.bf16.msra.mxu1 %v8701_v39 }
0x1201   : > { %6230 = vmatprep.subr.bf16.mxu0 %v8706_v12  ;;  %6271 = vmatprep.subr.bf16.mxu1 %v8709_v13 }
0x1204   : > { %6231 = vmatpush1.bf16.msra.mxu0 %v8704_v4  ;;  %6272 = vmatpush1.bf16.msra.mxu1 %v8707_v14 }
0x1205   : > { %6232 = vmatprep.subr.bf16.mxu0 %v8712_v15  ;;  %6273 = vmatprep.subr.bf16.mxu1 %v8715_v16 }
0x1208   : > { %6233 = vmatpush1.bf16.msra.mxu0 %v8710_v17  ;;  %6274 = vmatpush1.bf16.msra.mxu1 %v8713_v18 }
0x1209   : > { %6234 = vmatprep.subr.bf16.mxu0 %v8718_v19  ;;  %6275 = vmatprep.subr.bf16.mxu1 %v8721_v20 }
0x120c   : > { %6235 = vmatpush1.bf16.msra.mxu0 %v8716_v21  ;;  %6276 = vmatpush1.bf16.msra.mxu1 %v8719_v22 }
0x120d   : > { %6236 = vmatprep.subr.bf16.mxu0 %v8724_v23  ;;  %6277 = vmatprep.subr.bf16.mxu1 %v8727_v25 }
0x1210   : > { %6237 = vmatpush1.bf16.msra.mxu0 %v8722_v8  ;;  %6278 = vmatpush1.bf16.msra.mxu1 %v8725_v9 }
0x1211   : > { %6238 = vmatprep.subr.bf16.mxu0 %v8730_v26  ;;  %6279 = vmatprep.subr.bf16.mxu1 %v8733_v27 }
0x1214   : > { %6239 = vmatpush1.bf16.msra.mxu0 %v8728_v30  ;;  %6280 = vmatpush1.bf16.msra.mxu1 %v8731_v31 }
0x1215   : > { %6240 = vmatprep.subr.bf16.mxu0 %v8736_v32  ;;  %6281 = vmatprep.subr.bf16.mxu1 %v8739_v33 }
0x1218   : > { %6241 = vmatpush1.bf16.msra.mxu0 %v8734_v34  ;;  %6282 = vmatpush1.bf16.msra.mxu1 %v8737_v35  ;;  %v8740_v34 = vld [vmem:[#allocation31 + $0x200] ss:$8 sps:$4 sm:$0xff]  }
0x1219   : > { %6292 = vmatprep.subr.bf16.mxu0 %v8742_v38  ;;  %6333 = vmatprep.subr.bf16.mxu1 %v8745_v40  ;;  %v8743_v40 = vld [vmem:[#allocation31 + $0x300] ss:$8 sps:$4 sm:$0xff]  }
0x126e   : > { %v5349_v24 = vpop.f32.mrb[44].mxu0  ;;  %v5390_v46 = vpop.f32.mrb[44].mxu1 }
0x126f   : > { %v5350_v63 = vadd.f32 %v5349_v24, %v4638_v43  ;;  %v5391_v47 = vadd.f32 %v5390_v46, %v4646_v44  ;;  %v5351_v48 = vpop.f32.mrb[45].mxu0  ;;  %v5392_v49 = vpop.f32.mrb[45].mxu1  ;;  %v8748_v43 = vld [vmem:[#allocation31 + $0x214] ss:$8 sps:$4 sm:$0xff]   ;;  %v8749_v24 = vld [vmem:[#allocation31 + $0x310] ss:$8 sps:$4 sm:$0xff]  }
0x1270   : > { %v5352_v50 = vadd.f32 %v5351_v48, %v4642_v60  ;;  %v5393_v51 = vadd.f32 %v5392_v49, %v4650_v45  ;;  %v5353_v52 = vpop.f32.mrb[46].mxu0  ;;  %v5394_v53 = vpop.f32.mrb[46].mxu1  ;;  %v8751_v60 = vld [vmem:[#allocation31 + $0x314] ss:$8 sps:$4 sm:$0xff]   ;;  %v8746_v45 = vld [vmem:[#allocation31 + $0x210] ss:$8 sps:$4 sm:$0xff]  }
0x1271   : > { %v5487_v54 = vmul.f32 0.044715, %v5350_v63  ;;  %v5489_v55 = vmul.f32 0.044715, %v5391_v47  ;;  %v5354_v56 = vpop.f32.mrb[47].mxu0  ;;  %v5395_v57 = vpop.f32.mrb[47].mxu1 }
0x1272   : > { %v5488_v6 = vmul.f32 0.044715, %v5352_v50  ;;  %v5490_v58 = vmul.f32 0.044715, %v5393_v51  ;;  %v5479_v19 = vmul.f32 0.5, %v5350_v63  ;;  %v5480_v22 = vmul.f32 0.5, %v5352_v50 }
0x1273   : > { %v5495_v59 = vmul.f32 %v5487_v54, %v5350_v63  ;;  %v5497_v62 = vmul.f32 %v5489_v55, %v5391_v47  ;;  %v5482_v8 = vmul.f32 0.5, %v5393_v51  ;;  %v5481_v30 = vmul.f32 0.5, %v5391_v47  ;;  %v8754_v46 = vld [vmem:[#allocation31 + $0x224] ss:$8 sps:$4 sm:$0xff]   ;;  %v8755_v48 = vld [vmem:[#allocation31 + $0x320] ss:$8 sps:$4 sm:$0xff]  }
0x1274   : > { %v5496_v61 = vmul.f32 %v5488_v6, %v5352_v50  ;;  %v5498_v3 = vmul.f32 %v5490_v58, %v5393_v51  ;;  %v8760_v49 = vld [vmem:[#allocation31 + $0x234] ss:$8 sps:$4 sm:$0xff]   ;;  %v8761_v52 = vld [vmem:[#allocation31 + $0x330] ss:$8 sps:$4 sm:$0xff]   ;;  %v8766_v53 = vld [vmem:[#allocation31 + $0x244] ss:$8 sps:$4 sm:$0xff]  }
0x1275   : > { %v5503_v5 = vmul.f32 %v5495_v59, %v5350_v63  ;;  %v5505_v7 = vmul.f32 %v5497_v62, %v5391_v47  ;;  %v8769_v54 = vld [vmem:[#allocation31 + $0x344] ss:$8 sps:$4 sm:$0xff]   ;;  %v8764_v55 = vld [vmem:[#allocation31 + $0x240] ss:$8 sps:$4 sm:$0xff]   ;;  %v8772_v57 = vld [vmem:[#allocation31 + $0x254] ss:$8 sps:$4 sm:$0xff]  }
0x1276   : > { %v5504_v10 = vmul.f32 %v5496_v61, %v5352_v50  ;;  %v5506_v11 = vmul.f32 %v5498_v3, %v5393_v51  ;;  %v8767_v56 = vld [vmem:[#allocation31 + $0x340] ss:$8 sps:$4 sm:$0xff]   ;;  %v8775_v6 = vld [vmem:[#allocation31 + $0x354] ss:$8 sps:$4 sm:$0xff]   ;;  %v8770_v58 = vld [vmem:[#allocation31 + $0x250] ss:$8 sps:$4 sm:$0xff]  }
0x1277   : > { %v5511_v37 = vadd.f32 %v5503_v5, %v5350_v63  ;;  %v5513_v39 = vadd.f32 %v5505_v7, %v5391_v47  ;;  %v8757_v63 = vld [vmem:[#allocation31 + $0x324] ss:$8 sps:$4 sm:$0xff]   ;;  %v8752_v47 = vld [vmem:[#allocation31 + $0x220] ss:$8 sps:$4 sm:$0xff]   ;;  %v8773_v59 = vld [vmem:[#allocation31 + $0x350] ss:$8 sps:$4 sm:$0xff]  }
0x1278   : > { %v5512_v12 = vadd.f32 %v5504_v10, %v5352_v50  ;;  %v5514_v13 = vadd.f32 %v5506_v11, %v5393_v51  ;;  %v8763_v50 = vld [vmem:[#allocation31 + $0x334] ss:$8 sps:$4 sm:$0xff]   ;;  %v8758_v51 = vld [vmem:[#allocation31 + $0x230] ss:$8 sps:$4 sm:$0xff]   ;;  %v8778_v62 = vld [vmem:[#allocation31 + $0x264] ss:$8 sps:$4 sm:$0xff]  }
0x1279   : > { %v5519_v4 = vmul.f32 0.7978846, %v5511_v37  ;;  %v5521_v16 = vmul.f32 0.7978846, %v5513_v39  ;;  %v8781_v61 = vld [vmem:[#allocation31 + $0x364] ss:$8 sps:$4 sm:$0xff]  }
0x127a   : > { %v5520_v14 = vmul.f32 0.7978846, %v5512_v12  ;;  %v5522_v15 = vmul.f32 0.7978846, %v5514_v13  ;;  %v8776_v3 = vld [vmem:[#allocation31 + $0x260] ss:$8 sps:$4 sm:$0xff]  }
0x127b   : > { %8898 = vtanh.f32 %v5519_v4  ;;  %v8779_v5 = vld [vmem:[#allocation31 + $0x360] ss:$8 sps:$4 sm:$0xff]   ;;  %v8784_v7 = vld [vmem:[#allocation31 + $0x274] ss:$8 sps:$4 sm:$0xff]   ;;  %v8782_v11 = vld [vmem:[#allocation31 + $0x270] ss:$8 sps:$4 sm:$0xff]  }
0x127c   : > { %8900 = vtanh.f32 %v5520_v14  ;;  %v8787_v10 = vld [vmem:[#allocation31 + $0x374] ss:$8 sps:$4 sm:$0xff]   ;;  %v4653_v37 = vsub.s32 4, %v10785_v0  ;;  %v4661_v39 = vsub.s32 6, %v10785_v0  ;;  %v8785_v12 = vld [vmem:[#allocation31 + $0x370] ss:$8 sps:$4 sm:$0xff]  }
0x127d   : > { %8902 = vtanh.f32 %v5522_v15  ;;  %v8790_v13 = vld [vmem:[#allocation31 + $0x284] ss:$8 sps:$4 sm:$0xff]   ;;  %v4657_v4 = vsub.s32 5, %v10785_v0  ;;  %v4665_v14 = vsub.s32 7, %v10785_v0 }
0x127e   : > { %8904 = vtanh.f32 %v5521_v16  ;;  %v8793_v15 = vld [vmem:[#allocation31 + $0x384] ss:$8 sps:$4 sm:$0xff]   ;;  %v4654_v16 = vrot.slane %v10925_v41, %v4653_v37  ;;  %v8812_v37 = vld [vmem:[#allocation31 + $0x2c0] ss:$8 sps:$4 sm:$0xff]  }
0x1285   : > { %v8899_v17 = vpop.eup %8898 }
0x1286   : > { %v8901_v18 = vpop.eup %8900  ;;  %v5535_v20 = vadd.f32 1.0, %v8899_v17  ;;  %v4662_v17 = vrot.slane %v10925_v41, %v4661_v39  ;;  %v8815_v39 = vld [vmem:[#allocation31 + $0x3c0] ss:$8 sps:$4 sm:$0xff]  }
0x1287   : > { %v8903_v21 = vpop.eup %8902  ;;  %v5536_v23 = vadd.f32 1.0, %v8901_v18  ;;  %v8788_v18 = vld [vmem:[#allocation31 + $0x280] ss:$8 sps:$4 sm:$0xff]  }
0x1288   : > { %v8905_v25 = vpop.eup %8904  ;;  %v5538_v9 = vadd.f32 1.0, %v8903_v21  ;;  %v5543_v26 = vmul.f32 %v5535_v20, %v5479_v19  ;;  %v8791_v19 = vld [vmem:[#allocation31 + $0x380] ss:$8 sps:$4 sm:$0xff]   ;;  %v4658_v20 = vrot.slane %v10925_v41, %v4657_v4  ;;  %v4666_v21 = vrot.slane %v10925_v41, %v4665_v14  ;;  %v8818_v4 = vld [vmem:[#allocation31 + $0x2d0] ss:$8 sps:$4 sm:$0xff]  }
0x1289   : > { %v5544_v27 = vmul.f32 %v5536_v23, %v5480_v22  ;;  %v5537_v31 = vadd.f32 1.0, %v8905_v25  ;;  %v8796_v22 = vld [vmem:[#allocation31 + $0x294] ss:$8 sps:$4 sm:$0xff]   ;;  %v8821_v14 = vld [vmem:[#allocation31 + $0x3d0] ss:$8 sps:$4 sm:$0xff]  }
0x128a   : > { %v5546_v32 = vmul.f32 %v5538_v9, %v5482_v8  ;;  %v5551_v42 = vpack.c.bf16 %v5543_v26, %v5543_v26  ;;  %v8799_v23 = vld [vmem:[#allocation31 + $0x394] ss:$8 sps:$4 sm:$0xff]  }
0x128b   : > { %v5552_v33 = vpack.c.bf16 %v5544_v27, %v5544_v27  ;;  %v5545_v35 = vmul.f32 %v5537_v31, %v5481_v30  ;;  %v8794_v30 = vld [vmem:[#allocation31 + $0x290] ss:$8 sps:$4 sm:$0xff]  }
0x128c   : > { %v5554_v38 = vpack.c.bf16 %v5546_v32, %v5546_v32  ;;  %v8797_v31 = vld [vmem:[#allocation31 + $0x390] ss:$8 sps:$4 sm:$0xff]  }
0x128d   : > { %6242 = vmatprep.mubr.bf16.mxu0 %v5552_v33  ;;  %v5553_v44 = vpack.c.bf16 %v5545_v35, %v5545_v35  ;;  %v8802_v35 = vld [vmem:[#allocation31 + $0x2a4] ss:$8 sps:$4 sm:$0xff]  }
0x128e   : > { %6283 = vmatprep.mubr.bf16.mxu1 %v5554_v38  ;;  %6243 = vmatmul.mubr.bf16.vlgmr.msra.gmra.mrb[52].mxu0 %v5551_v42  ;;  %v8805_v38 = vld [vmem:[#allocation31 + $0x3a4] ss:$8 sps:$4 sm:$0xff]  }
0x128f   : > { %6284 = vmatmul.mubr.bf16.vlgmr.msra.gmra.mrb[52].mxu1 %v5553_v44  ;;  %6293 = vmatpush1.bf16.msra.mxu0 %v8740_v34 }
0x1290   : > { %6334 = vmatpush1.bf16.msra.mxu1 %v8743_v40  ;;  %6294 = vmatprep.subr.bf16.mxu0 %v8748_v43 }
0x1291   : > { %6335 = vmatprep.subr.bf16.mxu1 %v8751_v60 }
0x1293   : > { %6295 = vmatpush1.bf16.msra.mxu0 %v8746_v45 }
0x1294   : > { %6336 = vmatpush1.bf16.msra.mxu1 %v8749_v24  ;;  %6296 = vmatprep.subr.bf16.mxu0 %v8754_v46 }
0x1295   : > { %6337 = vmatprep.subr.bf16.mxu1 %v8757_v63  ;;  %v8800_v63 = vld [vmem:[#allocation31 + $0x2a0] ss:$8 sps:$4 sm:$0xff]  }
0x1297   : > { %6297 = vmatpush1.bf16.msra.mxu0 %v8752_v47 }
0x1298   : > { %6338 = vmatpush1.bf16.msra.mxu1 %v8755_v48  ;;  %6298 = vmatprep.subr.bf16.mxu0 %v8760_v49  ;;  %v8803_v49 = vld [vmem:[#allocation31 + $0x3a0] ss:$8 sps:$4 sm:$0xff]  }
0x1299   : > { %6339 = vmatprep.subr.bf16.mxu1 %v8763_v50  ;;  %v8808_v50 = vld [vmem:[#allocation31 + $0x2b4] ss:$8 sps:$4 sm:$0xff]  }
0x129b   : > { %6299 = vmatpush1.bf16.msra.mxu0 %v8758_v51 }
0x129c   : > { %6340 = vmatpush1.bf16.msra.mxu1 %v8761_v52  ;;  %6300 = vmatprep.subr.bf16.mxu0 %v8766_v53  ;;  %v8811_v53 = vld [vmem:[#allocation31 + $0x3b4] ss:$8 sps:$4 sm:$0xff]  }
0x129d   : > { %6341 = vmatprep.subr.bf16.mxu1 %v8769_v54 }
0x129f   : > { %6301 = vmatpush1.bf16.msra.mxu0 %v8764_v55 }
0x12a0   : > { %6342 = vmatpush1.bf16.msra.mxu1 %v8767_v56  ;;  %6302 = vmatprep.subr.bf16.mxu0 %v8772_v57 }
0x12a1   : > { %6343 = vmatprep.subr.bf16.mxu1 %v8775_v6  ;;  %v8806_v6 = vld [vmem:[#allocation31 + $0x2b0] ss:$8 sps:$4 sm:$0xff]  }
0x12a3   : > { %6303 = vmatpush1.bf16.msra.mxu0 %v8770_v58  ;;  %v8809_v58 = vld [vmem:[#allocation31 + $0x3b0] ss:$8 sps:$4 sm:$0xff]  }
0x12a4   : > { %6344 = vmatpush1.bf16.msra.mxu1 %v8773_v59  ;;  %6304 = vmatprep.subr.bf16.mxu0 %v8778_v62  ;;  %v8814_v59 = vld [vmem:[#allocation31 + $0x2c4] ss:$8 sps:$4 sm:$0xff]  }
0x12a5   : > { %6345 = vmatprep.subr.bf16.mxu1 %v8781_v61 }
0x12a7   : > { %6305 = vmatpush1.bf16.msra.mxu0 %v8776_v3  ;;  %v8817_v3 = vld [vmem:[#allocation31 + $0x3c4] ss:$8 sps:$4 sm:$0xff]  }
0x12a8   : > { %6346 = vmatpush1.bf16.msra.mxu1 %v8779_v5  ;;  %6306 = vmatprep.subr.bf16.mxu0 %v8784_v7 }
0x12a9   : > { %6347 = vmatprep.subr.bf16.mxu1 %v8787_v10 }
0x12ab   : > { %6307 = vmatpush1.bf16.msra.mxu0 %v8782_v11 }
0x12ac   : > { %6348 = vmatpush1.bf16.msra.mxu1 %v8785_v12  ;;  %6308 = vmatprep.subr.bf16.mxu0 %v8790_v13  ;;  %v8820_v12 = vld [vmem:[#allocation31 + $0x2d4] ss:$8 sps:$4 sm:$0xff]  }
0x12ad   : > { %6349 = vmatprep.subr.bf16.mxu1 %v8793_v15  ;;  %v8823_v13 = vld [vmem:[#allocation31 + $0x3d4] ss:$8 sps:$4 sm:$0xff]   ;;  %v8826_v15 = vld [vmem:[#allocation31 + $0x2e4] ss:$8 sps:$4 sm:$0xff]  }
0x12ae   : > { %v5431_v25 = vpop.f32.mrb[48].mxu0  ;;  %v5472_v0 = vpop.f32.mrb[48].mxu1 }
0x12af   : > { %v10943_v8 = vadd.f32 %v5431_v25, %v4654_v16  ;;  %v10945_v9 = vadd.f32 %v5472_v0, %v4662_v17  ;;  %v5433_v26 = vpop.f32.mrb[49].mxu0  ;;  %v5474_v27 = vpop.f32.mrb[49].mxu1  ;;  %6309 = vmatpush1.bf16.msra.mxu0 %v8788_v18  ;;  %v8829_v16 = vld [vmem:[#allocation31 + $0x3e4] ss:$8 sps:$4 sm:$0xff]   ;;  %v8824_v17 = vld [vmem:[#allocation31 + $0x2e0] ss:$8 sps:$4 sm:$0xff]  }
0x12b0   : > { %v10947_v32 = vadd.f32 %v5433_v26, %v4658_v20  ;;  %v10949_v33 = vadd.f32 %v5474_v27, %v4666_v21  ;;  %6350 = vmatpush1.bf16.msra.mxu1 %v8791_v19  ;;  %v5435_v41 = vpop.f32.mrb[50].mxu0  ;;  %v5476_v34 = vpop.f32.mrb[50].mxu1  ;;  %6310 = vmatprep.subr.bf16.mxu0 %v8796_v22  ;;  %v8827_v18 = vld [vmem:[#allocation31 + $0x3e0] ss:$8 sps:$4 sm:$0xff]   ;;  %v8832_v19 = vld [vmem:[#allocation31 + $0x2f4] ss:$8 sps:$4 sm:$0xff]  }
0x12b1   : > { %v5491_v40 = vmul.f32 0.044715, %v10943_v8  ;;  %v5493_v42 = vmul.f32 0.044715, %v10945_v9  ;;  %v5436_v43 = vpop.f32.mrb[51].mxu0  ;;  %v5477_v44 = vpop.f32.mrb[51].mxu1  ;;  %6351 = vmatprep.subr.bf16.mxu1 %v8799_v23 }
0x12b2   : > { %v5492_v60 = vmul.f32 0.044715, %v10947_v32  ;;  %v5494_v45 = vmul.f32 0.044715, %v10949_v33  ;;  %v8835_v21 = vld [vmem:[#allocation31 + $0x3f4] ss:$8 sps:$4 sm:$0xff]  }
0x12b3   : > { %v5499_v24 = vmul.f32 %v5491_v40, %v10943_v8  ;;  %v5501_v46 = vmul.f32 %v5493_v42, %v10945_v9  ;;  %6311 = vmatpush1.bf16.msra.mxu0 %v8794_v30  ;;  %v5483_v23 = vmul.f32 0.5, %v10943_v8  ;;  %v8830_v26 = vld [vmem:[#allocation31 + $0x2f0] ss:$8 sps:$4 sm:$0xff]   ;;  %v5484_v27 = vmul.f32 0.5, %v10947_v32 }
0x12b4   : > { %v5500_v47 = vmul.f32 %v5492_v60, %v10947_v32  ;;  %v5502_v48 = vmul.f32 %v5494_v45, %v10949_v33  ;;  %6352 = vmatpush1.bf16.msra.mxu1 %v8797_v31  ;;  %6312 = vmatprep.subr.bf16.mxu0 %v8802_v35  ;;  %v8833_v41 = vld [vmem:[#allocation31 + $0x3f0] ss:$8 sps:$4 sm:$0xff]   ;;  %v5486_v34 = vmul.f32 0.5, %v10949_v33  ;;  %v5485_v42 = vmul.f32 0.5, %v10945_v9 }
0x12b5   : > { %v5507_v51 = vmul.f32 %v5499_v24, %v10943_v8  ;;  %v5509_v52 = vmul.f32 %v5501_v46, %v10945_v9  ;;  %6353 = vmatprep.subr.bf16.mxu1 %v8805_v38  ;;  %v8837_v46 = vld [vmem:[#allocation40] sm:$0xff]  }
0x12b6   : > { %v5508_v54 = vmul.f32 %v5500_v47, %v10947_v32  ;;  %v5510_v55 = vmul.f32 %v5502_v48, %v10949_v33  ;;  %v8840_v47 = vld [vmem:[#allocation40 + $0x50] sm:$0xff]  }
0x12b7   : > { %v5515_v56 = vadd.f32 %v5507_v51, %v10943_v8  ;;  %v5517_v57 = vadd.f32 %v5509_v52, %v10945_v9  ;;  %6313 = vmatpush1.bf16.msra.mxu0 %v8800_v63  ;;  %v8838_v63 = vld [vmem:[#allocation40 + $0x48] sm:$0xff]   ;;  %v8841_v48 = vld [vmem:[#allocation40 + $0x10] sm:$0xff]   ;;  %v8844_v51 = vld [vmem:[#allocation40 + $0x60] sm:$0xff]  }
0x12b8   : > { %6354 = vmatpush1.bf16.msra.mxu1 %v8803_v49  ;;  %6314 = vmatprep.subr.bf16.mxu0 %v8808_v50  ;;  %v5516_v62 = vadd.f32 %v5508_v54, %v10947_v32  ;;  %v5518_v61 = vadd.f32 %v5510_v55, %v10949_v33  ;;  %v8836_v33 = vld [vmem:[#allocation40 + $0x40] sm:$0xff]   ;;  %v8839_v9 = vld [vmem:[#allocation40 + $0x8] sm:$0xff]   ;;  %v8842_v49 = vld [vmem:[#allocation40 + $0x58] sm:$0xff]  }
0x12b9   : > { %6355 = vmatprep.subr.bf16.mxu1 %v8811_v53  ;;  %v5523_v5 = vmul.f32 0.7978846, %v5515_v56  ;;  %v5525_v11 = vmul.f32 0.7978846, %v5517_v57  ;;  %v8843_v50 = vld [vmem:[#allocation40 + $0x18] sm:$0xff]   ;;  %v8845_v52 = vld [vmem:[#allocation40 + $0x20] sm:$0xff]  }
0x12ba   : > { %v5524_v7 = vmul.f32 0.7978846, %v5516_v62  ;;  %v5526_v10 = vmul.f32 0.7978846, %v5518_v61  ;;  %v8847_v53 = vld [vmem:[#allocation40 + $0x28] sm:$0xff]   ;;  %v8848_v54 = vld [vmem:[#allocation40 + $0x70] sm:$0xff]  }
0x12bb   : > { %6315 = vmatpush1.bf16.msra.mxu0 %v8806_v6  ;;  %8906 = vtanh.f32 %v5523_v5  ;;  %v8849_v55 = vld [vmem:[#allocation40 + $0x30] sm:$0xff]   ;;  %v8850_v56 = vld [vmem:[#allocation40 + $0x78] sm:$0xff]  }
0x12bc   : > { %6356 = vmatpush1.bf16.msra.mxu1 %v8809_v58  ;;  %6316 = vmatprep.subr.bf16.mxu0 %v8814_v59  ;;  %8908 = vtanh.f32 %v5524_v7  ;;  %v8851_v57 = vld [vmem:[#allocation40 + $0x38] sm:$0xff]  }
0x12bd   : > { %6357 = vmatprep.subr.bf16.mxu1 %v8817_v3  ;;  %8910 = vtanh.f32 %v5526_v10  ;;  %v4631_v6 = vld [vmem:[#allocation32] sm:$0x3] }
0x12be   : > { %8912 = vtanh.f32 %v5525_v11  ;;  %v5563_v58 = vrot.slane %v4631_v6, %v10791_v2  ;;  %v5567_v59 = vrot.slane %v4631_v6, %v10788_v1 }
0x12bf   : > { %6317 = vmatpush1.bf16.msra.mxu0 %v8812_v37 }
0x12c0   : > { %6358 = vmatpush1.bf16.msra.mxu1 %v8815_v39  ;;  %6318 = vmatprep.subr.bf16.mxu0 %v8820_v12 }
0x12c1   : > { %6359 = vmatprep.subr.bf16.mxu1 %v8823_v13 }
0x12c3   : > { %6319 = vmatpush1.bf16.msra.mxu0 %v8818_v4 }
0x12c4   : > { %6360 = vmatpush1.bf16.msra.mxu1 %v8821_v14  ;;  %6320 = vmatprep.subr.bf16.mxu0 %v8826_v15 }
0x12c5   : > { %v8907_v20 = vpop.eup %8906  ;;  %6361 = vmatprep.subr.bf16.mxu1 %v8829_v16 }
0x12c6   : > { %v8909_v22 = vpop.eup %8908  ;;  %v5539_v25 = vadd.f32 1.0, %v8907_v20 }
0x12c7   : > { %v8911_v0 = vpop.eup %8910  ;;  %6321 = vmatpush1.bf16.msra.mxu0 %v8824_v17  ;;  %v5540_v30 = vadd.f32 1.0, %v8909_v22 }
0x12c8   : > { %v8913_v31 = vpop.eup %8912  ;;  %6362 = vmatpush1.bf16.msra.mxu1 %v8827_v18  ;;  %6322 = vmatprep.subr.bf16.mxu0 %v8832_v19  ;;  %v5542_v35 = vadd.f32 1.0, %v8911_v0  ;;  %v5547_v38 = vmul.f32 %v5539_v25, %v5483_v23 }
0x12c9   : > { %6363 = vmatprep.subr.bf16.mxu1 %v8835_v21  ;;  %v5548_v40 = vmul.f32 %v5540_v30, %v5484_v27  ;;  %v5541_v8 = vadd.f32 1.0, %v8913_v31 }
0x12ca   : > { %v5550_v43 = vmul.f32 %v5542_v35, %v5486_v34  ;;  %v5555_v45 = vpack.c.bf16 %v5547_v38, %v5547_v38  ;;  %v8852_v34 = vld [vmem:[#allocation43] ss:$8 sps:$4 sm:$0xff]   ;;  %v8857_v35 = vld [vmem:[#allocation43 + $0x14] ss:$8 sps:$4 sm:$0xff]   ;;  %v8855_v38 = vld [vmem:[#allocation43 + $0x10] ss:$8 sps:$4 sm:$0xff]  }
0x12cb   : > { %6323 = vmatpush1.bf16.msra.mxu0 %v8830_v26  ;;  %v5556_v44 = vpack.c.bf16 %v5548_v40, %v5548_v40  ;;  %v5549_v60 = vmul.f32 %v5541_v8, %v5485_v42  ;;  %v8860_v40 = vld [vmem:[#allocation43 + $0x24] ss:$8 sps:$4 sm:$0xff]   ;;  %v8861_v42 = vld [vmem:[#allocation43 + $0x30] ss:$8 sps:$4 sm:$0xff]  }
0x12cc   : > { %6364 = vmatpush1.bf16.msra.mxu1 %v8833_v41  ;;  %v5558_v32 = vpack.c.bf16 %v5550_v43, %v5550_v43  ;;  %7854 = vmatprep.subr.bf16.mxu0 %v8836_v33  ;;  %v8854_v41 = vld [vmem:[#allocation43 + $0x4] ss:$8 sps:$4 sm:$0xff]   ;;  %v8864_v43 = vld [vmem:[#allocation43 + $0x40] ss:$8 sps:$4 sm:$0xff]   ;;  %v8873_v33 = vld [vmem:[#allocation43 + $0x70] ss:$8 sps:$4 sm:$0xff]  }
0x12cd   : > { %6324 = vmatprep.mubr.bf16.mxu0 %v5556_v44  ;;  %v5557_v24 = vpack.c.bf16 %v5549_v60, %v5549_v60  ;;  %6671 = vmatprep.subr.bf16.mxu1 %v8854_v41  ;;  %v8866_v8 = vld [vmem:[#allocation43 + $0x44] ss:$8 sps:$4 sm:$0xff]   ;;  %v8869_v44 = vld [vmem:[#allocation43 + $0x54] ss:$8 sps:$4 sm:$0xff]   ;;  %v8867_v60 = vld [vmem:[#allocation43 + $0x50] ss:$8 sps:$4 sm:$0xff]  }
0x12ce   : > { %6365 = vmatprep.mubr.bf16.mxu1 %v5558_v32  ;;  %6325 = vmatmul.mubr.bf16.vlgmr.msra.gmra.mrb[56].mxu0 %v5555_v45  ;;  %v8872_v32 = vld [vmem:[#allocation43 + $0x64] ss:$8 sps:$4 sm:$0xff]   ;;  %v8870_v45 = vld [vmem:[#allocation43 + $0x60] ss:$8 sps:$4 sm:$0xff]  }
0x12cf   : > { %6366 = vmatmul.mubr.bf16.vlgmr.msra.gmra.mrb[56].mxu1 %v5557_v24  ;;  %7855 = vmatpush3.bf16.msra.mxu0 %v8837_v46  ;;  %v8875_v24 = vld [vmem:[#allocation43 + $0x74] ss:$8 sps:$4 sm:$0xff]  }
0x12d0   : > { %6703 = vmatprep.mubr.bf16.mxu1 %v9877_v36  ;;  %7856 = vmatprep.subr.bf16.mxu0 %v8838_v63  ;;  %v8846_v36 = vld [vmem:[#allocation40 + $0x68] sm:$0xff]   ;;  %v7687_v63 = vld [vmem:[#allocation41] ss:$0 sm:$0xff] }
0x12d1   : > { %6672 = vmatpush1.bf16.msra.mxu1 %v8852_v34 }
0x12d2   : > { %6673 = vmatprep.subr.bf16.mxu1 %v8857_v35 }
0x12d3   : > { %7857 = vmatpush3.bf16.msra.mxu0 %v8839_v9 }
0x12d4   : > { %7858 = vmatprep.subr.bf16.mxu0 %v8840_v47 }
0x12d5   : > { %6674 = vmatpush1.bf16.msra.mxu1 %v8855_v38 }
0x12d6   : > { %6675 = vmatprep.subr.bf16.mxu1 %v8860_v40 }
0x12d7   : > { %7859 = vmatpush3.bf16.msra.mxu0 %v8841_v48 }
0x12d8   : > { %7860 = vmatprep.subr.bf16.mxu0 %v8842_v49 }
0x12db   : > { %7861 = vmatpush3.bf16.msra.mxu0 %v8843_v50 }
0x12dc   : > { %7862 = vmatprep.subr.bf16.mxu0 %v8844_v51 }
0x12df   : > { %7863 = vmatpush3.bf16.msra.mxu0 %v8845_v52 }
0x12e0   : > { %7864 = vmatprep.subr.bf16.mxu0 %v8846_v36 }
0x12e3   : > { %7865 = vmatpush3.bf16.msra.mxu0 %v8847_v53 }
0x12e4   : > { %7866 = vmatprep.subr.bf16.mxu0 %v8848_v54 }
0x12e7   : > { %7867 = vmatpush3.bf16.msra.mxu0 %v8849_v55 }
0x12e8   : > { %7868 = vmatprep.subr.bf16.mxu0 %v8850_v56 }
0x12eb   : > { %7869 = vmatpush3.bf16.msra.mxu0 %v8851_v57 }
0x1361   : > { %v6244_v62 = vpop.f32.mrb[52].mxu0 }
0x1362   : > { %v6245_v61 = vadd.f32 %v6244_v62, %v5563_v58  ;;  %v6285_v3 = vpop.f32.mrb[52].mxu1  ;;  %v6246_v5 = vpop.f32.mrb[53].mxu0 }
0x1363   : > { %v6247_v7 = vadd.f32 %v6246_v5, %v5567_v59  ;;  %v6287_v10 = vpop.f32.mrb[53].mxu1  ;;  %v6248_v11 = vpop.f32.mrb[54].mxu0  ;;  %v6425_v59 = vld [vmem:[#allocation44] sm:$0x3] }
0x1364   : > { %v6286_v37 = vadd.f32 %v6285_v3, %v6245_v61  ;;  %v6289_v39 = vpop.f32.mrb[54].mxu1  ;;  %v6249_v12 = vpop.f32.mrb[55].mxu0  ;;  %v6584_v62 = vrot.slane %v6425_v59, %v10791_v2  ;;  %v6588_v61 = vrot.slane %v6425_v59, %v10788_v1 }
0x1365   : > { %v6288_v13 = vadd.f32 %v6287_v10, %v6247_v7  ;;  %v6290_v4 = vpop.f32.mrb[55].mxu1 }
0x13a1   : > { %v6326_v14 = vpop.f32.mrb[56].mxu0 }
0x13a2   : > { %v6327_v15 = vadd.f32 %v6326_v14, %v6286_v37  ;;  %v6367_v16 = vpop.f32.mrb[56].mxu1  ;;  %v6328_v17 = vpop.f32.mrb[57].mxu0 }
0x13a3   : > { %v6329_v18 = vadd.f32 %v6328_v17, %v6288_v13  ;;  %v6369_v19 = vpop.f32.mrb[57].mxu1  ;;  %v6330_v20 = vpop.f32.mrb[58].mxu0 }
0x13a4   : > { %v6368_v21 = vadd.f32 %v6367_v16, %v6327_v15  ;;  %v6371_v22 = vpop.f32.mrb[58].mxu1  ;;  %v6331_v23 = vpop.f32.mrb[59].mxu0 }
0x13a5   : > { %v6370_v25 = vadd.f32 %v6369_v19, %v6329_v18  ;;  %v6372_v0 = vpop.f32.mrb[59].mxu1 }
0x13a6   : > { %v10975_v26 = vadd.f32 %v6368_v21, %v10896_v28  ;;  %v8858_v28 = vld [vmem:[#allocation43 + $0x20] ss:$8 sps:$4 sm:$0xff]  }
0x13a7   : > { %v10978_v27 = vadd.f32 %v6370_v25, %v10899_v29  ;;  %v8863_v29 = vld [vmem:[#allocation43 + $0x34] ss:$8 sps:$4 sm:$0xff]   ;;  %6676 = vmatpush1.bf16.msra.mxu1 %v8858_v28 }
0x13a8   : > { %v6426_v31 = vpack.c.bf16 %v10975_v26, %v10975_v26  ;;  %6677 = vmatprep.subr.bf16.mxu1 %v8863_v29 }
0x13a9   : > { %v6427_v30 = vpack.c.bf16 %v10978_v27, %v10978_v27 }
0x13ab   : > { %6562 = vmatprep.mubr.bf16.mxu0 %v6427_v30  ;;  %6678 = vmatpush1.bf16.msra.mxu1 %v8861_v42 }
0x13ac   : > { %6563 = vmatmul.mubr.bf16.vlgmr.msra.gmra.mrb[60].mxu0 %v6426_v31  ;;  %6679 = vmatprep.subr.bf16.mxu1 %v8866_v8 }
0x13af   : > { %6680 = vmatpush1.bf16.msra.mxu1 %v8864_v43 }
0x13b0   : > { %6681 = vmatprep.subr.bf16.mxu1 %v8869_v44 }
0x13b3   : > { %6682 = vmatpush1.bf16.msra.mxu1 %v8867_v60 }
0x13b4   : > { %6683 = vmatprep.subr.bf16.mxu1 %v8872_v32 }
0x13b7   : > { %6684 = vmatpush1.bf16.msra.mxu1 %v8870_v45 }
0x13b8   : > { %6685 = vmatprep.subr.bf16.mxu1 %v8875_v24 }
0x13bb   : > { %6686 = vmatpush1.bf16.msra.mxu1 %v8873_v33 }
0x147f   : > { %v7870_v46 = vpop.f32.mrb[60].mxu0 }
0x1480   : > { %v7871_v9 = vpop.f32.mrb[61].mxu0 }
0x1481   : > { %v7872_v47 = vadd.f32 %v7871_v9, %v7870_v46  ;;  %v7873_v48 = vpop.f32.mrb[62].mxu0 }
0x1482   : > { %v7874_v49 = vpop.f32.mrb[63].mxu0 }
0x1483   : > { %v6565_v50 = vadd.f32 %v7872_v47, %v7687_v63 }
0x1485   : > { %v6571_v51 = vmul.f32 0.044715, %v6565_v50  ;;  %v6570_v56 = vmul.f32 0.5, %v6565_v50 }
0x1487   : > { %v6572_v52 = vmul.f32 %v6571_v51, %v6565_v50 }
0x1489   : > { %v6573_v36 = vmul.f32 %v6572_v52, %v6565_v50 }
0x148b   : > { %v6574_v53 = vadd.f32 %v6573_v36, %v6565_v50 }
0x148d   : > { %v6575_v54 = vmul.f32 0.7978846, %v6574_v53 }
0x148f   : > { %8914 = vtanh.f32 %v6575_v54 }
0x1499   : > { %v8915_v55 = vpop.eup %8914 }
0x149a   : > { %v6577_v57 = vadd.f32 1.0, %v8915_v55 }
0x149c   : > { %v6578_v6 = vmul.f32 %v6577_v57, %v6570_v56 }
0x149e   : > { %v6579_v58 = vpack.c.bf16 %v6578_v6, %v6578_v6 }
0x14a0   : > { %6704 = vmatmul.mubr.bf16.vlgmr.msra.gmra.mrb[60].mxu1 %v6579_v58 }
0x1573   : > { %v6705_v3 = vpop.f32.mrb[60].mxu1 }
0x1574   : > { %v6706_v5 = vadd.f32 %v6705_v3, %v6584_v62  ;;  %v6707_v7 = vpop.f32.mrb[61].mxu1 }
0x1575   : > { %v6708_v10 = vadd.f32 %v6707_v7, %v6588_v61  ;;  %v6709_v11 = vpop.f32.mrb[62].mxu1 }
0x1576   : > { %v6712_v37 = vadd.f32 %v6706_v5, %v10975_v26  ;;  %v6710_v39 = vpop.f32.mrb[63].mxu1 }
0x1577   : > { %v6713_v12 = vadd.f32 %v6708_v10, %v10978_v27 }
0x1578   : > { %6714 = vst [vmem:[%s1252_s18] sm:$0xff] %v6712_v37 }
0x1579   : > { %6715 = vst [vmem:[%s1252_s18 + $0x8] sm:$0xff] %v6713_v12 }
0x157a   : > { %9719 = shalt.err (!%p9716_p2)
}
0x157b   : > { %s9720_s21 = scalar_lea.hbm %s10993_s2, 256  ;;  %s9724_s3 = scalar_lea.hbm %s11222_s17, 512 }
0x157c   : > { %p9721_p6 = scmp.ne.s32.totalorder %s10993_s2, %s9720_s21  ;;  %p9725_p9 = scmp.lt.u32.totalorder %s10993_s2, %s11222_s17 }
0x157d   : > { %p9726_p3 = scmp.lt.u32.totalorder %s9724_s3, %s9720_s21  ;;  %p9728_p11 = scmp.lt.u32.totalorder %s9720_s21, %s10993_s2 }
0x157e   : > { %p9722_p4 = pnand %p9721_p6, %p11223_p8 }
0x157f   : > { %p9727_p7 = por %p9726_p3, %p9725_p9 }
0x1580   : > { %p9723_p5 = pneg %p9722_p4 }
0x1581   : > { %p9729_p10 = por %p9728_p11, %p9727_p7 }
0x1583   : > { %p9730_p12 = pnand %p9729_p10, %p9723_p5 }
0x1585   : > { %9733 = shalt.err (!%p9730_p12)
}
0x1586   : > { %8032 = dma.vmem_to_hbm [thread:$0]  (%p11223_p8), %s10995_s13, 256, %s10993_s2, %s6717_s27  }
0x1587 PF: > { %s11224_s10 = sld [smem:[#allocation64_spill]]  ;;  %s11225_s18 = sld [smem:[#allocation67_spill]] }
0x1588   : > { %p11226_p1 = scmp.ne.s32.totalorder %s11186_s8, 0 }
0x158d   : > { %s6743_s20 = sand.u32 1, %s11224_s10   ;;  %p11227_p13 = scmp.ge.s32.totalorder %s11225_s18, 2 }
0x158e   : > { %s6744_s14 = scalar_lea.sflag [#allocation4], %s6743_s20 }
0x158f   : > { %p8121_p0 = pnand %p11227_p13, %p11226_p1 }
0x1591   : > { %9815 = dma.done.wait (!%p8121_p0), %s6744_s14, 256  }
0x1592   : > { %9817 = vsyncadd (!%p8121_p0), %s6744_s14, 4294967040  ;;  %s11228_s8 = sld [smem:[#allocation65_spill]]  ;;  %s11229_s5 = sld [smem:[#allocation66_spill]] }
0x1593   : > { %p57_p2 = scmp.ge.s32.totalorder %s10600_s30, 4   ;;  %s11230_s9 = smov %s10612_s6 }
0x1595   :  { %59 = sbr.rel (!%p57_p2) target bundleno = 46 (0x2e), region = 294 }
0x159c   :  { %6749 = vsyncpa [#allocation3], 1 }
0x159d   :  { %6751 = vsyncpa [#allocation3 + $0x1], 1 }
0x159e   :  { %6752 = vsyncpa [#allocation6], 1 }
0x159f   :  { %6754 = vsyncpa [#allocation6 + $0x1], 1 }
0x15a0   :  { %6755 = vsyncpa [#allocation9], 1 }
0x15a1   :  { %6756 = vsyncpa [#allocation12], 1 }
0x15a2   :  { %6757 = vsyncpa [#allocation15], 1 }
0x15a3   :  { %6758 = vsyncpa [#allocation18], 1 }
0x15a4   :  { %6759 = vsyncpa [#allocation21], 1 }
0x15a5   :  { %6760 = vsyncpa [#allocation24], 1 }
0x15a6   :  { %6761 = vsyncpa [#allocation27], 1 }
0x15a7   :  { %6762 = vsyncpa [#allocation30], 1 }
0x15a8   :  { %6763 = vsyncpa [#allocation33], 1 }
0x15a9   :  { %6764 = vsyncpa [#allocation36], 1 }
0x15aa   :  { %6765 = vsyncpa [#allocation39], 1 }
0x15ab   :  { %6766 = vsyncpa [#allocation42], 1 }
0x15ac   :  { %6767 = vsyncpa [#allocation45], 1 }
0x15ad   :  { %6768 = vsyncpa [#allocation4], 1 }
0x15ae   :  { %6770 = vsyncpa [#allocation4 + $0x1], 1 }

</bundles_post_ra>
